<compile_context>
chip_gen: v5e
topology: v5e:2x2
jax: 0.10.0
libtpu: 0.0.40
codegen_flags: <defaults>
</compile_context>

<pallas_src>
import functools

import jax
import jax.numpy as jnp
from jax import lax
from jax.experimental import pallas as pl
from jax.experimental.pallas import tpu as pltpu


# ----------------------------- math helpers (usable in and out of kernels) -----------------------------

def _layernorm(x, g, b, eps=1e-5):
    # PyTorch nn.LayerNorm over the last dim (biased variance, eps=1e-5).
    mu = jnp.mean(x, axis=-1, keepdims=True)
    var = jnp.mean((x - mu) ** 2, axis=-1, keepdims=True)
    return (x - mu) * lax.rsqrt(var + eps) * g + b


def _erf(x, *, approx_recip=False):
    # Abramowitz & Stegun 7.1.26 rational approximation (max abs err ~1.5e-7),
    # built only from exp/mul/add/select so it always lowers in Mosaic.
    # TODO(synk): swap for lax.erf if/when erf_p lowering is available in Pallas TPU.
    p = 0.3275911
    a1, a2, a3, a4, a5 = (0.254829592, -0.284496736, 1.421413741,
                          -1.453152027, 1.061405429)
    s = jnp.where(x >= 0.0, 1.0, -1.0)
    ax = jnp.abs(x)
    denom = 1.0 + p * ax
    if approx_recip:
        t = pl.reciprocal(denom, approx=True)       # EUP slot (in-kernel only)
    else:
        t = 1.0 / denom
    poly = t * (a1 + t * (a2 + t * (a3 + t * (a4 + t * a5))))
    return s * (1.0 - poly * jnp.exp(-ax * ax))


def _gelu_exact(x, *, approx_recip=False):
    # Matches PyTorch nn.GELU() (approximate='none'): x * 0.5 * (1 + erf(x/sqrt(2)))
    return 0.5 * x * (1.0 + _erf(x * 0.7071067811865476, approx_recip=approx_recip))


def _qmm(x, w_q, col_scale):
    # int8-weight matmul: dequantize weights to bf16 (integers <= 127 are exact in bf16),
    # accumulate in f32 on the MXU, then apply the per-output-column scale.
    acc = jnp.dot(x.astype(jnp.bfloat16),
                  w_q.astype(jnp.float32).astype(jnp.bfloat16),
                  preferred_element_type=jnp.float32)
    return acc * col_scale


# ----------------------------- the fused ViT kernel -----------------------------

def vit_kernel(x_hbm,                                   # (R, D) f32 in HBM (memory_space=ANY)
               bias_ref,                                # (S, S) f32 additive attention bias (const)
               ln1g_ref, ln1b_ref,                      # (1, 1, D) f32
               wqkv_q_ref, wqkv_s_ref,                  # (1, D, 3*inner) int8, (1, 1, 3*inner) f32
               wo_q_ref, wo_s_ref, bo_ref,              # (1, inner, D) int8, (1,1,D) f32, (1,1,D) f32
               ln2g_ref, ln2b_ref,                      # (1, 1, D) f32
               w1_q_ref, w1_s_ref, b1_ref,              # (1, D, mlp) int8, (1,1,mlp) f32, (1,1,mlp) f32
               w2_q_ref, w2_s_ref, b2_ref,              # (1, mlp, D) int8, (1,1,D) f32, (1,1,D) f32
               hg_ref, hb_ref, hw_ref, hbias_ref,       # head: (1,D),(1,D),(D,Cp),(1,Cp) f32
               o_ref,                                   # (B, Cp) f32 logits (padded classes)
               x_sc, attn_sc, hm_sc, dma_sem,           # scratch
               *, B, Np, N_real, heads, dim_head):
    layer = pl.program_id(0)
    n_layers = pl.num_programs(0)
    dh = dim_head
    inner = heads * dh
    R = B * Np
    S = B * heads * Np

    # ---- load the input activations once (layer 0) via explicit DMA; x then stays in VMEM ----
    @pl.when(layer == 0)
    def _():
        cp = pltpu.make_async_copy(x_hbm, x_sc, dma_sem)
        cp.start()
        cp.wait()

    x = x_sc[...]                                        # (R, D) f32 residual stream

    # ---------------- PreNorm + Attention + residual ----------------
    xn = _layernorm(x, ln1g_ref[0], ln1b_ref[0])
    # columns of wqkv are grouped per head as [Q_h | K_h | V_h]; attention scale is folded
    # into the Q column scales (exact, applied after the f32 accumulation).
    qkv = _qmm(xn, wqkv_q_ref[0], wqkv_s_ref[0])         # (R, 3*inner) f32

    # Stage into head-major rows: row index = (b, h, n).  These are cheap lane-aligned
    # slice copies, not matmuls; they let all heads/batches share ONE score and ONE apply
    # matmul below instead of 2*B*heads tiny MXU calls.
    for b in range(B):                                   # static: B*heads copies of (Np, 3*dh)
        for h in range(heads):
            hm_sc[(b * heads + h) * Np:(b * heads + h + 1) * Np, :] = (
                qkv[b * Np:(b + 1) * Np, h * 3 * dh:(h + 1) * 3 * dh])
    qkv_hm = hm_sc[...]                                  # (S, 3*dh) f32
    q_hm = qkv_hm[:, :dh]
    k_hm = qkv_hm[:, dh:2 * dh]
    v_hm = qkv_hm[:, 2 * dh:]

    # One dense score matmul for all (batch, head) blocks; off-block pairs and padded keys
    # are killed by the precomputed additive bias (-1e30 -> exp underflows to exactly 0).
    dots = lax.dot_general(q_hm, k_hm, (((1,), (1,)), ((), ())),
                           preferred_element_type=jnp.float32)        # (S, S)
    dots = dots + bias_ref[...]
    m = jnp.max(dots, axis=-1, keepdims=True)
    e = jnp.exp(dots - m)
    attn = e * pl.reciprocal(jnp.sum(e, axis=-1, keepdims=True), approx=True)
    out_hm = jnp.dot(attn, v_hm, preferred_element_type=jnp.float32)  # (S, dh)

    # Back to token-major (R, inner) so the output projection runs on all B*Np rows at once.
    for b in range(B):
        for h in range(heads):
            attn_sc[b * Np:(b + 1) * Np, h * dh:(h + 1) * dh] = (
                out_hm[(b * heads + h) * Np:(b * heads + h + 1) * Np, :])

    proj = _qmm(attn_sc[...], wo_q_ref[0], wo_s_ref[0]) + bo_ref[0]
    x = x + proj

    # ---------------- PreNorm + FeedForward + residual ----------------
    xn2 = _layernorm(x, ln2g_ref[0], ln2b_ref[0])
    h1 = _gelu_exact(_qmm(xn2, w1_q_ref[0], w1_s_ref[0]) + b1_ref[0], approx_recip=True)
    x = x + _qmm(h1, w2_q_ref[0], w2_s_ref[0]) + b2_ref[0]

    # Zero padded token rows so garbage cannot accumulate across depth (they are masked as
    # keys and excluded from pooling; this just keeps their magnitude bounded).
    row = lax.broadcasted_iota(jnp.int32, (R, 1), 0)
    x = jnp.where((row % Np) < N_real, x, 0.0)
    x_sc[...] = x

    # ---------------- fused head on the last layer: mean pool + LN + Linear ----------------
    @pl.when(layer == n_layers - 1)
    def _():
        # Pooling as a tiny matmul: pool_mat[b, r] = 1/N_real for real tokens of batch b.
        rb = lax.broadcasted_iota(jnp.int32, (B, R), 0)
        rc = lax.broadcasted_iota(jnp.int32, (B, R), 1)
        sel = (rc >= rb * Np) & (rc < rb * Np + N_real)
        pool_mat = jnp.where(sel, 1.0 / N_real, 0.0).astype(jnp.float32)
        pooled = jnp.dot(pool_mat, x, preferred_element_type=jnp.float32)   # (B, D)
        pn = _layernorm(pooled, hg_ref[...], hb_ref[...])
        logits = jnp.dot(pn, hw_ref[...],
                         preferred_element_type=jnp.float32) + hbias_ref[...]
        o_ref[...] = logits.astype(o_ref.dtype)          # lane-dense (B, Cp) store


# ----------------------------- wrapper -----------------------------

def vit_forward(x, pp, *, heads, dim_head, num_classes):
    """x: (B, num_patches, dim); pp: packed params from pack_params()."""
    B, n, D = x.shape
    N_real = n + 1
    Np = ((N_real + 15) // 16) * 16          # pad tokens to a sublane-friendly size
    R = B * Np
    inner = heads * dim_head
    S = B * heads * Np
    L = pp["wqkv_q"].shape[0]
    mlp = pp["w1_q"].shape[-1]
    Cp = pp["head_w"].shape[-1]              # lane-padded class count

    # cls token + positional embedding (emb_dropout is identity at inference)
    cls = jnp.broadcast_to(pp["cls_token"], (B, 1, D))
    xt = jnp.concatenate([cls, x], axis=1) + pp["pos_embedding"][:, :N_real]
    xt = jnp.pad(xt, ((0, 0), (0, Np - N_real), (0, 0)))
    x2 = xt.reshape(R, D).astype(jnp.float32)            # batch folded into matmul rows

    # Block-diagonal attention bias (hoisted out of the kernel): score row (b,h,i) may only
    # attend to column (b',h',j) when (b,h)==(b',h') and j is a real (non-padded) token.
    blk = jnp.arange(S) // Np
    colk = jnp.arange(S) % Np
    valid = (blk[:, None] == blk[None, :]) & (colk[None, :] < N_real)
    attn_bias = jnp.where(valid, 0.0, -1e30).astype(jnp.float32)       # (S, S)

    kernel = functools.partial(vit_kernel, B=B, Np=Np, N_real=N_real,
                               heads=heads, dim_head=dim_head)

    def stacked(*shape):                                  # per-layer weight, indexed by grid axis
        nd = len(shape)
        return pl.BlockSpec((1,) + shape, lambda l, _nd=nd: (l,) + (0,) * _nd)

    def const(*shape):                                    # resident across the whole grid
        nd = len(shape)
        return pl.BlockSpec(shape, lambda l, _nd=nd: (0,) * _nd)

    in_specs = [
        pl.BlockSpec(memory_space=pl.ANY),                # x: raw HBM ref, DMA'd once at layer 0
        const(S, S),                                      # attention bias (block-diag + key pad)
        stacked(1, D), stacked(1, D),                     # LN1 gamma/beta
        stacked(D, 3 * inner), stacked(1, 3 * inner),     # Wqkv int8 + per-column scales
        stacked(inner, D), stacked(1, D), stacked(1, D),  # Wout int8 + scales, bout
        stacked(1, D), stacked(1, D),                     # LN2 gamma/beta
        stacked(D, mlp), stacked(1, mlp), stacked(1, mlp),  # W1 int8 + scales, b1
        stacked(mlp, D), stacked(1, D), stacked(1, D),    # W2 int8 + scales, b2
        const(1, D), const(1, D), const(D, Cp), const(1, Cp),  # head LN + Linear (class-padded)
    ]

    args = (x2, attn_bias,
            pp["ln1_g"], pp["ln1_b"],
            pp["wqkv_q"], pp["wqkv_s"],
            pp["wo_q"], pp["wo_s"], pp["bo"],
            pp["ln2_g"], pp["ln2_b"],
            pp["w1_q"], pp["w1_s"], pp["b1"],
            pp["w2_q"], pp["w2_s"], pp["b2"],
            pp["head_ln_g"], pp["head_ln_b"], pp["head_w"], pp["head_b"])

    # ---- VMEM budget from actual buffer sizes (double-buffered pipeline blocks + consts
    # ---- + scratch + f32 temporaries), capped so it is also safe on v7x (64 MiB physical).
    stacked_args = args[2:17]
    const_args = (args[1],) + args[17:]
    blk_bytes = sum((int(a.size) // L) * a.dtype.itemsize for a in stacked_args)
    const_bytes = sum(int(a.size) * a.dtype.itemsize for a in const_args)
    scratch_bytes = 4 * (R * D + R * inner + S * 3 * dim_head)
    temp_bytes = 4 * (R * 3 * inner + S * S + S * dim_head + R * mlp + 6 * R * D)
    vmem_limit = int(min(48 * 2**20,
                         2 * blk_bytes + 2 * const_bytes + scratch_bytes
                         + temp_bytes + 8 * 2**20))

    flops = L * (2 * R * D * 3 * inner                    # qkv projection
                 + 4 * S * S * dim_head                   # dense scores + apply
                 + 2 * R * inner * D                      # output projection
                 + 4 * R * D * mlp)                       # FFN
    flops += 2 * B * R * D + 2 * B * D * Cp               # pooling matmul + head
    transcendentals = L * (S * S + R * mlp)               # softmax exp + erf exp
    bytes_accessed = int(sum(int(a.size) * a.dtype.itemsize for a in args) + B * Cp * 4)

    out = pl.pallas_call(
        kernel,
        out_shape=jax.ShapeDtypeStruct((B, Cp), jnp.float32),
        grid_spec=pltpu.PrefetchScalarGridSpec(
            num_scalar_prefetch=0,
            grid=(L,),                                    # depth axis; x resident in VMEM scratch
            in_specs=in_specs,
            out_specs=pl.BlockSpec((B, Cp), lambda l: (0, 0)),
            scratch_shapes=[pltpu.VMEM((R, D), jnp.float32),             # residual stream
                            pltpu.VMEM((R, inner), jnp.float32),         # token-major attn outputs
                            pltpu.VMEM((S, 3 * dim_head), jnp.float32),  # head-major Q|K|V staging
                            pltpu.SemaphoreType.DMA],                    # layer-0 input DMA
        ),
        compiler_params=pltpu.CompilerParams(
            dimension_semantics=("arbitrary",),           # sequential layer chain
            vmem_limit_bytes=vmem_limit,
        ),
        cost_estimate=pl.CostEstimate(flops=flops,
                                      transcendentals=transcendentals,
                                      bytes_accessed=bytes_accessed),
    )(*args)
    return out[:, :num_classes]


# ----------------------------- parameter construction & packing -----------------------------

def init_params(key, *, num_patches, dim, depth, heads, dim_head, mlp_dim, num_classes):
    """PyTorch-semantics parameters (f32, one dict per layer)."""
    inner = heads * dim_head
    keys = iter(jax.random.split(key, 8 + 4 * depth))

    def nrm(k, shape, s=0.02):
        return (jax.random.normal(k, shape, jnp.float32) * s).astype(jnp.float32)

    params = {
        "pos_embedding": jax.random.normal(next(keys), (1, num_patches + 1, dim), jnp.float32),
        "cls_token": jax.random.normal(next(keys), (1, 1, dim), jnp.float32),
        "layers": [],
        "head_ln_g": jnp.ones((1, dim), jnp.float32),
        "head_ln_b": jnp.zeros((1, dim), jnp.float32),
        "head_w": nrm(next(keys), (dim, num_classes)),
        "head_b": jnp.zeros((1, num_classes), jnp.float32),
    }
    for _ in range(depth):
        params["layers"].append({
            "ln1_g": jnp.ones((1, dim), jnp.float32),
            "ln1_b": jnp.zeros((1, dim), jnp.float32),
            "wqkv": nrm(next(keys), (dim, 3 * inner)),
            "wo": nrm(next(keys), (inner, dim)),
            "bo": jnp.zeros((1, dim), jnp.float32),
            "ln2_g": jnp.ones((1, dim), jnp.float32),
            "ln2_b": jnp.zeros((1, dim), jnp.float32),
            "w1": nrm(next(keys), (dim, mlp_dim)),
            "b1": jnp.zeros((1, mlp_dim), jnp.float32),
            "w2": nrm(next(keys), (mlp_dim, dim)),
            "b2": jnp.zeros((1, dim), jnp.float32),
        })
    return params


def pack_params(params, *, heads, dim_head):
    """Stack per-layer weights along depth, quantize the big projections to int8 with
    per-output-column scales (dequantized to bf16 in VMEM -> halves weight HBM traffic),
    fold the attention scale into the Q column scales, regroup Wqkv columns per head, and
    pad the classifier to a lane-dense width."""
    layers = params["layers"]
    inner = heads * dim_head
    dh = dim_head
    attn_scale = float(dim_head) ** (-0.5)

    def stack(name):
        return jnp.stack([lp[name] for lp in layers], axis=0)

    def quant(w):                                          # symmetric per-output-column int8
        absmax = jnp.max(jnp.abs(w), axis=-2, keepdims=True)
        scale = jnp.maximum(absmax, 1e-8) / 127.0
        q = jnp.clip(jnp.round(w / scale), -127.0, 127.0).astype(jnp.int8)
        return q, scale.astype(jnp.float32)

    wqkv_q, wqkv_s = quant(stack("wqkv"))                  # (L, D, 3*inner), (L, 1, 3*inner)
    wqkv_s = wqkv_s.at[:, :, :inner].multiply(attn_scale)  # fold dots*scale into Q (exact)

    def regroup(t):                                        # [Q|K|V]-by-head -> per-head [Qh|Kh|Vh]
        Lx, Dx, _ = t.shape
        return (t.reshape(Lx, Dx, 3, heads, dh)
                 .transpose(0, 1, 3, 2, 4)
                 .reshape(Lx, Dx, 3 * inner))

    wqkv_q, wqkv_s = regroup(wqkv_q), regroup(wqkv_s)

    wo_q, wo_s = quant(stack("wo"))
    w1_q, w1_s = quant(stack("w1"))
    w2_q, w2_s = quant(stack("w2"))

    C = params["head_w"].shape[-1]
    Cp = ((C + 127) // 128) * 128                          # lane-dense logits store
    head_w = jnp.pad(params["head_w"], ((0, 0), (0, Cp - C)))
    head_b = jnp.pad(params["head_b"], ((0, 0), (0, Cp - C)))

    return {
        "pos_embedding": params["pos_embedding"],
        "cls_token": params["cls_token"],
        "ln1_g": stack("ln1_g"), "ln1_b": stack("ln1_b"),
        "wqkv_q": wqkv_q, "wqkv_s": wqkv_s,
        "wo_q": wo_q, "wo_s": wo_s, "bo": stack("bo"),
        "ln2_g": stack("ln2_g"), "ln2_b": stack("ln2_b"),
        "w1_q": w1_q, "w1_s": w1_s, "b1": stack("b1"),
        "w2_q": w2_q, "w2_s": w2_s, "b2": stack("b2"),
        "head_ln_g": params["head_ln_g"], "head_ln_b": params["head_ln_b"],
        "head_w": head_w, "head_b": head_b,
    }


# ----------------------------- pure-JAX reference (sanity check) -----------------------------

def vit_reference(x, pp, *, heads, dim_head, num_classes):
    """Mirror of the PyTorch eval-mode forward, structured like the original module
    (per-head attention, exact softmax, mean pool) but sharing the kernel's precision
    policy (int8 weights dequantized to bf16, f32 accumulation, post-scale)."""
    B, n, D = x.shape
    N = n + 1
    inner = heads * dim_head
    L = pp["wqkv_q"].shape[0]

    cls = jnp.broadcast_to(pp["cls_token"], (B, 1, D))
    xc = (jnp.concatenate([cls, x], axis=1) + pp["pos_embedding"][:, :N]).astype(jnp.float32)

    for l in range(L):
        xn = _layernorm(xc, pp["ln1_g"][l], pp["ln1_b"][l])
        qkv = _qmm(xn, pp["wqkv_q"][l], pp["wqkv_s"][l])          # (B, N, 3*inner), per-head [Q|K|V]
        qkv = qkv.reshape(B, N, heads, 3, dim_head)
        q = qkv[:, :, :, 0].transpose(0, 2, 1, 3)                 # (B, H, N, dh), scale folded in
        k = qkv[:, :, :, 1].transpose(0, 2, 1, 3)
        v = qkv[:, :, :, 2].transpose(0, 2, 1, 3)
        dots = jnp.einsum("bhid,bhjd->bhij", q, k, preferred_element_type=jnp.float32)
        attn = jax.nn.softmax(dots, axis=-1)
        out = jnp.einsum("bhij,bhjd->bhid", attn, v, preferred_element_type=jnp.float32)
        out = out.transpose(0, 2, 1, 3).reshape(B, N, inner)
        xc = xc + _qmm(out, pp["wo_q"][l], pp["wo_s"][l]) + pp["bo"][l]

        xn2 = _layernorm(xc, pp["ln2_g"][l], pp["ln2_b"][l])
        h1 = _gelu_exact(_qmm(xn2, pp["w1_q"][l], pp["w1_s"][l]) + pp["b1"][l])
        xc = xc + _qmm(h1, pp["w2_q"][l], pp["w2_s"][l]) + pp["b2"][l]

    pooled = xc.mean(axis=1)
    pn = _layernorm(pooled, pp["head_ln_g"], pp["head_ln_b"])
    logits = jnp.dot(pn, pp["head_w"],
                     preferred_element_type=jnp.float32) + pp["head_b"]
    return logits[:, :num_classes]


# ----------------------------- main -----------------------------

if __name__ == "__main__":
    # Small-but-consistent configuration (module defaults scaled down):
    BATCH = 2
    NUM_PATCHES = 8
    DIM = 128
    DEPTH = 2
    HEADS = 4
    DIM_HEAD = DIM          # ViT.__init__ sets dim_head = dim
    MLP_DIM = 128
    NUM_CLASSES = 2

    root = jax.random.PRNGKey(0)
    k_x, k_p = jax.random.split(root)
    x = jax.random.normal(k_x, (BATCH, NUM_PATCHES, DIM), jnp.float32)
    params = init_params(k_p, num_patches=NUM_PATCHES, dim=DIM, depth=DEPTH,
                         heads=HEADS, dim_head=DIM_HEAD, mlp_dim=MLP_DIM,
                         num_classes=NUM_CLASSES)
    packed = pack_params(params, heads=HEADS, dim_head=DIM_HEAD)

    fwd = jax.jit(functools.partial(vit_forward, heads=HEADS, dim_head=DIM_HEAD,
                                    num_classes=NUM_CLASSES))
    out = fwd(x, packed)
    jax.block_until_ready(out)

    ref = vit_reference(x, packed, heads=HEADS, dim_head=DIM_HEAD,
                        num_classes=NUM_CLASSES)
    assert out.shape == (BATCH, NUM_CLASSES), out.shape
    assert bool(jnp.all(jnp.isfinite(out)))
    max_err = float(jnp.max(jnp.abs(out - ref)))
    assert bool(jnp.allclose(out, ref, rtol=5e-3, atol=5e-3)), (max_err, out, ref)

    print("KERNEL_OK")
</pallas_src>

<mosaic_0001>
module attributes {stable_mosaic.version = 11 : i64} {
  func.func @vit_kernel(%arg0: i32, %arg1: memref<32x128xf32, #tpu.memory_space<any>>, %arg2: memref<128x128xf32, #tpu.memory_space<vmem>>, %arg3: memref<1x1x128xf32, #tpu.memory_space<vmem>>, %arg4: memref<1x1x128xf32, #tpu.memory_space<vmem>>, %arg5: memref<1x128x1536xi8, #tpu.memory_space<vmem>>, %arg6: memref<1x1x1536xf32, #tpu.memory_space<vmem>>, %arg7: memref<1x512x128xi8, #tpu.memory_space<vmem>>, %arg8: memref<1x1x128xf32, #tpu.memory_space<vmem>>, %arg9: memref<1x1x128xf32, #tpu.memory_space<vmem>>, %arg10: memref<1x1x128xf32, #tpu.memory_space<vmem>>, %arg11: memref<1x1x128xf32, #tpu.memory_space<vmem>>, %arg12: memref<1x128x128xi8, #tpu.memory_space<vmem>>, %arg13: memref<1x1x128xf32, #tpu.memory_space<vmem>>, %arg14: memref<1x1x128xf32, #tpu.memory_space<vmem>>, %arg15: memref<1x128x128xi8, #tpu.memory_space<vmem>>, %arg16: memref<1x1x128xf32, #tpu.memory_space<vmem>>, %arg17: memref<1x1x128xf32, #tpu.memory_space<vmem>>, %arg18: memref<1x128xf32, #tpu.memory_space<vmem>>, %arg19: memref<1x128xf32, #tpu.memory_space<vmem>>, %arg20: memref<128x128xf32, #tpu.memory_space<vmem>>, %arg21: memref<1x128xf32, #tpu.memory_space<vmem>>, %arg22: memref<2x128xf32, #tpu.memory_space<vmem>>, %arg23: memref<32x128xf32, #tpu.memory_space<vmem>>, %arg24: memref<32x512xf32, #tpu.memory_space<vmem>>, %arg25: memref<128x384xf32, #tpu.memory_space<vmem>>, %arg26: memref<!tpu.dma_semaphore, #tpu.memory_space<semaphore_mem>>) attributes {dimension_semantics = [#tpu.dimension_semantics<arbitrary>], iteration_bounds = array<i64: 2>, scalar_prefetch = 0 : i64, scratch_operands = 4 : i64, tpu.core_type = #tpu.core_type<tc>, window_params = [{}, {pipeline_mode = #tpu.pipeline_mode<synchronous>, transform_indices = @transform_1, window_bounds = array<i64: 128, 128>}, {transform_indices = @transform_2, window_bounds = array<i64: 1, 1, 128>}, {transform_indices = @transform_3, window_bounds = array<i64: 1, 1, 128>}, {transform_indices = @transform_4, window_bounds = array<i64: 1, 128, 1536>}, {transform_indices = @transform_5, window_bounds = array<i64: 1, 1, 1536>}, {transform_indices = @transform_6, window_bounds = array<i64: 1, 512, 128>}, {transform_indices = @transform_7, window_bounds = array<i64: 1, 1, 128>}, {transform_indices = @transform_8, window_bounds = array<i64: 1, 1, 128>}, {transform_indices = @transform_9, window_bounds = array<i64: 1, 1, 128>}, {transform_indices = @transform_10, window_bounds = array<i64: 1, 1, 128>}, {transform_indices = @transform_11, window_bounds = array<i64: 1, 128, 128>}, {transform_indices = @transform_12, window_bounds = array<i64: 1, 1, 128>}, {transform_indices = @transform_13, window_bounds = array<i64: 1, 1, 128>}, {transform_indices = @transform_14, window_bounds = array<i64: 1, 128, 128>}, {transform_indices = @transform_15, window_bounds = array<i64: 1, 1, 128>}, {transform_indices = @transform_16, window_bounds = array<i64: 1, 1, 128>}, {pipeline_mode = #tpu.pipeline_mode<synchronous>, transform_indices = @transform_17, window_bounds = array<i64: 1, 128>}, {pipeline_mode = #tpu.pipeline_mode<synchronous>, transform_indices = @transform_18, window_bounds = array<i64: 1, 128>}, {pipeline_mode = #tpu.pipeline_mode<synchronous>, transform_indices = @transform_19, window_bounds = array<i64: 128, 128>}, {pipeline_mode = #tpu.pipeline_mode<synchronous>, transform_indices = @transform_20, window_bounds = array<i64: 1, 128>}, {pipeline_mode = #tpu.pipeline_mode<synchronous>, transform_indices = @transform_21, window_bounds = array<i64: 2, 128>}]} {
    %c0_i32 = arith.constant 0 : i32
    %0 = arith.cmpi eq, %arg0, %c0_i32 : i32
    %1 = arith.extui %0 : i1 to i32
    %c0_i32_0 = arith.constant 0 : i32
    %2 = arith.cmpi ne, %1, %c0_i32_0 : i32
    scf.if %2 {
      tpu.enqueue_dma source(%arg1 : memref<32x128xf32, #tpu.memory_space<any>>) target(%arg23 : memref<32x128xf32, #tpu.memory_space<vmem>>) target_semaphore(%arg26 : memref<!tpu.dma_semaphore, #tpu.memory_space<semaphore_mem>>)
      tpu.wait_dma2 semaphore(%arg26 : memref<!tpu.dma_semaphore, #tpu.memory_space<semaphore_mem>>) src(%arg1 : memref<32x128xf32, #tpu.memory_space<any>>) dst(%arg23 : memref<32x128xf32, #tpu.memory_space<vmem>>)
    } else {
    }
    %c0 = arith.constant 0 : index
    %c0_1 = arith.constant 0 : index
    %3 = vector.load %arg23[%c0, %c0_1] : memref<32x128xf32, #tpu.memory_space<vmem>>, vector<32x128xf32>
    %c0_2 = arith.constant 0 : index
    %c0_3 = arith.constant 0 : index
    %c0_4 = arith.constant 0 : index
    %4 = vector.load %arg3[%c0_2, %c0_3, %c0_4] : memref<1x1x128xf32, #tpu.memory_space<vmem>>, vector<1x1x128xf32>
    %5 = vector.shape_cast %4 : vector<1x1x128xf32> to vector<1x128xf32>
    %c0_5 = arith.constant 0 : index
    %c0_6 = arith.constant 0 : index
    %c0_7 = arith.constant 0 : index
    %6 = vector.load %arg4[%c0_5, %c0_6, %c0_7] : memref<1x1x128xf32, #tpu.memory_space<vmem>>, vector<1x1x128xf32>
    %7 = vector.shape_cast %6 : vector<1x1x128xf32> to vector<1x128xf32>
    %cst = arith.constant dense<0.000000e+00> : vector<32xf32>
    %8 = vector.multi_reduction <add>, %3, %cst [1] : vector<32x128xf32> to vector<32xf32>
    %9 = vector.shape_cast %8 : vector<32xf32> to vector<32x1xf32>
    %cst_8 = arith.constant 1.280000e+02 : f32
    %10 = vector.broadcast %cst_8 : f32 to vector<32x1xf32>
    %11 = arith.divf %9, %10 : vector<32x1xf32>
    %12 = vector.broadcast %11 : vector<32x1xf32> to vector<32x128xf32>
    %13 = arith.subf %3, %12 : vector<32x128xf32>
    %14 = arith.mulf %13, %13 : vector<32x128xf32>
    %cst_9 = arith.constant dense<0.000000e+00> : vector<32xf32>
    %15 = vector.multi_reduction <add>, %14, %cst_9 [1] : vector<32x128xf32> to vector<32xf32>
    %16 = vector.shape_cast %15 : vector<32xf32> to vector<32x1xf32>
    %cst_10 = arith.constant 1.280000e+02 : f32
    %17 = vector.broadcast %cst_10 : f32 to vector<32x1xf32>
    %18 = arith.divf %16, %17 : vector<32x1xf32>
    %19 = vector.broadcast %11 : vector<32x1xf32> to vector<32x128xf32>
    %20 = arith.subf %3, %19 : vector<32x128xf32>
    %cst_11 = arith.constant 9.99999974E-6 : f32
    %21 = vector.broadcast %cst_11 : f32 to vector<32x1xf32>
    %22 = arith.addf %18, %21 : vector<32x1xf32>
    %23 = math.rsqrt %22 : vector<32x1xf32>
    %24 = vector.broadcast %23 : vector<32x1xf32> to vector<32x128xf32>
    %25 = arith.mulf %20, %24 : vector<32x128xf32>
    %26 = vector.broadcast %5 : vector<1x128xf32> to vector<32x128xf32>
    %27 = arith.mulf %25, %26 : vector<32x128xf32>
    %28 = vector.broadcast %7 : vector<1x128xf32> to vector<32x128xf32>
    %29 = arith.addf %27, %28 : vector<32x128xf32>
    %c0_12 = arith.constant 0 : index
    %c0_13 = arith.constant 0 : index
    %c0_14 = arith.constant 0 : index
    %30 = vector.load %arg5[%c0_12, %c0_13, %c0_14] : memref<1x128x1536xi8, #tpu.memory_space<vmem>>, vector<1x128x1536xi8>
    %31 = vector.shape_cast %30 : vector<1x128x1536xi8> to vector<128x1536xi8>
    %c0_15 = arith.constant 0 : index
    %c0_16 = arith.constant 0 : index
    %c0_17 = arith.constant 0 : index
    %32 = vector.load %arg6[%c0_15, %c0_16, %c0_17] : memref<1x1x1536xf32, #tpu.memory_space<vmem>>, vector<1x1x1536xf32>
    %33 = vector.shape_cast %32 : vector<1x1x1536xf32> to vector<1x1536xf32>
    %34 = arith.truncf %29 : vector<32x128xf32> to vector<32x128xbf16>
    %35 = arith.sitofp %31 : vector<128x1536xi8> to vector<128x1536xf32>
    %36 = arith.truncf %35 : vector<128x1536xf32> to vector<128x1536xbf16>
    %cst_18 = arith.constant dense<0.000000e+00> : vector<32x1536xf32>
    %37 = tpu.matmul %34, %36, %cst_18 {dimension_numbers = #tpu.dot_dimension_numbers<[1], [0], [0], [1], [0, 0, 1, 1], [], []>} : vector<32x128xbf16>, vector<128x1536xbf16>, vector<32x1536xf32> -> vector<32x1536xf32>
    %38 = vector.broadcast %33 : vector<1x1536xf32> to vector<32x1536xf32>
    %39 = arith.mulf %37, %38 : vector<32x1536xf32>
    %40 = vector.extract_strided_slice %39 {offsets = [0, 0], sizes = [16, 384], strides = [1, 1]} : vector<32x1536xf32> to vector<16x384xf32>
    %c0_19 = arith.constant 0 : index
    %c0_20 = arith.constant 0 : index
    %41 = vector.load %arg25[%c0_19, %c0_20] : memref<128x384xf32, #tpu.memory_space<vmem>>, vector<16x384xf32>
    tpu.vector_store %arg25[%c0_19, %c0_20], %40 {strides = array<i32>} : memref<128x384xf32, #tpu.memory_space<vmem>>, vector<16x384xf32>,
    %42 = vector.extract_strided_slice %39 {offsets = [0, 384], sizes = [16, 384], strides = [1, 1]} : vector<32x1536xf32> to vector<16x384xf32>
    %c16 = arith.constant 16 : index
    %c0_21 = arith.constant 0 : index
    %43 = vector.load %arg25[%c16, %c0_21] : memref<128x384xf32, #tpu.memory_space<vmem>>, vector<16x384xf32>
    tpu.vector_store %arg25[%c16, %c0_21], %42 {strides = array<i32>} : memref<128x384xf32, #tpu.memory_space<vmem>>, vector<16x384xf32>,
    %44 = vector.extract_strided_slice %39 {offsets = [0, 768], sizes = [16, 384], strides = [1, 1]} : vector<32x1536xf32> to vector<16x384xf32>
    %c32 = arith.constant 32 : index
    %c0_22 = arith.constant 0 : index
    %45 = vector.load %arg25[%c32, %c0_22] : memref<128x384xf32, #tpu.memory_space<vmem>>, vector<16x384xf32>
    tpu.vector_store %arg25[%c32, %c0_22], %44 {strides = array<i32>} : memref<128x384xf32, #tpu.memory_space<vmem>>, vector<16x384xf32>,
    %46 = vector.extract_strided_slice %39 {offsets = [0, 1152], sizes = [16, 384], strides = [1, 1]} : vector<32x1536xf32> to vector<16x384xf32>
    %c48 = arith.constant 48 : index
    %c0_23 = arith.constant 0 : index
    %47 = vector.load %arg25[%c48, %c0_23] : memref<128x384xf32, #tpu.memory_space<vmem>>, vector<16x384xf32>
    tpu.vector_store %arg25[%c48, %c0_23], %46 {strides = array<i32>} : memref<128x384xf32, #tpu.memory_space<vmem>>, vector<16x384xf32>,
    %48 = vector.extract_strided_slice %39 {offsets = [16, 0], sizes = [16, 384], strides = [1, 1]} : vector<32x1536xf32> to vector<16x384xf32>
    %c64 = arith.constant 64 : index
    %c0_24 = arith.constant 0 : index
    %49 = vector.load %arg25[%c64, %c0_24] : memref<128x384xf32, #tpu.memory_space<vmem>>, vector<16x384xf32>
    tpu.vector_store %arg25[%c64, %c0_24], %48 {strides = array<i32>} : memref<128x384xf32, #tpu.memory_space<vmem>>, vector<16x384xf32>,
    %50 = vector.extract_strided_slice %39 {offsets = [16, 384], sizes = [16, 384], strides = [1, 1]} : vector<32x1536xf32> to vector<16x384xf32>
    %c80 = arith.constant 80 : index
    %c0_25 = arith.constant 0 : index
    %51 = vector.load %arg25[%c80, %c0_25] : memref<128x384xf32, #tpu.memory_space<vmem>>, vector<16x384xf32>
    tpu.vector_store %arg25[%c80, %c0_25], %50 {strides = array<i32>} : memref<128x384xf32, #tpu.memory_space<vmem>>, vector<16x384xf32>,
    %52 = vector.extract_strided_slice %39 {offsets = [16, 768], sizes = [16, 384], strides = [1, 1]} : vector<32x1536xf32> to vector<16x384xf32>
    %c96 = arith.constant 96 : index
    %c0_26 = arith.constant 0 : index
    %53 = vector.load %arg25[%c96, %c0_26] : memref<128x384xf32, #tpu.memory_space<vmem>>, vector<16x384xf32>
    tpu.vector_store %arg25[%c96, %c0_26], %52 {strides = array<i32>} : memref<128x384xf32, #tpu.memory_space<vmem>>, vector<16x384xf32>,
    %54 = vector.extract_strided_slice %39 {offsets = [16, 1152], sizes = [16, 384], strides = [1, 1]} : vector<32x1536xf32> to vector<16x384xf32>
    %c112 = arith.constant 112 : index
    %c0_27 = arith.constant 0 : index
    %55 = vector.load %arg25[%c112, %c0_27] : memref<128x384xf32, #tpu.memory_space<vmem>>, vector<16x384xf32>
    tpu.vector_store %arg25[%c112, %c0_27], %54 {strides = array<i32>} : memref<128x384xf32, #tpu.memory_space<vmem>>, vector<16x384xf32>,
    %c0_28 = arith.constant 0 : index
    %c0_29 = arith.constant 0 : index
    %56 = vector.load %arg25[%c0_28, %c0_29] : memref<128x384xf32, #tpu.memory_space<vmem>>, vector<128x384xf32>
    %57 = vector.extract_strided_slice %56 {offsets = [0, 0], sizes = [128, 128], strides = [1, 1]} : vector<128x384xf32> to vector<128x128xf32>
    %58 = vector.extract_strided_slice %56 {offsets = [0, 128], sizes = [128, 128], strides = [1, 1]} : vector<128x384xf32> to vector<128x128xf32>
    %59 = vector.extract_strided_slice %56 {offsets = [0, 256], sizes = [128, 128], strides = [1, 1]} : vector<128x384xf32> to vector<128x128xf32>
    %cst_30 = arith.constant dense<0.000000e+00> : vector<128x128xf32>
    %60 = tpu.matmul %57, %58, %cst_30 {dimension_numbers = #tpu.dot_dimension_numbers<[1], [1], [0], [0], [0, 0, 1, 0], [], []>} : vector<128x128xf32>, vector<128x128xf32>, vector<128x128xf32> -> vector<128x128xf32>
    %c0_31 = arith.constant 0 : index
    %c0_32 = arith.constant 0 : index
    %61 = vector.load %arg2[%c0_31, %c0_32] : memref<128x128xf32, #tpu.memory_space<vmem>>, vector<128x128xf32>
    %62 = arith.addf %60, %61 : vector<128x128xf32>
    %cst_33 = arith.constant dense<0xFF800000> : vector<128xf32>
    %63 = vector.multi_reduction <maximumf>, %62, %cst_33 [1] : vector<128x128xf32> to vector<128xf32>
    %64 = vector.shape_cast %63 : vector<128xf32> to vector<128x1xf32>
    %65 = vector.broadcast %64 : vector<128x1xf32> to vector<128x128xf32>
    %66 = arith.subf %62, %65 : vector<128x128xf32>
    %67 = math.exp %66 : vector<128x128xf32>
    %cst_34 = arith.constant dense<0.000000e+00> : vector<128xf32>
    %68 = vector.multi_reduction <add>, %67, %cst_34 [1] : vector<128x128xf32> to vector<128xf32>
    %69 = vector.shape_cast %68 : vector<128xf32> to vector<128x1xf32>
    %70 = tpu.reciprocal %69 {approx = true} : vector<128x1xf32> -> vector<128x1xf32>
    %71 = vector.broadcast %70 : vector<128x1xf32> to vector<128x128xf32>
    %72 = arith.mulf %67, %71 : vector<128x128xf32>
    %cst_35 = arith.constant dense<0.000000e+00> : vector<128x128xf32>
    %73 = tpu.matmul %72, %59, %cst_35 {dimension_numbers = #tpu.dot_dimension_numbers<[1], [0], [0], [1], [0, 0, 1, 1], [], []>} : vector<128x128xf32>, vector<128x128xf32>, vector<128x128xf32> -> vector<128x128xf32>
    %74 = vector.extract_strided_slice %73 {offsets = [0, 0], sizes = [16, 128], strides = [1, 1]} : vector<128x128xf32> to vector<16x128xf32>
    %c0_36 = arith.constant 0 : index
    %c0_37 = arith.constant 0 : index
    %75 = vector.load %arg24[%c0_36, %c0_37] : memref<32x512xf32, #tpu.memory_space<vmem>>, vector<16x128xf32>
    tpu.vector_store %arg24[%c0_36, %c0_37], %74 {strides = array<i32>} : memref<32x512xf32, #tpu.memory_space<vmem>>, vector<16x128xf32>,
    %76 = vector.extract_strided_slice %73 {offsets = [16, 0], sizes = [16, 128], strides = [1, 1]} : vector<128x128xf32> to vector<16x128xf32>
    %c0_38 = arith.constant 0 : index
    %c128 = arith.constant 128 : index
    %77 = vector.load %arg24[%c0_38, %c128] : memref<32x512xf32, #tpu.memory_space<vmem>>, vector<16x128xf32>
    tpu.vector_store %arg24[%c0_38, %c128], %76 {strides = array<i32>} : memref<32x512xf32, #tpu.memory_space<vmem>>, vector<16x128xf32>,
    %78 = vector.extract_strided_slice %73 {offsets = [32, 0], sizes = [16, 128], strides = [1, 1]} : vector<128x128xf32> to vector<16x128xf32>
    %c0_39 = arith.constant 0 : index
    %c256 = arith.constant 256 : index
    %79 = vector.load %arg24[%c0_39, %c256] : memref<32x512xf32, #tpu.memory_space<vmem>>, vector<16x128xf32>
    tpu.vector_store %arg24[%c0_39, %c256], %78 {strides = array<i32>} : memref<32x512xf32, #tpu.memory_space<vmem>>, vector<16x128xf32>,
    %80 = vector.extract_strided_slice %73 {offsets = [48, 0], sizes = [16, 128], strides = [1, 1]} : vector<128x128xf32> to vector<16x128xf32>
    %c0_40 = arith.constant 0 : index
    %c384 = arith.constant 384 : index
    %81 = vector.load %arg24[%c0_40, %c384] : memref<32x512xf32, #tpu.memory_space<vmem>>, vector<16x128xf32>
    tpu.vector_store %arg24[%c0_40, %c384], %80 {strides = array<i32>} : memref<32x512xf32, #tpu.memory_space<vmem>>, vector<16x128xf32>,
    %82 = vector.extract_strided_slice %73 {offsets = [64, 0], sizes = [16, 128], strides = [1, 1]} : vector<128x128xf32> to vector<16x128xf32>
    %c16_41 = arith.constant 16 : index
    %c0_42 = arith.constant 0 : index
    %83 = vector.load %arg24[%c16_41, %c0_42] : memref<32x512xf32, #tpu.memory_space<vmem>>, vector<16x128xf32>
    tpu.vector_store %arg24[%c16_41, %c0_42], %82 {strides = array<i32>} : memref<32x512xf32, #tpu.memory_space<vmem>>, vector<16x128xf32>,
    %84 = vector.extract_strided_slice %73 {offsets = [80, 0], sizes = [16, 128], strides = [1, 1]} : vector<128x128xf32> to vector<16x128xf32>
    %c16_43 = arith.constant 16 : index
    %c128_44 = arith.constant 128 : index
    %85 = vector.load %arg24[%c16_43, %c128_44] : memref<32x512xf32, #tpu.memory_space<vmem>>, vector<16x128xf32>
    tpu.vector_store %arg24[%c16_43, %c128_44], %84 {strides = array<i32>} : memref<32x512xf32, #tpu.memory_space<vmem>>, vector<16x128xf32>,
    %86 = vector.extract_strided_slice %73 {offsets = [96, 0], sizes = [16, 128], strides = [1, 1]} : vector<128x128xf32> to vector<16x128xf32>
    %c16_45 = arith.constant 16 : index
    %c256_46 = arith.constant 256 : index
    %87 = vector.load %arg24[%c16_45, %c256_46] : memref<32x512xf32, #tpu.memory_space<vmem>>, vector<16x128xf32>
    tpu.vector_store %arg24[%c16_45, %c256_46], %86 {strides = array<i32>} : memref<32x512xf32, #tpu.memory_space<vmem>>, vector<16x128xf32>,
    %88 = vector.extract_strided_slice %73 {offsets = [112, 0], sizes = [16, 128], strides = [1, 1]} : vector<128x128xf32> to vector<16x128xf32>
    %c16_47 = arith.constant 16 : index
    %c384_48 = arith.constant 384 : index
    %89 = vector.load %arg24[%c16_47, %c384_48] : memref<32x512xf32, #tpu.memory_space<vmem>>, vector<16x128xf32>
    tpu.vector_store %arg24[%c16_47, %c384_48], %88 {strides = array<i32>} : memref<32x512xf32, #tpu.memory_space<vmem>>, vector<16x128xf32>,
    %c0_49 = arith.constant 0 : index
    %c0_50 = arith.constant 0 : index
    %90 = vector.load %arg24[%c0_49, %c0_50] : memref<32x512xf32, #tpu.memory_space<vmem>>, vector<32x512xf32>
    %c0_51 = arith.constant 0 : index
    %c0_52 = arith.constant 0 : index
    %c0_53 = arith.constant 0 : index
    %91 = vector.load %arg7[%c0_51, %c0_52, %c0_53] : memref<1x512x128xi8, #tpu.memory_space<vmem>>, vector<1x512x128xi8>
    %92 = vector.shape_cast %91 : vector<1x512x128xi8> to vector<512x128xi8>
    %c0_54 = arith.constant 0 : index
    %c0_55 = arith.constant 0 : index
    %c0_56 = arith.constant 0 : index
    %93 = vector.load %arg8[%c0_54, %c0_55, %c0_56] : memref<1x1x128xf32, #tpu.memory_space<vmem>>, vector<1x1x128xf32>
    %94 = vector.shape_cast %93 : vector<1x1x128xf32> to vector<1x128xf32>
    %95 = arith.truncf %90 : vector<32x512xf32> to vector<32x512xbf16>
    %96 = arith.sitofp %92 : vector<512x128xi8> to vector<512x128xf32>
    %97 = arith.truncf %96 : vector<512x128xf32> to vector<512x128xbf16>
    %cst_57 = arith.constant dense<0.000000e+00> : vector<32x128xf32>
    %98 = tpu.matmul %95, %97, %cst_57 {dimension_numbers = #tpu.dot_dimension_numbers<[1], [0], [0], [1], [0, 0, 1, 1], [], []>} : vector<32x512xbf16>, vector<512x128xbf16>, vector<32x128xf32> -> vector<32x128xf32>
    %99 = vector.broadcast %94 : vector<1x128xf32> to vector<32x128xf32>
    %100 = arith.mulf %98, %99 : vector<32x128xf32>
    %c0_58 = arith.constant 0 : index
    %c0_59 = arith.constant 0 : index
    %c0_60 = arith.constant 0 : index
    %101 = vector.load %arg9[%c0_58, %c0_59, %c0_60] : memref<1x1x128xf32, #tpu.memory_space<vmem>>, vector<1x1x128xf32>
    %102 = vector.shape_cast %101 : vector<1x1x128xf32> to vector<1x128xf32>
    %103 = vector.broadcast %102 : vector<1x128xf32> to vector<32x128xf32>
    %104 = arith.addf %100, %103 : vector<32x128xf32>
    %105 = arith.addf %3, %104 : vector<32x128xf32>
    %c0_61 = arith.constant 0 : index
    %c0_62 = arith.constant 0 : index
    %c0_63 = arith.constant 0 : index
    %106 = vector.load %arg10[%c0_61, %c0_62, %c0_63] : memref<1x1x128xf32, #tpu.memory_space<vmem>>, vector<1x1x128xf32>
    %107 = vector.shape_cast %106 : vector<1x1x128xf32> to vector<1x128xf32>
    %c0_64 = arith.constant 0 : index
    %c0_65 = arith.constant 0 : index
    %c0_66 = arith.constant 0 : index
    %108 = vector.load %arg11[%c0_64, %c0_65, %c0_66] : memref<1x1x128xf32, #tpu.memory_space<vmem>>, vector<1x1x128xf32>
    %109 = vector.shape_cast %108 : vector<1x1x128xf32> to vector<1x128xf32>
    %cst_67 = arith.constant dense<0.000000e+00> : vector<32xf32>
    %110 = vector.multi_reduction <add>, %105, %cst_67 [1] : vector<32x128xf32> to vector<32xf32>
    %111 = vector.shape_cast %110 : vector<32xf32> to vector<32x1xf32>
    %cst_68 = arith.constant 1.280000e+02 : f32
    %112 = vector.broadcast %cst_68 : f32 to vector<32x1xf32>
    %113 = arith.divf %111, %112 : vector<32x1xf32>
    %114 = vector.broadcast %113 : vector<32x1xf32> to vector<32x128xf32>
    %115 = arith.subf %105, %114 : vector<32x128xf32>
    %116 = arith.mulf %115, %115 : vector<32x128xf32>
    %cst_69 = arith.constant dense<0.000000e+00> : vector<32xf32>
    %117 = vector.multi_reduction <add>, %116, %cst_69 [1] : vector<32x128xf32> to vector<32xf32>
    %118 = vector.shape_cast %117 : vector<32xf32> to vector<32x1xf32>
    %cst_70 = arith.constant 1.280000e+02 : f32
    %119 = vector.broadcast %cst_70 : f32 to vector<32x1xf32>
    %120 = arith.divf %118, %119 : vector<32x1xf32>
    %121 = vector.broadcast %113 : vector<32x1xf32> to vector<32x128xf32>
    %122 = arith.subf %105, %121 : vector<32x128xf32>
    %cst_71 = arith.constant 9.99999974E-6 : f32
    %123 = vector.broadcast %cst_71 : f32 to vector<32x1xf32>
    %124 = arith.addf %120, %123 : vector<32x1xf32>
    %125 = math.rsqrt %124 : vector<32x1xf32>
    %126 = vector.broadcast %125 : vector<32x1xf32> to vector<32x128xf32>
    %127 = arith.mulf %122, %126 : vector<32x128xf32>
    %128 = vector.broadcast %107 : vector<1x128xf32> to vector<32x128xf32>
    %129 = arith.mulf %127, %128 : vector<32x128xf32>
    %130 = vector.broadcast %109 : vector<1x128xf32> to vector<32x128xf32>
    %131 = arith.addf %129, %130 : vector<32x128xf32>
    %c0_72 = arith.constant 0 : index
    %c0_73 = arith.constant 0 : index
    %c0_74 = arith.constant 0 : index
    %132 = vector.load %arg12[%c0_72, %c0_73, %c0_74] : memref<1x128x128xi8, #tpu.memory_space<vmem>>, vector<1x128x128xi8>
    %133 = vector.shape_cast %132 : vector<1x128x128xi8> to vector<128x128xi8>
    %c0_75 = arith.constant 0 : index
    %c0_76 = arith.constant 0 : index
    %c0_77 = arith.constant 0 : index
    %134 = vector.load %arg13[%c0_75, %c0_76, %c0_77] : memref<1x1x128xf32, #tpu.memory_space<vmem>>, vector<1x1x128xf32>
    %135 = vector.shape_cast %134 : vector<1x1x128xf32> to vector<1x128xf32>
    %136 = arith.truncf %131 : vector<32x128xf32> to vector<32x128xbf16>
    %137 = arith.sitofp %133 : vector<128x128xi8> to vector<128x128xf32>
    %138 = arith.truncf %137 : vector<128x128xf32> to vector<128x128xbf16>
    %cst_78 = arith.constant dense<0.000000e+00> : vector<32x128xf32>
    %139 = tpu.matmul %136, %138, %cst_78 {dimension_numbers = #tpu.dot_dimension_numbers<[1], [0], [0], [1], [0, 0, 1, 1], [], []>} : vector<32x128xbf16>, vector<128x128xbf16>, vector<32x128xf32> -> vector<32x128xf32>
    %140 = vector.broadcast %135 : vector<1x128xf32> to vector<32x128xf32>
    %141 = arith.mulf %139, %140 : vector<32x128xf32>
    %c0_79 = arith.constant 0 : index
    %c0_80 = arith.constant 0 : index
    %c0_81 = arith.constant 0 : index
    %142 = vector.load %arg14[%c0_79, %c0_80, %c0_81] : memref<1x1x128xf32, #tpu.memory_space<vmem>>, vector<1x1x128xf32>
    %143 = vector.shape_cast %142 : vector<1x1x128xf32> to vector<1x128xf32>
    %144 = vector.broadcast %143 : vector<1x128xf32> to vector<32x128xf32>
    %145 = arith.addf %141, %144 : vector<32x128xf32>
    %cst_82 = arith.constant 5.000000e-01 : f32
    %146 = vector.broadcast %cst_82 : f32 to vector<32x128xf32>
    %147 = arith.mulf %146, %145 : vector<32x128xf32>
    %cst_83 = arith.constant 0.707106769 : f32
    %148 = vector.broadcast %cst_83 : f32 to vector<32x128xf32>
    %149 = arith.mulf %145, %148 : vector<32x128xf32>
    %cst_84 = arith.constant 0.000000e+00 : f32
    %150 = vector.broadcast %cst_84 : f32 to vector<32x128xf32>
    %151 = arith.cmpf oge, %149, %150 : vector<32x128xf32>
    %cst_85 = arith.constant 1.000000e+00 : f32
    %cst_86 = arith.constant -1.000000e+00 : f32
    %152 = vector.broadcast %cst_85 : f32 to vector<32x128xf32>
    %153 = vector.broadcast %cst_86 : f32 to vector<32x128xf32>
    %154 = arith.select %151, %152, %153 : vector<32x128xi1>, vector<32x128xf32>
    %155 = math.absf %149 : vector<32x128xf32>
    %cst_87 = arith.constant 0.327591091 : f32
    %156 = vector.broadcast %cst_87 : f32 to vector<32x128xf32>
    %157 = arith.mulf %156, %155 : vector<32x128xf32>
    %cst_88 = arith.constant 1.000000e+00 : f32
    %158 = vector.broadcast %cst_88 : f32 to vector<32x128xf32>
    %159 = arith.addf %158, %157 : vector<32x128xf32>
    %160 = tpu.reciprocal %159 {approx = true} : vector<32x128xf32> -> vector<32x128xf32>
    %cst_89 = arith.constant 1.06140542 : f32
    %161 = vector.broadcast %cst_89 : f32 to vector<32x128xf32>
    %162 = arith.mulf %160, %161 : vector<32x128xf32>
    %cst_90 = arith.constant -1.45315206 : f32
    %163 = vector.broadcast %cst_90 : f32 to vector<32x128xf32>
    %164 = arith.addf %163, %162 : vector<32x128xf32>
    %165 = arith.mulf %160, %164 : vector<32x128xf32>
    %cst_91 = arith.constant 1.42141378 : f32
    %166 = vector.broadcast %cst_91 : f32 to vector<32x128xf32>
    %167 = arith.addf %166, %165 : vector<32x128xf32>
    %168 = arith.mulf %160, %167 : vector<32x128xf32>
    %cst_92 = arith.constant -0.284496725 : f32
    %169 = vector.broadcast %cst_92 : f32 to vector<32x128xf32>
    %170 = arith.addf %169, %168 : vector<32x128xf32>
    %171 = arith.mulf %160, %170 : vector<32x128xf32>
    %cst_93 = arith.constant 0.254829586 : f32
    %172 = vector.broadcast %cst_93 : f32 to vector<32x128xf32>
    %173 = arith.addf %172, %171 : vector<32x128xf32>
    %174 = arith.mulf %160, %173 : vector<32x128xf32>
    %cst_94 = arith.constant 0.000000e+00 : f32
    %175 = vector.broadcast %cst_94 : f32 to vector<32x128xf32>
    %176 = arith.subf %175, %155 : vector<32x128xf32>
    %177 = arith.mulf %176, %155 : vector<32x128xf32>
    %178 = math.exp %177 : vector<32x128xf32>
    %179 = arith.mulf %174, %178 : vector<32x128xf32>
    %cst_95 = arith.constant 1.000000e+00 : f32
    %180 = vector.broadcast %cst_95 : f32 to vector<32x128xf32>
    %181 = arith.subf %180, %179 : vector<32x128xf32>
    %182 = arith.mulf %154, %181 : vector<32x128xf32>
    %cst_96 = arith.constant 1.000000e+00 : f32
    %183 = vector.broadcast %cst_96 : f32 to vector<32x128xf32>
    %184 = arith.addf %183, %182 : vector<32x128xf32>
    %185 = arith.mulf %147, %184 : vector<32x128xf32>
    %c0_97 = arith.constant 0 : index
    %c0_98 = arith.constant 0 : index
    %c0_99 = arith.constant 0 : index
    %186 = vector.load %arg15[%c0_97, %c0_98, %c0_99] : memref<1x128x128xi8, #tpu.memory_space<vmem>>, vector<1x128x128xi8>
    %187 = vector.shape_cast %186 : vector<1x128x128xi8> to vector<128x128xi8>
    %c0_100 = arith.constant 0 : index
    %c0_101 = arith.constant 0 : index
    %c0_102 = arith.constant 0 : index
    %188 = vector.load %arg16[%c0_100, %c0_101, %c0_102] : memref<1x1x128xf32, #tpu.memory_space<vmem>>, vector<1x1x128xf32>
    %189 = vector.shape_cast %188 : vector<1x1x128xf32> to vector<1x128xf32>
    %190 = arith.truncf %185 : vector<32x128xf32> to vector<32x128xbf16>
    %191 = arith.sitofp %187 : vector<128x128xi8> to vector<128x128xf32>
    %192 = arith.truncf %191 : vector<128x128xf32> to vector<128x128xbf16>
    %cst_103 = arith.constant dense<0.000000e+00> : vector<32x128xf32>
    %193 = tpu.matmul %190, %192, %cst_103 {dimension_numbers = #tpu.dot_dimension_numbers<[1], [0], [0], [1], [0, 0, 1, 1], [], []>} : vector<32x128xbf16>, vector<128x128xbf16>, vector<32x128xf32> -> vector<32x128xf32>
    %194 = vector.broadcast %189 : vector<1x128xf32> to vector<32x128xf32>
    %195 = arith.mulf %193, %194 : vector<32x128xf32>
    %196 = arith.addf %105, %195 : vector<32x128xf32>
    %c0_104 = arith.constant 0 : index
    %c0_105 = arith.constant 0 : index
    %c0_106 = arith.constant 0 : index
    %197 = vector.load %arg17[%c0_104, %c0_105, %c0_106] : memref<1x1x128xf32, #tpu.memory_space<vmem>>, vector<1x1x128xf32>
    %198 = vector.shape_cast %197 : vector<1x1x128xf32> to vector<1x128xf32>
    %199 = vector.broadcast %198 : vector<1x128xf32> to vector<32x128xf32>
    %200 = arith.addf %196, %199 : vector<32x128xf32>
    %201 = tpu.iota {dimensions = array<i32: 0>} : vector<32x1xi32>
    %c16_i32 = arith.constant 16 : i32
    %c0_i32_107 = arith.constant 0 : i32
    %202 = arith.cmpi eq, %c16_i32, %c0_i32_107 : i32
    %c1_i32 = arith.constant 1 : i32
    %203 = arith.select %202, %c1_i32, %c16_i32 : i32
    %204 = vector.broadcast %203 : i32 to vector<32x1xi32>
    %205 = arith.remsi %201, %204 : vector<32x1xi32>
    %c0_i32_108 = arith.constant 0 : i32
    %206 = vector.broadcast %c0_i32_108 : i32 to vector<32x1xi32>
    %207 = arith.cmpi ne, %205, %206 : vector<32x1xi32>
    %c0_i32_109 = arith.constant 0 : i32
    %208 = vector.broadcast %c0_i32_109 : i32 to vector<32x1xi32>
    %209 = arith.cmpi slt, %205, %208 : vector<32x1xi32>
    %c0_i32_110 = arith.constant 0 : i32
    %210 = arith.cmpi slt, %203, %c0_i32_110 : i32
    %211 = vector.broadcast %210 : i1 to vector<32x1xi1>
    %212 = vector.broadcast %211 : vector<32x1xi1> to vector<32x1xi1>
    %213 = arith.xori %209, %212 : vector<32x1xi1>
    %214 = arith.andi %213, %207 : vector<32x1xi1>
    %215 = vector.broadcast %203 : i32 to vector<32x1xi32>
    %216 = arith.addi %205, %215 : vector<32x1xi32>
    %217 = arith.select %214, %216, %205 : vector<32x1xi1>, vector<32x1xi32>
    %c9_i32 = arith.constant 9 : i32
    %218 = vector.broadcast %c9_i32 : i32 to vector<32x1xi32>
    %219 = arith.cmpi slt, %217, %218 : vector<32x1xi32>
    %cst_111 = arith.constant 0.000000e+00 : f32
    %220 = vector.shape_cast %219 : vector<32x1xi1> to vector<32x1xi1>
    %221 = vector.broadcast %220 : vector<32x1xi1> to vector<32x128xi1>
    %222 = vector.broadcast %cst_111 : f32 to vector<32x128xf32>
    %223 = arith.select %221, %200, %222 : vector<32x128xi1>, vector<32x128xf32>
    %c0_112 = arith.constant 0 : index
    %c0_113 = arith.constant 0 : index
    %224 = vector.load %arg23[%c0_112, %c0_113] : memref<32x128xf32, #tpu.memory_space<vmem>>, vector<32x128xf32>
    tpu.vector_store %arg23[%c0_112, %c0_113], %223 {strides = array<i32>} : memref<32x128xf32, #tpu.memory_space<vmem>>, vector<32x128xf32>,
    %c1_i32_114 = arith.constant 1 : i32
    %225 = arith.cmpi eq, %arg0, %c1_i32_114 : i32
    %226 = arith.extui %225 : i1 to i32
    %c0_i32_115 = arith.constant 0 : i32
    %227 = arith.cmpi ne, %226, %c0_i32_115 : i32
    scf.if %227 {
      %228 = tpu.iota {dimensions = array<i32: 0>} : vector<2x32xi32>
      %229 = tpu.iota {dimensions = array<i32: 1>} : vector<2x32xi32>
      %c16_i32_116 = arith.constant 16 : i32
      %230 = vector.broadcast %c16_i32_116 : i32 to vector<2x32xi32>
      %231 = arith.muli %228, %230 : vector<2x32xi32>
      %232 = arith.cmpi sge, %229, %231 : vector<2x32xi32>
      %c16_i32_117 = arith.constant 16 : i32
      %233 = vector.broadcast %c16_i32_117 : i32 to vector<2x32xi32>
      %234 = arith.muli %228, %233 : vector<2x32xi32>
      %c9_i32_118 = arith.constant 9 : i32
      %235 = vector.broadcast %c9_i32_118 : i32 to vector<2x32xi32>
      %236 = arith.addi %234, %235 : vector<2x32xi32>
      %237 = arith.cmpi slt, %229, %236 : vector<2x32xi32>
      %238 = arith.andi %232, %237 : vector<2x32xi1>
      %cst_119 = arith.constant 0.111111112 : f32
      %cst_120 = arith.constant 0.000000e+00 : f32
      %239 = vector.broadcast %cst_119 : f32 to vector<2x32xf32>
      %240 = vector.broadcast %cst_120 : f32 to vector<2x32xf32>
      %241 = arith.select %238, %239, %240 : vector<2x32xi1>, vector<2x32xf32>
      %cst_121 = arith.constant dense<0.000000e+00> : vector<2x128xf32>
      %242 = tpu.matmul %241, %223, %cst_121 {dimension_numbers = #tpu.dot_dimension_numbers<[1], [0], [0], [1], [0, 0, 1, 1], [], []>} : vector<2x32xf32>, vector<32x128xf32>, vector<2x128xf32> -> vector<2x128xf32>
      %c0_122 = arith.constant 0 : index
      %c0_123 = arith.constant 0 : index
      %243 = vector.load %arg18[%c0_122, %c0_123] : memref<1x128xf32, #tpu.memory_space<vmem>>, vector<1x128xf32>
      %c0_124 = arith.constant 0 : index
      %c0_125 = arith.constant 0 : index
      %244 = vector.load %arg19[%c0_124, %c0_125] : memref<1x128xf32, #tpu.memory_space<vmem>>, vector<1x128xf32>
      %cst_126 = arith.constant dense<0.000000e+00> : vector<2xf32>
      %245 = vector.multi_reduction <add>, %242, %cst_126 [1] : vector<2x128xf32> to vector<2xf32>
      %246 = vector.shape_cast %245 : vector<2xf32> to vector<2x1xf32>
      %cst_127 = arith.constant 1.280000e+02 : f32
      %247 = vector.broadcast %cst_127 : f32 to vector<2x1xf32>
      %248 = arith.divf %246, %247 : vector<2x1xf32>
      %249 = vector.broadcast %248 : vector<2x1xf32> to vector<2x128xf32>
      %250 = arith.subf %242, %249 : vector<2x128xf32>
      %251 = arith.mulf %250, %250 : vector<2x128xf32>
      %cst_128 = arith.constant dense<0.000000e+00> : vector<2xf32>
      %252 = vector.multi_reduction <add>, %251, %cst_128 [1] : vector<2x128xf32> to vector<2xf32>
      %253 = vector.shape_cast %252 : vector<2xf32> to vector<2x1xf32>
      %cst_129 = arith.constant 1.280000e+02 : f32
      %254 = vector.broadcast %cst_129 : f32 to vector<2x1xf32>
      %255 = arith.divf %253, %254 : vector<2x1xf32>
      %256 = vector.broadcast %248 : vector<2x1xf32> to vector<2x128xf32>
      %257 = arith.subf %242, %256 : vector<2x128xf32>
      %cst_130 = arith.constant 9.99999974E-6 : f32
      %258 = vector.broadcast %cst_130 : f32 to vector<2x1xf32>
      %259 = arith.addf %255, %258 : vector<2x1xf32>
      %260 = math.rsqrt %259 : vector<2x1xf32>
      %261 = vector.broadcast %260 : vector<2x1xf32> to vector<2x128xf32>
      %262 = arith.mulf %257, %261 : vector<2x128xf32>
      %263 = vector.broadcast %243 : vector<1x128xf32> to vector<2x128xf32>
      %264 = arith.mulf %262, %263 : vector<2x128xf32>
      %265 = vector.broadcast %244 : vector<1x128xf32> to vector<2x128xf32>
      %266 = arith.addf %264, %265 : vector<2x128xf32>
      %c0_131 = arith.constant 0 : index
      %c0_132 = arith.constant 0 : index
      %267 = vector.load %arg20[%c0_131, %c0_132] : memref<128x128xf32, #tpu.memory_space<vmem>>, vector<128x128xf32>
      %cst_133 = arith.constant dense<0.000000e+00> : vector<2x128xf32>
      %268 = tpu.matmul %266, %267, %cst_133 {dimension_numbers = #tpu.dot_dimension_numbers<[1], [0], [0], [1], [0, 0, 1, 1], [], []>} : vector<2x128xf32>, vector<128x128xf32>, vector<2x128xf32> -> vector<2x128xf32>
      %c0_134 = arith.constant 0 : index
      %c0_135 = arith.constant 0 : index
      %269 = vector.load %arg21[%c0_134, %c0_135] : memref<1x128xf32, #tpu.memory_space<vmem>>, vector<1x128xf32>
      %270 = vector.broadcast %269 : vector<1x128xf32> to vector<2x128xf32>
      %271 = arith.addf %268, %270 : vector<2x128xf32>
      %c0_136 = arith.constant 0 : index
      %c0_137 = arith.constant 0 : index
      %272 = vector.load %arg22[%c0_136, %c0_137] : memref<2x128xf32, #tpu.memory_space<vmem>>, vector<2x128xf32>
      tpu.vector_store %arg22[%c0_136, %c0_137], %271 {strides = array<i32>} : memref<2x128xf32, #tpu.memory_space<vmem>>, vector<2x128xf32>,
    } else {
    }
    return
  }
  func.func @transform_1(%arg0: i32) -> (i32, i32) {
    %c0_i32 = arith.constant 0 : i32
    %c0_i32_0 = arith.constant 0 : i32
    %c0_i32_1 = arith.constant 0 : i32
    return %c0_i32, %c0_i32_0 : i32, i32
  }
  func.func @transform_2(%arg0: i32) -> (i32, i32, i32) {
    %c0_i32 = arith.constant 0 : i32
    %c0_i32_0 = arith.constant 0 : i32
    %c0_i32_1 = arith.constant 0 : i32
    return %arg0, %c0_i32, %c0_i32_0 : i32, i32, i32
  }
  func.func @transform_3(%arg0: i32) -> (i32, i32, i32) {
    %c0_i32 = arith.constant 0 : i32
    %c0_i32_0 = arith.constant 0 : i32
    %c0_i32_1 = arith.constant 0 : i32
    return %arg0, %c0_i32, %c0_i32_0 : i32, i32, i32
  }
  func.func @transform_4(%arg0: i32) -> (i32, i32, i32) {
    %c0_i32 = arith.constant 0 : i32
    %c0_i32_0 = arith.constant 0 : i32
    %c0_i32_1 = arith.constant 0 : i32
    return %arg0, %c0_i32, %c0_i32_0 : i32, i32, i32
  }
  func.func @transform_5(%arg0: i32) -> (i32, i32, i32) {
    %c0_i32 = arith.constant 0 : i32
    %c0_i32_0 = arith.constant 0 : i32
    %c0_i32_1 = arith.constant 0 : i32
    return %arg0, %c0_i32, %c0_i32_0 : i32, i32, i32
  }
  func.func @transform_6(%arg0: i32) -> (i32, i32, i32) {
    %c0_i32 = arith.constant 0 : i32
    %c0_i32_0 = arith.constant 0 : i32
    %c0_i32_1 = arith.constant 0 : i32
    return %arg0, %c0_i32, %c0_i32_0 : i32, i32, i32
  }
  func.func @transform_7(%arg0: i32) -> (i32, i32, i32) {
    %c0_i32 = arith.constant 0 : i32
    %c0_i32_0 = arith.constant 0 : i32
    %c0_i32_1 = arith.constant 0 : i32
    return %arg0, %c0_i32, %c0_i32_0 : i32, i32, i32
  }
  func.func @transform_8(%arg0: i32) -> (i32, i32, i32) {
    %c0_i32 = arith.constant 0 : i32
    %c0_i32_0 = arith.constant 0 : i32
    %c0_i32_1 = arith.constant 0 : i32
    return %arg0, %c0_i32, %c0_i32_0 : i32, i32, i32
  }
  func.func @transform_9(%arg0: i32) -> (i32, i32, i32) {
    %c0_i32 = arith.constant 0 : i32
    %c0_i32_0 = arith.constant 0 : i32
    %c0_i32_1 = arith.constant 0 : i32
    return %arg0, %c0_i32, %c0_i32_0 : i32, i32, i32
  }
  func.func @transform_10(%arg0: i32) -> (i32, i32, i32) {
    %c0_i32 = arith.constant 0 : i32
    %c0_i32_0 = arith.constant 0 : i32
    %c0_i32_1 = arith.constant 0 : i32
    return %arg0, %c0_i32, %c0_i32_0 : i32, i32, i32
  }
  func.func @transform_11(%arg0: i32) -> (i32, i32, i32) {
    %c0_i32 = arith.constant 0 : i32
    %c0_i32_0 = arith.constant 0 : i32
    %c0_i32_1 = arith.constant 0 : i32
    return %arg0, %c0_i32, %c0_i32_0 : i32, i32, i32
  }
  func.func @transform_12(%arg0: i32) -> (i32, i32, i32) {
    %c0_i32 = arith.constant 0 : i32
    %c0_i32_0 = arith.constant 0 : i32
    %c0_i32_1 = arith.constant 0 : i32
    return %arg0, %c0_i32, %c0_i32_0 : i32, i32, i32
  }
  func.func @transform_13(%arg0: i32) -> (i32, i32, i32) {
    %c0_i32 = arith.constant 0 : i32
    %c0_i32_0 = arith.constant 0 : i32
    %c0_i32_1 = arith.constant 0 : i32
    return %arg0, %c0_i32, %c0_i32_0 : i32, i32, i32
  }
  func.func @transform_14(%arg0: i32) -> (i32, i32, i32) {
    %c0_i32 = arith.constant 0 : i32
    %c0_i32_0 = arith.constant 0 : i32
    %c0_i32_1 = arith.constant 0 : i32
    return %arg0, %c0_i32, %c0_i32_0 : i32, i32, i32
  }
  func.func @transform_15(%arg0: i32) -> (i32, i32, i32) {
    %c0_i32 = arith.constant 0 : i32
    %c0_i32_0 = arith.constant 0 : i32
    %c0_i32_1 = arith.constant 0 : i32
    return %arg0, %c0_i32, %c0_i32_0 : i32, i32, i32
  }
  func.func @transform_16(%arg0: i32) -> (i32, i32, i32) {
    %c0_i32 = arith.constant 0 : i32
    %c0_i32_0 = arith.constant 0 : i32
    %c0_i32_1 = arith.constant 0 : i32
    return %arg0, %c0_i32, %c0_i32_0 : i32, i32, i32
  }
  func.func @transform_17(%arg0: i32) -> (i32, i32) {
    %c0_i32 = arith.constant 0 : i32
    %c0_i32_0 = arith.constant 0 : i32
    %c0_i32_1 = arith.constant 0 : i32
    return %c0_i32, %c0_i32_0 : i32, i32
  }
  func.func @transform_18(%arg0: i32) -> (i32, i32) {
    %c0_i32 = arith.constant 0 : i32
    %c0_i32_0 = arith.constant 0 : i32
    %c0_i32_1 = arith.constant 0 : i32
    return %c0_i32, %c0_i32_0 : i32, i32
  }
  func.func @transform_19(%arg0: i32) -> (i32, i32) {
    %c0_i32 = arith.constant 0 : i32
    %c0_i32_0 = arith.constant 0 : i32
    %c0_i32_1 = arith.constant 0 : i32
    return %c0_i32, %c0_i32_0 : i32, i32
  }
  func.func @transform_20(%arg0: i32) -> (i32, i32) {
    %c0_i32 = arith.constant 0 : i32
    %c0_i32_0 = arith.constant 0 : i32
    %c0_i32_1 = arith.constant 0 : i32
    return %c0_i32, %c0_i32_0 : i32, i32
  }
  func.func @transform_21(%arg0: i32) -> (i32, i32) {
    %c0_i32 = arith.constant 0 : i32
    %c0_i32_0 = arith.constant 0 : i32
    %c0_i32_1 = arith.constant 0 : i32
    return %c0_i32, %c0_i32_0 : i32, i32
  }
}

</mosaic_0001>

<bundles_post_ra>
// kernel: vit_forward.1
= control target key start
LH: loop header
LB: loop body
LE: loop exit
PB: predicated region body
PF: predicated region fallthrough
CT: control target
= control target key end

     0   :  { %s4857_s0 = inlined_call_operand.vmem [shape: f32[32,128], index: 0, kind: input, shape index: {}]   ;;  %s4858_s1 = inlined_call_operand.vmem [shape: f32[128,128], index: 1, kind: input, shape index: {}]   ;;  %s4859_s2 = inlined_call_operand.vmem [shape: f32[2,1,128], index: 2, kind: input, shape index: {}]   ;;  %s4860_s3 = inlined_call_operand.vmem [shape: f32[2,1,128], index: 3, kind: input, shape index: {}]   ;;  %s4861_s4 = inlined_call_operand.hbm [shape: s8[2,128,1536], index: 4, kind: input, shape index: {}]   ;;  %s4862_s5 = inlined_call_operand.vmem [shape: f32[2,1,1536], index: 5, kind: input, shape index: {}]   ;;  %s4863_s6 = inlined_call_operand.vmem [shape: s8[2,512,128], index: 6, kind: input, shape index: {}]   ;;  %s4864_s7 = inlined_call_operand.vmem [shape: f32[2,1,128], index: 7, kind: input, shape index: {}]   ;;  %s4865_s8 = inlined_call_operand.vmem [shape: f32[2,1,128], index: 8, kind: input, shape index: {}]   ;;  %s4866_s9 = inlined_call_operand.vmem [shape: f32[2,1,128], index: 9, kind: input, shape index: {}]   ;;  %s4867_s10 = inlined_call_operand.vmem [shape: f32[2,1,128], index: 10, kind: input, shape index: {}]   ;;  %s4868_s11 = inlined_call_operand.hbm [shape: s8[2,128,128], index: 11, kind: input, shape index: {}]   ;;  %s4869_s12 = inlined_call_operand.vmem [shape: f32[2,1,128], index: 12, kind: input, shape index: {}]   ;;  %s4870_s13 = inlined_call_operand.vmem [shape: f32[2,1,128], index: 13, kind: input, shape index: {}]   ;;  %s4871_s14 = inlined_call_operand.hbm [shape: s8[2,128,128], index: 14, kind: input, shape index: {}]   ;;  %s4872_s15 = inlined_call_operand.vmem [shape: f32[2,1,128], index: 15, kind: input, shape index: {}]   ;;  %s4873_s16 = inlined_call_operand.vmem [shape: f32[2,1,128], index: 16, kind: input, shape index: {}]   ;;  %s4874_s17 = inlined_call_operand.vmem [shape: f32[1,128], index: 17, kind: input, shape index: {}]   ;;  %s4875_s18 = inlined_call_operand.vmem [shape: f32[1,128], index: 18, kind: input, shape index: {}]   ;;  %s4876_s19 = inlined_call_operand.hbm [shape: f32[128,128], index: 19, kind: input, shape index: {}]   ;;  %s4877_s20 = inlined_call_operand.vmem [shape: f32[1,128], index: 20, kind: input, shape index: {}]   ;;  %s4878_s21 = inlined_call_operand.hbm [shape: f32[2,128], index: 21, kind: output, shape index: {}]  }
   0x1   :  { %4892 = sst [smem:[#allocation25_spill]] %s4857_s0 }
   0x2   :  { %4893 = sst [smem:[#allocation26_spill]] %s4858_s1 }
   0x3   :  { %4894 = sst [smem:[#allocation27_spill]] %s4859_s2 }
   0x4   :  { %4895 = sst [smem:[#allocation28_spill]] %s4860_s3 }
   0x5   :  { %4896 = sst [smem:[#allocation29_spill]] %s4861_s4 }
   0x6   :  { %4897 = sst [smem:[#allocation30_spill]] %s4862_s5 }
   0x7   :  { %4898 = sst [smem:[#allocation31_spill]] %s4863_s6 }
   0x8   :  { %4899 = sst [smem:[#allocation32_spill]] %s4867_s10 }
   0x9   :  { %4900 = sst [smem:[#allocation33_spill]] %s4868_s11 }
   0xa   :  { %4901 = sst [smem:[#allocation34_spill]] %s4869_s12 }
   0xb   :  { %4902 = sst [smem:[#allocation35_spill]] %s4870_s13 }
   0xc   :  { %4903 = sst [smem:[#allocation36_spill]] %s4871_s14 }
   0xd   :  { %4904 = sst [smem:[#allocation37_spill]] %s4872_s15 }
   0xe   :  { %4905 = sst [smem:[#allocation38_spill]] %s4873_s16 }
   0xf   :  { %4906 = sst [smem:[#allocation39_spill]] %s4874_s17 }
  0x10   :  { %4907 = sst [smem:[#allocation40_spill]] %s4875_s18 }
  0x11   :  { %4908 = sst [smem:[#allocation41_spill]] %s4876_s19 }
  0x12   :  { %4909 = sst [smem:[#allocation42_spill]] %s4877_s20 }
  0x13   :  { %4910 = sst [smem:[#allocation43_spill]] %s4878_s21 }
  0x14   :  { %26 = vsyncpa [#allocation7], 0 }
  0x15   :  { %28 = vsyncpa [#allocation7 + $0x1], 0 }
  0x16   :  { %29 = vsyncpa [#allocation10], 0 }
  0x17   :  { %31 = vsyncpa [#allocation10 + $0x1], 0 }
  0x18   :  { %32 = vsyncpa [#allocation13], 0 }
  0x19   :  { %33 = vsyncpa [#allocation8], 0  ;;  %s3911_s2 = smov 0   ;;  %s3913_s25 = smov 0  }
  0x1a   :  { %s3915_s26 = smov 0   ;;  %s3917_s27 = smov 0  }
  0x1b LB: > { %4911 = sst [smem:[#allocation21_spill]] %s3782_s25  ;;  %s3932_s3 = sadd.s32 1, %s3790_s27   ;;  %s3790_s27 = sphi %s3917_s27, %s4960_s27   ;;  %s3786_s26 = sphi %s3915_s26, %s4963_s26   ;;  %s3782_s25 = sphi %s3913_s25, %s4962_s25   ;;  %s3778_s2 = sphi %s3911_s2, %s4961_s2  }
  0x1c   : > { %4912 = sst [smem:[#allocation22_spill]] %s3786_s26  ;;  %s119_s28 = sadd.s32 1, %s3786_s26 }
  0x1d   : > { %4913 = sst [smem:[#allocation23_spill]] %s3932_s3  ;;  %s116_s29 = ssub.s32 %s3790_s27, %s3932_s3 }
  0x1e   : > { %p126_p0 = scmp.ne.s32.totalorder %s3786_s26, %s3782_s25  ;;  %p117_p1 = scmp.eq.s32.totalorder %s116_s29, 0 }
  0x1f   : > { %p127_p2 = scmp.eq.s32.totalorder %s3790_s27, 0  ;;  %p3432_p4 = scmp.lt.s32.totalorder %s3790_s27, 2 }
  0x20   : > { %s3941_s0 = scalar_select %p117_p1, %s3786_s26, %s119_s28  }
  0x21   : > { %p128_p3 = por %p127_p2, %p126_p0  ;;  %s3945_s4 = sand.u32 1, %s3786_s26  }
  0x22   : > { %4914 = sst [smem:[#allocation24_spill]] %s3941_s0  ;;  %s672_s30 = sand.u32 1, %s3790_s27  }
  0x23   : > { %s4885_s5 = sshll.u32 %s3945_s4, 5  ;;  %p3949_p5 = pnand %p3432_p4, %p128_p3 }
  0x24   : > { %s3396_s23 = sshll.u32 %s3790_s27, 5  ;;  %s4916_s11 = sld [smem:[#allocation33_spill]] }
  0x25   : > { %s676_s0 = scalar_lea.vmem [#allocation9], %s4885_s5  ;;  %s3959_s3 = scalar_lea.sflag [#allocation10], %s672_s30 }
  0x26   : > { %s684_s26 = sshll.u32 %s676_s0, 4  ;;  %p3598_p7 = pneg %p3949_p5  ;;  %s685_s26 = int_to_ptr.vmem [resolvable:$true] %s684_s26 }
  0x2a   : > { %s681_s28 = scalar_lea.hbm %s4916_s11, %s3396_s23 }
  0x2b   : > { %s682_s29 = sshll.u32 %s681_s28, 4  ;;  %s3601_s28 = scalar_lea.hbm %s4916_s11, 64  ;;  %s683_s29 = int_to_ptr.hbm [resolvable:$true] %s682_s29 }
  0x2c   : > { %s3594_s21 = sshra.s32 %s683_s29, 4  ;;  %s3595_s21 = int_to_ptr.hbm [resolvable:$true] %s3594_s21 }
  0x2d   : > { %s3596_s20 = scalar_lea.hbm %s3595_s21, 32  ;;  %p3602_p10 = scmp.lt.s32.totalorder %s3595_s21, %s4916_s11 }
  0x2e   : > { %p3597_p6 = scmp.ne.s32.totalorder %s3595_s21, %s3596_s20  ;;  %p3603_p11 = scmp.lt.s32.totalorder %s3601_s28, %s3596_s20 }
  0x30   : > { %p3599_p8 = pnand %p3598_p7, %p3597_p6  ;;  %p3604_p12 = por %p3603_p11, %p3602_p10 }
  0x32   : > { %p3600_p9 = pneg %p3599_p8 }
  0x34   : > { %p3605_p13 = pnand %p3604_p12, %p3600_p9 }
  0x36   : > { %3608 = shalt.err (!%p3605_p13)
}
  0x37   : > { %s4886_s30 = smov 128   ;;  %s4888_s18 = smov 8  }
  0x38   : > { %3427 = dma.hbm_to_vmem [thread:$0]  (!%p3949_p5), %s683_s29, 512, %s685_s26, %s3959_s3, %s4886_s30, %s4886_s30, %s4888_s18  }
  0x39   : > { %s4917_s14 = sld [smem:[#allocation36_spill]]  ;;  %s4918_s24 = sshll.u32 %s3945_s4, 5 }
  0x3a   : > { %s710_s28 = scalar_lea.vmem [#allocation11], %s4918_s24  ;;  %s3988_s11 = sadd.s32 4294967295, %s3790_s27  }
  0x3b   : > { %s718_s0 = sshll.u32 %s710_s28, 4  ;;  %p133_p0 = scmp.eq.s32.totalorder %s3988_s11, 0  ;;  %s3985_s0 = int_to_ptr.vmem [resolvable:$true] %s718_s0 }
  0x3c   : > { %p132_p1 = scmp.ne.s32.totalorder %s3782_s25, %s3778_s2  ;;  %p3370_p2 = scmp.ge.s32.totalorder %s3790_s27, 1 }
  0x3d   : > { %p560_p3 = scmp.lt.s32.totalorder %s3790_s27, 3  ;;  %p3371_p4 = scmp.ne.s32.totalorder %s3988_s11, 0 }
  0x3e   : > { %p3998_p6 = por %p133_p0, %p132_p1  ;;  %s4920_s19 = sld [smem:[#allocation41_spill]] }
  0x3f   : > { %s715_s5 = scalar_lea.hbm %s4917_s14, %s3396_s23  ;;  %p4005_p8 = pnand %p3370_p2, %p560_p3 }
  0x40   : > { %s716_s1 = sshll.u32 %s715_s5, 4  ;;  %s3794_s2 = smov [#allocation12]   ;;  %s3983_s1 = int_to_ptr.hbm [resolvable:$true] %s716_s1 }
  0x41   : > { %p3417_p9 = pneg %p4005_p8  ;;  %s582_s5 = sshll.u32 %s3794_s2, 4  ;;  %s583_s5 = int_to_ptr.vmem [resolvable:$true] %s582_s5 }
  0x42   : > { %s3399_s24 = smul.u32 384, %s3945_s4  ;;  %s4922_s29 = sld [smem:[#allocation29_spill]] }
  0x43   : > { %p3418_p10 = pnand %p3417_p9, %p133_p0  ;;  %s3400_s28 = smul.u32 384, %s3790_s27 }
  0x44   : > { %s580_s21 = sshll.u32 %s4920_s19, 4  ;;  %s4923_s19 = smov 8   ;;  %s581_s21 = int_to_ptr.hbm [resolvable:$true] %s580_s21 }
  0x45   : > { %s4924_s17 = smov 128   ;;  %s615_s15 = scalar_lea.vmem [#allocation6], %s3399_s24 }
  0x46   : > { %3420 = dma.hbm_to_vmem [thread:$0]  (!%p3418_p10), %s581_s21, 2048, %s583_s5, [#allocation13], %s4924_s17, %s4924_s17, %s4923_s19  }
  0x47   : > { %s623_s13 = sshll.u32 %s615_s15, 4  ;;  %s612_s2 = scalar_lea.sflag [#allocation7], %s3945_s4  ;;  %s624_s13 = int_to_ptr.vmem [resolvable:$true] %s623_s13 }
  0x48   : > { %s620_s18 = scalar_lea.hbm %s4922_s29, %s3400_s28  ;;  %s3661_s28 = scalar_lea.hbm %s4922_s29, 768 }
  0x49   : > { %s621_s16 = sshll.u32 %s620_s18, 4  ;;  %s622_s16 = int_to_ptr.hbm [resolvable:$true] %s621_s16 }
  0x4a   : > { %s3654_s12 = sshra.s32 %s622_s16, 4  ;;  %s3655_s12 = int_to_ptr.hbm [resolvable:$true] %s3654_s12 }
  0x4b   : > { %s3656_s10 = scalar_lea.hbm %s3655_s12, 384  ;;  %p3662_p1 = scmp.lt.s32.totalorder %s3655_s12, %s4922_s29 }
  0x4c   : > { %p3657_p11 = scmp.ne.s32.totalorder %s3655_s12, %s3656_s10  ;;  %p3663_p2 = scmp.lt.s32.totalorder %s3661_s28, %s3656_s10 }
  0x4e   : > { %p3659_p12 = pnand %p3657_p11, %p3598_p7  ;;  %p3664_p3 = por %p3663_p2, %p3662_p1 }
  0x50   : > { %p3660_p13 = pneg %p3659_p12 }
  0x52   : > { %p3665_p9 = pnand %p3664_p3, %p3660_p13 }
  0x54   : > { %3668 = shalt.err (!%p3665_p9)
}
  0x55   : > { %s3795_s15 = smov 1536   ;;  %s3796_s18 = smov 96  }
  0x56   : > { %3424 = dma.hbm_to_vmem [thread:$0]  (!%p3949_p5), %s622_s16, 6144, %s624_s13, %s612_s2, %s3795_s15, %s3795_s15, %s3796_s18  }
  0x57   : > { %s3684_s4 = sshra.s32 %s3983_s1, 4  ;;  %s3691_s24 = scalar_lea.hbm %s4917_s14, 64  ;;  %s3685_s4 = int_to_ptr.hbm [resolvable:$true] %s3684_s4 }
  0x58   : > { %s3686_s5 = scalar_lea.hbm %s3685_s4, 32  ;;  %p3692_p13 = scmp.lt.s32.totalorder %s3685_s4, %s4917_s14 }
  0x59   : > { %p3687_p10 = scmp.ne.s32.totalorder %s3685_s4, %s3686_s5  ;;  %p3693_p1 = scmp.lt.s32.totalorder %s3691_s24, %s3686_s5 }
  0x5b   : > { %p3689_p11 = pnand %p3687_p10, %p3598_p7  ;;  %p3694_p2 = por %p3693_p1, %p3692_p13 }
  0x5d   : > { %p3690_p12 = pneg %p3689_p11 }
  0x5f   : > { %p3695_p3 = pnand %p3694_p2, %p3690_p12 }
  0x61   : > { %3698 = shalt.err (!%p3695_p3)
}
  0x62   : > { %3430 = dma.hbm_to_vmem [thread:$0]  (!%p3949_p5), %s3983_s1, 512, %s3985_s0, %s3959_s3, %s4924_s17, %s4924_s17, %s4923_s19  }
  0x63   : > { %742 = sbr.rel (%p4005_p8) target bundleno = 2723 (0xaa3), region = 100  ;;  %s744_s13 = sand.u32 (!%p4005_p8), 1, %s3782_s25  }
  0x64   : > { %s3401_s16 = smul.u32 (!%p4005_p8), 384, %s744_s13  ;;  %s745_s2 = scalar_lea.sflag (!%p4005_p8), [#allocation7], %s744_s13 }
  0x66   : > { %s4054_s28 = scalar_lea.vmem (!%p4005_p8), [#allocation6], %s3401_s16 }
  0x68   : > { %3759 = dma.done.wait (%p3998_p6), %s745_s2, 6144  }
  0x69   : > { %3761 = vsyncadd (%p3998_p6), %s745_s2, 4294961152  ;;  %s754_s22 = sand.u32 1, %s3988_s11   ;;  %s3381_s23 = sshll.u32 %s744_s13, 5 }
  0x6a   : > { %s755_s17 = scalar_lea.sflag [#allocation10], %s754_s22  ;;  %s4061_s19 = scalar_lea.vmem [#allocation9], %s3381_s23 }
  0x6b   : > { %3763 = dma.done.wait (%p3998_p6), %s755_s17, 1024  }
  0x6c   : > { %3765 = vsyncadd (%p3998_p6), %s755_s17, 4294966272  ;;  %s4067_s3 = scalar_lea.vmem [#allocation11], %s3381_s23 }
  0x6d   : > { %3767 = dma.done.wait (%p133_p0), [#allocation13], 2048  }
  0x6e   : > { %3769 = vsyncadd (%p133_p0), [#allocation13], 4294965248  ;;  %p875_p5 = scmp.lt.s32.totalorder %s3988_s11, 1  ;;  %s4927_s6 = sld [smem:[#allocation31_spill]] }
  0x6f   : > { %s4928_s17 = sld [smem:[#allocation30_spill]] }
  0x70   : > { %s4075_s1 = scalar_select %p875_p5, %s3988_s11, 1 }
  0x71   : > { %s4929_s27 = sld [smem:[#allocation32_spill]] }
  0x72   : > { %s3402_s12 = smul.u32 12, %s4075_s1  ;;  %s3398_s10 = sshll.u32 %s4075_s1, 7 }
  0x73   : > { %s4930_s16 = sld [smem:[#allocation34_spill]] }
  0x74   : > { %s4090_s30 = scalar_lea.vmem %s4927_s6, %s3398_s10  ;;  %s4932_s20 = sld [smem:[#allocation37_spill]] }
  0x75   : > { %s4099_s0 = scalar_lea.vmem %s4928_s17, %s3402_s12  ;;  %s4931_s12 = sld [smem:[#allocation35_spill]] }
  0x76   : > { %s4933_s18 = sld [smem:[#allocation38_spill]] }
  0x77   : > { %s901_s26 = scalar_lea.vmem %s4929_s27, %s4075_s1  ;;  %s4934_s27 = sld [smem:[#allocation25_spill]] (!%p3371_p4) }
  0x78   : > { %917 = sbr.rel (%p3371_p4) target bundleno = 133 (0x85), region = 120 }
  0x79   : > { %s904_s2 = scalar_lea.vmem %s4930_s16, %s4075_s1 }
  0x7a   : > { %s910_s21 = scalar_lea.vmem %s4932_s20, %s4075_s1 }
  0x7b   : > { %s907_s23 = scalar_lea.vmem %s4931_s12, %s4075_s1 }
  0x7c   : > { %s913_s4 = scalar_lea.vmem %s4933_s18, %s4075_s1 }
  0x7d   : > { %s4935_s5 = smov %s4934_s27  ;;  %v928_v0 = vld [vmem:[%s4934_s27] sm:$0xff] }
  0x7e   : > { %v930_v1 = vld [vmem:[%s4935_s5 + $0x8] sm:$0xff]  ;;  %v932_v2 = vld [vmem:[%s4935_s5 + $0x10] sm:$0xff]  ;;  %929 = vst [vmem:[#allocation2 + $0x10] sm:$0xff] %v928_v0  ;;  %v934_v3 = vld [vmem:[%s4935_s5 + $0x18] sm:$0xff] }
  0x7f   : > { %931 = vst [vmem:[#allocation2] sm:$0xff] %v930_v1 }
  0x80   : > { %933 = vst [vmem:[#allocation2 + $0x18] sm:$0xff] %v932_v2 }
  0x81   : > { %935 = vst [vmem:[#allocation2 + $0x8] sm:$0xff] %v934_v3 }
  0x82   : > { %941 = vsyncadd [#allocation5], 512 }
  0x83   : > { %3770 = dma.done.wait [#allocation5], 512 }
  0x84   : > { %3771 = vsyncadd [#allocation5], 4294966784 }
  0x85 PF: > { %v945_v5 = vld [vmem:[#allocation2 + $0x10] sm:$0xff]  ;;  %v3797_v8 = vmov 128.0   ;;  %v1088_v31 = vld [vmem:[%s4054_s28 + $0x120] sm:$0xff]  ;;  %v1089_v32 = vld [vmem:[%s4054_s28 + $0x128] sm:$0xff]  ;;  %s4938_s12 = sld [smem:[#allocation27_spill]]  ;;  %s4947_s16 = scalar_lea.vmem %s4865_s8, %s4075_s1 }
  0x86   : > { %951 = vadd.xlane.f32.xlu0 %v945_v5  ;;  %v946_v7 = vld [vmem:[#allocation2] sm:$0xff]  ;;  %3487 = vrcp.f32 %v3797_v8  ;;  %v1091_v33 = vld [vmem:[%s4054_s28 + $0x138] sm:$0xff]  ;;  %v1272_v34 = vunpack.c.2.s8 %v1088_v31  ;;  %v1284_v35 = vunpack.c.3.s8 %v1088_v31  ;;  %v1273_v36 = vunpack.c.2.s8 %v1089_v32  ;;  %s4940_s24 = sld [smem:[#allocation28_spill]]  ;;  %s4948_s22 = scalar_lea.vmem %s4866_s9, %s4075_s1 }
  0x87   : > { %v947_v4 = vld [vmem:[#allocation2 + $0x18] sm:$0xff]  ;;  %v1285_v37 = vunpack.c.3.s8 %v1089_v32  ;;  %v1092_v38 = vld [vmem:[%s4054_s28 + $0x140] sm:$0xff]  ;;  %v1275_v39 = vunpack.c.2.s8 %v1091_v33  ;;  %v1287_v40 = vunpack.c.3.s8 %v1091_v33  ;;  %v1248_v53 = vunpack.c.0.s8 %v1088_v31  ;;  %s4944_s27 = sld [smem:[#allocation26_spill]]  ;;  %p3387_p7 = scmp.ne.s32.totalorder %s3988_s11, 1 }
  0x88   : > { %955 = vadd.xlane.f32.xlu1 %v947_v4  ;;  %v948_v6 = vld [vmem:[#allocation2 + $0x8] sm:$0xff]  ;;  %v1276_v41 = vunpack.c.2.s8 %v1092_v38  ;;  %v1288_v42 = vunpack.c.3.s8 %v1092_v38  ;;  %v1464_v43 = vcvt.s32.f32 %v1272_v34  ;;  %v1476_v44 = vcvt.s32.f32 %v1284_v35  ;;  %v1076_v3 = vld [vmem:[%s4054_s28 + $0xc0] sm:$0xff]  ;;  %s4957_s14 = sld [smem:[#allocation40_spill]] (!%p3387_p7) }
  0x89   : > { %v1465_v45 = vcvt.s32.f32 %v1273_v36  ;;  %v1477_v46 = vcvt.s32.f32 %v1285_v37  ;;  %v1467_v47 = vcvt.s32.f32 %v1275_v39  ;;  %v1479_v48 = vcvt.s32.f32 %v1287_v40  ;;  %s4958_s29 = sld [smem:[#allocation42_spill]] (!%p3387_p7) }
  0x8a   : > { %v1468_v49 = vcvt.s32.f32 %v1276_v41  ;;  %v1480_v50 = vcvt.s32.f32 %v1288_v42  ;;  %v1572_v51 = vpack.c.bf16 %v1476_v44, %v1464_v43  ;;  %v1260_v54 = vunpack.c.1.s8 %v1088_v31  ;;  %v1064_v44 = vld [vmem:[%s4054_s28 + $0x60] sm:$0xff] }
  0x8b   : > { %v1573_v52 = vpack.c.bf16 %v1477_v46, %v1465_v45  ;;  %v1575_v55 = vpack.c.bf16 %v1479_v48, %v1467_v47  ;;  %v1249_v57 = vunpack.c.0.s8 %v1089_v32  ;;  %v1261_v58 = vunpack.c.1.s8 %v1089_v32  ;;  %s4939_s17 = scalar_lea.vmem %s4938_s12, %s4075_s1 }
  0x8c   : > { %v3488_v9 = vpop.eup %3487  ;;  %v1576_v56 = vpack.c.bf16 %v1480_v50, %v1468_v49  ;;  %1584 = vmatpush.bf16.msra.mxu2 %v1572_v51  ;;  %v1440_v59 = vcvt.s32.f32 %v1248_v53  ;;  %v1452_v60 = vcvt.s32.f32 %v1260_v54  ;;  %v1251_v61 = vunpack.c.0.s8 %v1091_v33  ;;  %v1065_v53 = vld [vmem:[%s4054_s28 + $0x68] sm:$0xff]  ;;  %s4941_s10 = scalar_lea.vmem %s4940_s24, %s4075_s1 }
  0x8d   : > { %v960_v10 = vmul.f32 128.0, %v3488_v9  ;;  %vm964_vm0 = vweird.f32 %v3488_v9  ;;  %1603 = vmatpush.bf16.msra.mxu1 %v1573_v52  ;;  %v1263_v62 = vunpack.c.1.s8 %v1091_v33  ;;  %1641 = vmatpush.bf16.msra.mxu3 %v1575_v55  ;;  %v1441_v63 = vcvt.s32.f32 %v1249_v57  ;;  %s4945_s6 = smov %s4944_s27 }
  0x8e   : > { %953 = vadd.xlane.f32.xlu0 %v946_v7  ;;  %1660 = vmatpush.bf16.msra.mxu0 %v1576_v56  ;;  %v1453_v0 = vcvt.s32.f32 %v1261_v58  ;;  %v1252_v1 = vunpack.c.0.s8 %v1092_v38  ;;  %v1264_v2 = vunpack.c.1.s8 %v1092_v38  ;;  %v1224_v8 = vunpack.c.2.s8 %v1076_v3  ;;  %v1067_v58 = vld [vmem:[%s4054_s28 + $0x78] sm:$0xff] }
  0x8f   : > { %v961_v11 = vsub.f32 1.0, %v960_v10  ;;  %v1200_v35 = vunpack.c.0.s8 %v1076_v3  ;;  %v1212_v39 = vunpack.c.1.s8 %v1076_v3  ;;  %v1176_v57 = vunpack.c.2.s8 %v1064_v44 }
  0x90   : > { %957 = vadd.xlane.f32.xlu1 %v948_v6  ;;  %v1561_v10 = vpack.c.bf16 %v1453_v0, %v1441_v63  ;;  %v1068_v63 = vld [vmem:[%s4054_s28 + $0x80] sm:$0xff] }
  0x91   : > { %v962_v12 = vmul.f32 %v3488_v9, %v961_v11  ;;  %v1444_v11 = vcvt.s32.f32 %v1252_v1  ;;  %v1392_v41 = vcvt.s32.f32 %v1200_v35  ;;  %v1404_v46 = vcvt.s32.f32 %v1212_v39 }
  0x92   : > { %1604 = vmatpush.bf16.msra.mxu1 %v1561_v10  ;;  %v1368_v1 = vcvt.s32.f32 %v1176_v57  ;;  %v1180_v10 = vunpack.c.2.s8 %v1068_v63 }
  0x93   : > { %v963_v13 = vadd.f32 %v3488_v9, %v962_v12  ;;  %v1456_v12 = vcvt.s32.f32 %v1264_v2  ;;  %v1536_v54 = vpack.c.bf16 %v1404_v46, %v1392_v41  ;;  %v1177_v2 = vunpack.c.2.s8 %v1065_v53 }
  0x95   : > { %v4143_v14 = vsel %vm964_vm0, %v3488_v9, %v963_v13  ;;  %v1079_v9 = vld [vmem:[%s4054_s28 + $0xd8] sm:$0xff]  ;;  %v1236_v13 = vunpack.c.3.s8 %v1076_v3  ;;  %v1189_v3 = vunpack.c.3.s8 %v1065_v53 }
  0x96   : > { %v1203_v47 = vunpack.c.0.s8 %v1079_v9  ;;  %v1215_v48 = vunpack.c.1.s8 %v1079_v9 }
  0x98   : > { %v1395_v55 = vcvt.s32.f32 %v1203_v47  ;;  %v1407_v56 = vcvt.s32.f32 %v1215_v48 }
  0x9a   : > { %v1539_v0 = vpack.c.bf16 %v1407_v56, %v1395_v55 }
  0xf9   : > { %v952_v16 = vpop.xlane.xlu0 %951 }
  0xfa   : > { %v966_v18 = vmul.f32 %v4143_v14, %v952_v16 }
  0xfb   : > { %v956_v15 = vpop.xlane.xlu1 %955 }
  0xfc   : > { %v968_v17 = vmul.f32 %v4143_v14, %v956_v15  ;;  %v4149_v20 = vsub.f32 %v945_v5, %v966_v18  ;;  %v1560_v5 = vpack.c.bf16 %v1452_v60, %v1440_v59  ;;  %v1080_v15 = vld [vmem:[%s4054_s28 + $0xe0] sm:$0xff] }
  0xfd   : > { %v1240_v31 = vunpack.c.3.s8 %v1080_v15  ;;  %v1204_v51 = vunpack.c.0.s8 %v1080_v15  ;;  %v1216_v52 = vunpack.c.1.s8 %v1080_v15 }
  0xfe   : > { %v4147_v19 = vsub.f32 %v947_v4, %v968_v17  ;;  %v974_v22 = vmul.f32 %v4149_v20, %v4149_v20  ;;  %v1077_v4 = vld [vmem:[%s4054_s28 + $0xc8] sm:$0xff]  ;;  %1585 = vmatpush.bf16.msra.mxu2 %v1560_v5  ;;  %v1416_v17 = vcvt.s32.f32 %v1224_v8  ;;  %v1369_v8 = vcvt.s32.f32 %v1177_v2 }
  0xff   : > { %v1225_v18 = vunpack.c.2.s8 %v1077_v4  ;;  %v1432_v38 = vcvt.s32.f32 %v1240_v31  ;;  %v1201_v42 = vunpack.c.0.s8 %v1077_v4  ;;  %v1213_v43 = vunpack.c.1.s8 %v1077_v4 }
 0x100   : > { %v976_v21 = vmul.f32 %v4147_v19, %v4147_v19  ;;  %978 = vadd.xlane.f32.xlu2 %v974_v22  ;;  %v1564_v22 = vpack.c.bf16 %v1456_v12, %v1444_v11  ;;  %v1396_v60 = vcvt.s32.f32 %v1204_v51  ;;  %v1192_v11 = vunpack.c.3.s8 %v1068_v63 }
 0x101   : > { %v954_v24 = vpop.xlane.xlu0 %953  ;;  %v1393_v49 = vcvt.s32.f32 %v1201_v42  ;;  %v1405_v50 = vcvt.s32.f32 %v1213_v43  ;;  %v1053_v42 = vld [vmem:[%s4054_s28 + $0x8] sm:$0xff] }
 0x102   : > { %982 = vadd.xlane.f32.xlu0 %v976_v21  ;;  %v967_v26 = vmul.f32 %v4143_v14, %v954_v24  ;;  %v1237_v21 = vunpack.c.3.s8 %v1077_v4  ;;  %v1227_v24 = vunpack.c.2.s8 %v1079_v9  ;;  %1661 = vmatpush.bf16.msra.mxu0 %v1564_v22  ;;  %v1164_v22 = vunpack.c.1.s8 %v1064_v44 }
 0x103   : > { %v958_v23 = vpop.xlane.xlu1 %957  ;;  %v1537_v59 = vpack.c.bf16 %v1405_v50, %v1393_v49  ;;  %v1055_v49 = vld [vmem:[%s4054_s28 + $0x18] sm:$0xff]  ;;  %v1129_v57 = vunpack.c.2.s8 %v1053_v42 }
 0x104   : > { %v969_v25 = vmul.f32 %v4143_v14, %v958_v23  ;;  %v4159_v28 = vsub.f32 %v946_v7, %v967_v26  ;;  %v1455_v7 = vcvt.s32.f32 %v1263_v62  ;;  %v1428_v23 = vcvt.s32.f32 %v1236_v13 }
 0x105   : > { %v1417_v26 = vcvt.s32.f32 %v1225_v18  ;;  %v1419_v33 = vcvt.s32.f32 %v1227_v24  ;;  %v1188_v62 = vunpack.c.3.s8 %v1064_v44  ;;  %v1372_v18 = vcvt.s32.f32 %v1180_v10 }
 0x106   : > { %v4157_v27 = vsub.f32 %v948_v6, %v969_v25  ;;  %v975_v30 = vmul.f32 %v4159_v28, %v4159_v28  ;;  %v1443_v6 = vcvt.s32.f32 %v1251_v61  ;;  %v1239_v25 = vunpack.c.3.s8 %v1079_v9 }
 0x107   : > { %v1548_v32 = vpack.c.bf16 %v1428_v23, %v1416_v17  ;;  %v1408_v61 = vcvt.s32.f32 %v1216_v52  ;;  %v1380_v5 = vcvt.s32.f32 %v1188_v62  ;;  %v1381_v9 = vcvt.s32.f32 %v1189_v3 }
 0x108   : > { %v977_v29 = vmul.f32 %v4157_v27, %v4157_v27  ;;  %980 = vadd.xlane.f32.xlu2 %v975_v30  ;;  %v1563_v16 = vpack.c.bf16 %v1455_v7, %v1443_v6  ;;  %v1228_v30 = vunpack.c.2.s8 %v1080_v15  ;;  %v1431_v34 = vcvt.s32.f32 %v1239_v25 }
 0x109   : > { %1586 = vmatpush.bf16.msra.mxu2 %v1548_v32  ;;  %v1540_v4 = vpack.c.bf16 %v1408_v61, %v1396_v60  ;;  %v1179_v6 = vunpack.c.2.s8 %v1067_v58  ;;  %v1191_v7 = vunpack.c.3.s8 %v1067_v58  ;;  %v1524_v12 = vpack.c.bf16 %v1380_v5, %v1368_v1 }
 0x10a   : > { %984 = vadd.xlane.f32.xlu1 %v977_v29  ;;  %1642 = vmatpush.bf16.msra.mxu3 %v1563_v16  ;;  %v1429_v29 = vcvt.s32.f32 %v1237_v21  ;;  %v1420_v37 = vcvt.s32.f32 %v1228_v30  ;;  %v1551_v40 = vpack.c.bf16 %v1431_v34, %v1419_v33  ;;  %v1152_v16 = vunpack.c.0.s8 %v1064_v44 }
 0x10b   : > { %v1371_v13 = vcvt.s32.f32 %v1179_v6  ;;  %v1383_v15 = vcvt.s32.f32 %v1191_v7  ;;  %v1525_v17 = vpack.c.bf16 %v1381_v9, %v1369_v8  ;;  %v1384_v21 = vcvt.s32.f32 %v1192_v11 }
 0x10c   : > { %v1549_v36 = vpack.c.bf16 %v1429_v29, %v1417_v26  ;;  %v1552_v45 = vpack.c.bf16 %v1432_v38, %v1420_v37  ;;  %v1344_v24 = vcvt.s32.f32 %v1152_v16  ;;  %v1153_v25 = vunpack.c.0.s8 %v1065_v53  ;;  %v4178_v29 = vld [vmem:[%s4054_s28] sm:$0xff] }
 0x10d   : > { %1587 = vmatpush.bf16.msra.mxu2 %v1536_v54  ;;  %v1527_v23 = vpack.c.bf16 %v1383_v15, %v1371_v13  ;;  %v1165_v26 = vunpack.c.1.s8 %v1065_v53  ;;  %v1528_v30 = vpack.c.bf16 %v1384_v21, %v1372_v18  ;;  %v1356_v31 = vcvt.s32.f32 %v1164_v22  ;;  %v4187_v54 = vld [vmem:[%s4054_s28 + $0x20] sm:$0xff] }
 0x10e   : > { %1605 = vmatpush.bf16.msra.mxu1 %v1549_v36  ;;  %1643 = vmatpush.bf16.msra.mxu3 %v1551_v40  ;;  %v1155_v32 = vunpack.c.0.s8 %v1067_v58  ;;  %v1167_v33 = vunpack.c.1.s8 %v1067_v58  ;;  %v1345_v34 = vcvt.s32.f32 %v1153_v25  ;;  %v1156_v36 = vunpack.c.0.s8 %v1068_v63 }
 0x10f   : > { %1662 = vmatpush.bf16.msra.mxu0 %v1552_v45  ;;  %v1357_v35 = vcvt.s32.f32 %v1165_v26  ;;  %v1168_v37 = vunpack.c.1.s8 %v1068_v63  ;;  %v1512_v38 = vpack.c.bf16 %v1356_v31, %v1344_v24  ;;  %v1128_v41 = vunpack.c.2.s8 %v4178_v29 }
 0x110   : > { %v1347_v39 = vcvt.s32.f32 %v1155_v32  ;;  %v1359_v40 = vcvt.s32.f32 %v1167_v33  ;;  %v1348_v46 = vcvt.s32.f32 %v1156_v36  ;;  %v1140_v48 = vunpack.c.3.s8 %v4178_v29 }
 0x111   : > { %1588 = vmatpush.bf16.msra.mxu2 %v1524_v12  ;;  %v1513_v45 = vpack.c.bf16 %v1357_v35, %v1345_v34  ;;  %v1360_v47 = vcvt.s32.f32 %v1168_v37  ;;  %v1320_v53 = vcvt.s32.f32 %v1128_v41  ;;  %v1141_v58 = vunpack.c.3.s8 %v1053_v42  ;;  %v4221_v41 = vld [vmem:[%s4054_s28 + $0x148] sm:$0xff] }
 0x112   : > { %1606 = vmatpush.bf16.msra.mxu1 %v1537_v59  ;;  %1644 = vmatpush.bf16.msra.mxu3 %v1539_v0  ;;  %v1515_v52 = vpack.c.bf16 %v1359_v40, %v1347_v39  ;;  %v1332_v56 = vcvt.s32.f32 %v1140_v48  ;;  %v1131_v61 = vunpack.c.2.s8 %v1055_v49  ;;  %v1143_v62 = vunpack.c.3.s8 %v1055_v49  ;;  %v4213_v39 = vld [vmem:[%s4054_s28 + $0x130] sm:$0xff] }
 0x113   : > { %1663 = vmatpush.bf16.msra.mxu0 %v1540_v4  ;;  %v1516_v55 = vpack.c.bf16 %v1360_v47, %v1348_v46  ;;  %v1321_v0 = vcvt.s32.f32 %v1129_v57  ;;  %v1333_v1 = vcvt.s32.f32 %v1141_v58  ;;  %v1132_v2 = vunpack.c.2.s8 %v4187_v54 }
 0x114   : > { %v1500_v63 = vpack.c.bf16 %v1332_v56, %v1320_v53  ;;  %v1323_v3 = vcvt.s32.f32 %v1131_v61  ;;  %v1335_v5 = vcvt.s32.f32 %v1143_v62  ;;  %v1144_v6 = vunpack.c.3.s8 %v4187_v54 }
 0x115   : > { %1589 = vmatpush.bf16.msra.mxu2 %v1512_v38  ;;  %v1501_v4 = vpack.c.bf16 %v1333_v1, %v1321_v0  ;;  %v1324_v7 = vcvt.s32.f32 %v1132_v2  ;;  %v1104_v8 = vunpack.c.0.s8 %v4178_v29  ;;  %v1116_v9 = vunpack.c.1.s8 %v4178_v29 }
 0x116   : > { %1607 = vmatpush.bf16.msra.mxu1 %v1525_v17  ;;  %1645 = vmatpush.bf16.msra.mxu3 %v1527_v23  ;;  %v1105_v10 = vunpack.c.0.s8 %v1053_v42  ;;  %v1503_v13 = vpack.c.bf16 %v1335_v5, %v1323_v3  ;;  %v1336_v15 = vcvt.s32.f32 %v1144_v6  ;;  %v1117_v16 = vunpack.c.1.s8 %v1053_v42  ;;  %v1083_v6 = vld [vmem:[%s4054_s28 + $0xf8] sm:$0xff] }
 0x117   : > { %1664 = vmatpush.bf16.msra.mxu0 %v1528_v30  ;;  %v1107_v17 = vunpack.c.0.s8 %v1055_v49  ;;  %v1296_v22 = vcvt.s32.f32 %v1104_v8  ;;  %v1308_v23 = vcvt.s32.f32 %v1116_v9  ;;  %v1119_v29 = vunpack.c.1.s8 %v1055_v49  ;;  %v4256_v9 = vld [vmem:[%s4054_s28 + $0x160] sm:$0xff] }
 0x118   : > { %v1504_v24 = vpack.c.bf16 %v1336_v15, %v1324_v7  ;;  %v1297_v25 = vcvt.s32.f32 %v1105_v10  ;;  %v1309_v26 = vcvt.s32.f32 %v1117_v16  ;;  %v1120_v46 = vunpack.c.1.s8 %v4187_v54  ;;  %v4263_v10 = vld [vmem:[%s4939_s17] ss:$0 sm:$0xff] }
 0x119   : > { %1590 = vmatpush.bf16.msra.mxu2 %v1500_v63  ;;  %v1488_v33 = vpack.c.bf16 %v1308_v23, %v1296_v22  ;;  %v1299_v34 = vcvt.s32.f32 %v1107_v17  ;;  %v1311_v38 = vcvt.s32.f32 %v1119_v29  ;;  %v1274_v47 = vunpack.c.2.s8 %v4213_v39 }
 0x11a   : > { %1608 = vmatpush.bf16.msra.mxu1 %v1513_v45  ;;  %1646 = vmatpush.bf16.msra.mxu3 %v1515_v52  ;;  %v1489_v37 = vpack.c.bf16 %v1309_v26, %v1297_v25  ;;  %v1108_v45 = vunpack.c.0.s8 %v4187_v54  ;;  %v1286_v49 = vunpack.c.3.s8 %v4213_v39  ;;  %v4235_v52 = vld [vmem:[%s4054_s28 + $0x158] sm:$0xff]  ;;  %v1312_v56 = vcvt.s32.f32 %v1120_v46 }
 0x11b   : > { %1665 = vmatpush.bf16.msra.mxu0 %v1516_v55  ;;  %v1466_v57 = vcvt.s32.f32 %v1274_v47  ;;  %v1279_v2 = vunpack.c.2.s8 %v4235_v52  ;;  %v1291_v3 = vunpack.c.3.s8 %v4235_v52  ;;  %v1280_v23 = vunpack.c.2.s8 %v4256_v9 }
 0x11c   : > { %v1300_v55 = vcvt.s32.f32 %v1108_v45  ;;  %v1478_v58 = vcvt.s32.f32 %v1286_v49  ;;  %v1292_v29 = vunpack.c.3.s8 %v4256_v9 }
 0x11d   : > { %1591 = vmatpush.bf16.msra.mxu2 %v1488_v33  ;;  %v1471_v16 = vcvt.s32.f32 %v1279_v2  ;;  %v1483_v17 = vcvt.s32.f32 %v1291_v3 }
 0x11e   : > { %1609 = vmatpush.bf16.msra.mxu1 %v1501_v4  ;;  %1647 = vmatpush.bf16.msra.mxu3 %v1503_v13  ;;  %v1492_v1 = vpack.c.bf16 %v1312_v56, %v1300_v55  ;;  %v1574_v8 = vpack.c.bf16 %v1478_v58, %v1466_v57  ;;  %v1267_v55 = vunpack.c.1.s8 %v4235_v52  ;;  %v1256_v56 = vunpack.c.0.s8 %v4256_v9 }
 0x11f   : > { %1666 = vmatpush.bf16.msra.mxu0 %v1504_v24  ;;  %v1579_v26 = vpack.c.bf16 %v1483_v17, %v1471_v16  ;;  %v1231_v17 = vunpack.c.2.s8 %v1083_v6 }
 0x121   : > { %1622 = vmatpush.bf16.msrb.mxu2 %v1574_v8 }
 0x122   : > { %1610 = vmatpush.bf16.msra.mxu1 %v1489_v37  ;;  %v1484_v37 = vcvt.s32.f32 %v1292_v29 }
 0x123   : > { %1667 = vmatpush.bf16.msra.mxu0 %v1492_v1  ;;  %v1448_v1 = vcvt.s32.f32 %v1256_v56 }
 0x173   : > { %v979_v43 = vpop.xlane.xlu2 %978 }
 0x174   : > { %v986_v50 = vmul.f32 %v979_v43, %v4143_v14  ;;  %v1491_v43 = vpack.c.bf16 %v1311_v38, %v1299_v34  ;;  %v1472_v34 = vcvt.s32.f32 %v1280_v23  ;;  %v1262_v38 = vunpack.c.1.s8 %v4213_v39 }
 0x175   : > { %v983_v44 = vpop.xlane.xlu0 %982 }
 0x176   : > { %v988_v51 = vmul.f32 %v983_v44, %v4143_v14  ;;  %v4189_v59 = vadd.f32 1e-05, %v986_v50  ;;  %1648 = vmatpush.bf16.msra.mxu3 %v1491_v43  ;;  %v1277_v50 = vunpack.c.2.s8 %v4221_v41  ;;  %v1454_v47 = vcvt.s32.f32 %v1262_v38 }
 0x178   : > { %v4191_v60 = vadd.f32 1e-05, %v988_v51  ;;  %3489 = vrsqrt.f32 %v4189_v59  ;;  %vm1000_vm1 = vweird.f32 %v4189_v59  ;;  %v1289_v51 = vunpack.c.3.s8 %v4221_v41 }
 0x179   : > { %v1469_v61 = vcvt.s32.f32 %v1277_v50  ;;  %v1255_v50 = vunpack.c.0.s8 %v4235_v52 }
 0x17a   : > { %3491 = vrsqrt.f32 %v4191_v60  ;;  %vm1020_vm3 = vweird.f32 %v4191_v60  ;;  %v1481_v62 = vcvt.s32.f32 %v1289_v51  ;;  %1717 = vmatpush.bf16.msrb.mxu3 %v1579_v26 }
 0x17b   : > { %v981_v12 = vpop.xlane.xlu2 %980 }
 0x17c   : > { %v987_v21 = vmul.f32 %v981_v12, %v4143_v14  ;;  %v1577_v12 = vpack.c.bf16 %v1481_v62, %v1469_v61  ;;  %v1447_v61 = vcvt.s32.f32 %v1255_v50  ;;  %v1081_v62 = vld [vmem:[%s4054_s28 + $0xe8] sm:$0xff]  ;;  %v1071_v50 = vld [vmem:[%s4054_s28 + $0x98] sm:$0xff] }
 0x17d   : > { %v985_v11 = vpop.xlane.xlu1 %984  ;;  %v1229_v8 = vunpack.c.2.s8 %v1081_v62 }
 0x17e   : > { %v989_v18 = vmul.f32 %v985_v11, %v4143_v14  ;;  %v4201_v30 = vpop.eup %3489  ;;  %v4205_v32 = vadd.f32 1e-05, %v987_v21  ;;  %1679 = vmatpush.bf16.msrb.mxu1 %v1577_v12  ;;  %v1241_v12 = vunpack.c.3.s8 %v1081_v62 }
 0x17f   : > { %v995_v36 = vmul.f32 %v4201_v30, %v4189_v59  ;;  %vm1001_vm2 = vweird.f32 %v4201_v30  ;;  %v4281_v59 = vld [vmem:[%s4941_s10] ss:$0 sm:$0xff]  ;;  %v1421_v16 = vcvt.s32.f32 %v1229_v8 }
 0x180   : > { %v4203_v31 = vadd.f32 1e-05, %v989_v18  ;;  %v4207_v35 = vpop.eup %3491  ;;  %vm1002_vm8 = vmor %vm1000_vm1, %vm1001_vm2  ;;  %vm1010_vm9 = vweird.f32 %v4205_v32 }
 0x181   : > { %v1015_v40 = vmul.f32 %v4207_v35, %v4191_v60  ;;  %v996_v42 = vmul.f32 %v4201_v30, %v995_v36  ;;  %vm1021_vm4 = vweird.f32 %v4207_v35 }
 0x182   : > { %3493 = vrsqrt.f32 %v4203_v31  ;;  %vm1030_vm5 = vweird.f32 %v4203_v31  ;;  %vm4248_vm6 = vmor %vm1020_vm3, %vm1021_vm4 }
 0x183   : > { %3495 = vrsqrt.f32 %v4205_v32  ;;  %v1016_v44 = vmul.f32 %v4207_v35, %v1015_v40  ;;  %v997_v48 = vmul.f32 0.5, %v996_v42 }
 0x185   : > { %v1017_v53 = vmul.f32 0.5, %v1016_v44  ;;  %v998_v54 = vsub.f32 1.5, %v997_v48  ;;  %v1253_v44 = vunpack.c.0.s8 %v4221_v41 }
 0x187   : > { %v1018_v0 = vsub.f32 1.5, %v1017_v53  ;;  %v999_v5 = vmul.f32 %v4201_v30, %v998_v54  ;;  %v1445_v49 = vcvt.s32.f32 %v1253_v44 }
 0x188   : > { %v4237_v63 = vpop.eup %3493 }
 0x189   : > { %v4241_v4 = vpop.eup %3495  ;;  %v1025_v7 = vmul.f32 %v4237_v63, %v4203_v31  ;;  %vm1031_vm7 = vweird.f32 %v4237_v63  ;;  %v1019_v60 = vmul.f32 %v4207_v35, %v1018_v0  ;;  %v1003_v13 = vsel %vm1002_vm8, %v4201_v30, %v999_v5 }
 0x18a   : > { %v1005_v11 = vmul.f32 %v4241_v4, %v4205_v32  ;;  %vm1011_vm10 = vweird.f32 %v4241_v4  ;;  %v1034_v18 = vmul.f32 %v1003_v13, %v4149_v20  ;;  %v1250_v20 = vunpack.c.0.s8 %v4213_v39  ;;  %vm4300_vm11 = vmor %vm1030_vm5, %vm1031_vm7 }
 0x18b   : > { %v1026_v15 = vmul.f32 %v4237_v63, %v1025_v7  ;;  %v1023_v21 = vsel %vm4248_vm6, %v4207_v35, %v1019_v60  ;;  %v1580_v39 = vpack.c.bf16 %v1484_v37, %v1472_v34  ;;  %v1265_v31 = vunpack.c.1.s8 %v4221_v41  ;;  %vm1012_vm12 = vmor %vm1010_vm9, %vm1011_vm10  ;;  %v1078_v41 = vld [vmem:[%s4054_s28 + $0xd0] sm:$0xff] }
 0x18c   : > { %v1006_v22 = vmul.f32 %v4241_v4, %v1005_v11  ;;  %v1036_v24 = vmul.f32 %v1023_v21, %v4147_v19  ;;  %v1041_v30 = vmul.f32 %v4263_v10, %v1034_v18  ;;  %v1442_v43 = vcvt.s32.f32 %v1250_v20 }
 0x18d   : > { %v1027_v25 = vmul.f32 0.5, %v1026_v15  ;;  %1736 = vmatpush.bf16.msrb.mxu0 %v1580_v39  ;;  %v1457_v58 = vcvt.s32.f32 %v1265_v31  ;;  %v1459_v32 = vcvt.s32.f32 %v1267_v55  ;;  %v1268_v0 = vunpack.c.1.s8 %v4256_v9  ;;  %v1084_v9 = vld [vmem:[%s4054_s28 + $0x100] sm:$0xff]  ;;  %v1069_v39 = vld [vmem:[%s4054_s28 + $0x88] sm:$0xff] }
 0x18e   : > { %v1007_v33 = vmul.f32 0.5, %v1006_v22  ;;  %v1043_v36 = vmul.f32 %v4263_v10, %v1036_v24  ;;  %v1048_v40 = vadd.f32 %v4281_v59, %v1041_v30  ;;  %v1562_v53 = vpack.c.bf16 %v1454_v47, %v1442_v43 }
 0x18f   : > { %v1028_v35 = vsub.f32 1.5, %v1027_v25  ;;  %v1565_v2 = vpack.c.bf16 %v1457_v58, %v1445_v49  ;;  %v1226_v3 = vunpack.c.2.s8 %v1078_v41  ;;  %v1238_v5 = vunpack.c.3.s8 %v1078_v41 }
 0x190   : > { %v1008_v42 = vsub.f32 1.5, %v1007_v33  ;;  %v1050_v45 = vadd.f32 %v4281_v59, %v1043_v36  ;;  %1623 = vmatpush.bf16.msrb.mxu2 %v1562_v53  ;;  %v1460_v7 = vcvt.s32.f32 %v1268_v0  ;;  %v1243_v22 = vunpack.c.3.s8 %v1083_v6 }
 0x191   : > { %v1029_v46 = vmul.f32 %v4237_v63, %v1028_v35  ;;  %1680 = vmatpush.bf16.msrb.mxu1 %v1565_v2  ;;  %v1430_v11 = vcvt.s32.f32 %v1238_v5  ;;  %v1423_v24 = vcvt.s32.f32 %v1231_v17  ;;  %v1232_v25 = vunpack.c.2.s8 %v1084_v9 }
 0x192   : > { %v1009_v48 = vmul.f32 %v4241_v4, %v1008_v42  ;;  %v1568_v15 = vpack.c.bf16 %v1460_v7, %v1448_v1  ;;  %v1244_v26 = vunpack.c.3.s8 %v1084_v9  ;;  %v1435_v30 = vcvt.s32.f32 %v1243_v22  ;;  %v1066_v42 = vld [vmem:[%s4054_s28 + $0x70] sm:$0xff] }
 0x193   : > { %v1033_v51 = vsel %vm4300_vm11, %v4237_v63, %v1029_v46  ;;  %v1214_v33 = vunpack.c.1.s8 %v1078_v41  ;;  %v1424_v34 = vcvt.s32.f32 %v1232_v25  ;;  %v1205_v36 = vunpack.c.0.s8 %v1081_v62 }
 0x194   : > { %v1037_v57 = vmul.f32 %v1033_v51, %v4157_v27  ;;  %v1013_v54 = vsel %vm1012_vm12, %v4241_v4, %v1009_v48  ;;  %v1567_v4 = vpack.c.bf16 %v1459_v32, %v1447_v61  ;;  %1737 = vmatpush.bf16.msrb.mxu0 %v1568_v15  ;;  %v1436_v20 = vcvt.s32.f32 %v1244_v26  ;;  %v1072_v61 = vld [vmem:[%s4054_s28 + $0xa0] sm:$0xff] }
 0x195   : > { %v1035_v63 = vmul.f32 %v1013_v54, %v4159_v28  ;;  %v1418_v28 = vcvt.s32.f32 %v1226_v3  ;;  %v1217_v35 = vunpack.c.1.s8 %v1081_v62  ;;  %v1555_v37 = vpack.c.bf16 %v1435_v30, %v1423_v24 }
 0x196   : > { %v1044_v52 = vmul.f32 %v4263_v10, %v1037_v57  ;;  %1718 = vmatpush.bf16.msrb.mxu3 %v1567_v4  ;;  %v1207_v19 = vunpack.c.0.s8 %v1083_v6  ;;  %v1556_v43 = vpack.c.bf16 %v1436_v20, %v1424_v34  ;;  %v1397_v44 = vcvt.s32.f32 %v1205_v36  ;;  %v1059_v20 = vld [vmem:[%s4054_s28 + $0x38] sm:$0xff] }
 0x197   : > { %v1042_v27 = vmul.f32 %v4263_v10, %v1035_v63  ;;  %v1550_v21 = vpack.c.bf16 %v1430_v11, %v1418_v28  ;;  %v1433_v10 = vcvt.s32.f32 %v1241_v12  ;;  %v1219_v46 = vunpack.c.1.s8 %v1083_v6 }
 0x198   : > { %v1051_v60 = vadd.f32 %v4281_v59, %v1044_v52  ;;  %v1399_v48 = vcvt.s32.f32 %v1207_v19  ;;  %v1208_v31 = vunpack.c.0.s8 %v1084_v9  ;;  %v1220_v49 = vunpack.c.1.s8 %v1084_v9  ;;  %1738 = vmatpush.bf16.msrb.mxu0 %v1556_v43 }
 0x199   : > { %v1049_v13 = vadd.f32 %v4281_v59, %v1042_v27  ;;  %1624 = vmatpush.bf16.msrb.mxu2 %v1550_v21  ;;  %v1553_v29 = vpack.c.bf16 %v1433_v10, %v1421_v16  ;;  %v1202_v59 = vunpack.c.0.s8 %v1078_v41  ;;  %v1411_v53 = vcvt.s32.f32 %v1219_v46  ;;  %v1054_v10 = vld [vmem:[%s4054_s28 + $0x10] sm:$0xff] }
 0x19a   : > { %v4331_v18 = vpack.c.bf16 %v1051_v60, %v1050_v45  ;;  %v1409_v45 = vcvt.s32.f32 %v1217_v35  ;;  %1719 = vmatpush.bf16.msrb.mxu3 %v1555_v37  ;;  %v1178_v55 = vunpack.c.2.s8 %v1066_v42  ;;  %v1190_v56 = vunpack.c.3.s8 %v1066_v42 }
 0x19b   : > { %v4333_v23 = vpack.c.bf16 %v1049_v13, %v1048_v40  ;;  %v1394_v38 = vcvt.s32.f32 %v1202_v59  ;;  %v1406_v40 = vcvt.s32.f32 %v1214_v33  ;;  %1681 = vmatpush.bf16.msrb.mxu1 %v1553_v29  ;;  %v1400_v41 = vcvt.s32.f32 %v1208_v31  ;;  %v1057_v29 = vld [vmem:[%s4054_s28 + $0x28] sm:$0xff] }
 0x19c   : > { %v1541_v51 = vpack.c.bf16 %v1409_v45, %v1397_v44  ;;  %v1412_v57 = vcvt.s32.f32 %v1220_v49  ;;  %v1181_v54 = vunpack.c.2.s8 %v1069_v39  ;;  %v1193_v58 = vunpack.c.3.s8 %v1069_v39  ;;  %v1060_v44 = vld [vmem:[%s4054_s28 + $0x40] sm:$0xff] }
 0x19d   : > { %1592 = vmatmul.bf16.vlgmr.msra.gmra.mxu2 %v4333_v23  ;;  %1611 = vmatmul.bf16.vlgmr.msra.gmra.mxu1 %v4333_v23  ;;  %v1538_v47 = vpack.c.bf16 %v1406_v40, %v1394_v38  ;;  %v1543_v62 = vpack.c.bf16 %v1411_v53, %v1399_v48  ;;  %v1370_v63 = vcvt.s32.f32 %v1178_v55  ;;  %v1382_v32 = vcvt.s32.f32 %v1190_v56 }
 0x19e   : > { %1649 = vmatmul.bf16.vlgmr.msra.gmra.mxu3 %v4333_v23  ;;  %1668 = vmatmul.bf16.vlgmr.msra.gmra.mxu0 %v4333_v23  ;;  %v1183_v0 = vunpack.c.2.s8 %v1071_v50  ;;  %v1544_v1 = vpack.c.bf16 %v1412_v57, %v1400_v41  ;;  %v1373_v52 = vcvt.s32.f32 %v1181_v54  ;;  %v1385_v2 = vcvt.s32.f32 %v1193_v58 }
 0x19f   : > { %1625 = vmatpush.bf16.msrb.mxu2 %v1538_v47  ;;  %1682 = vmatpush.bf16.msrb.mxu1 %v1541_v51  ;;  %v1195_v3 = vunpack.c.3.s8 %v1071_v50  ;;  %v1526_v5 = vpack.c.bf16 %v1382_v32, %v1370_v63  ;;  %v1184_v27 = vunpack.c.2.s8 %v1072_v61  ;;  %v1196_v4 = vunpack.c.3.s8 %v1072_v61 }
 0x1a0   : > { %1720 = vmatpush.bf16.msrb.mxu3 %v1543_v62  ;;  %v1375_v6 = vcvt.s32.f32 %v1183_v0  ;;  %1739 = vmatpush.bf16.msrb.mxu0 %v1544_v1  ;;  %v1529_v7 = vpack.c.bf16 %v1385_v2, %v1373_v52  ;;  %v1154_v60 = vunpack.c.0.s8 %v1066_v42  ;;  %v1166_v28 = vunpack.c.1.s8 %v1066_v42 }
 0x1a1   : > { %v1387_v8 = vcvt.s32.f32 %v1195_v3  ;;  %v1376_v11 = vcvt.s32.f32 %v1184_v27  ;;  %v1388_v12 = vcvt.s32.f32 %v1196_v4  ;;  %v1157_v9 = vunpack.c.0.s8 %v1069_v39  ;;  %v1094_v3 = vld [vmem:[%s4054_s28 + $0x150] sm:$0xff] }
 0x1a2   : > { %v1169_v13 = vunpack.c.1.s8 %v1069_v39  ;;  %v1346_v16 = vcvt.s32.f32 %v1154_v60  ;;  %v1358_v17 = vcvt.s32.f32 %v1166_v28  ;;  %v1159_v21 = vunpack.c.0.s8 %v1071_v50 }
 0x1a3   : > { %1626 = vmatpush.bf16.msrb.mxu2 %v1526_v5  ;;  %1683 = vmatpush.bf16.msrb.mxu1 %v1529_v7  ;;  %v1531_v15 = vpack.c.bf16 %v1387_v8, %v1375_v6  ;;  %v1532_v22 = vpack.c.bf16 %v1388_v12, %v1376_v11  ;;  %v1349_v24 = vcvt.s32.f32 %v1157_v9  ;;  %v1171_v26 = vunpack.c.1.s8 %v1071_v50  ;;  %v1097_v7 = vld [vmem:[%s4054_s28 + $0x168] sm:$0xff]  ;;  %v1099_v12 = vld [vmem:[%s4054_s28 + $0x178] sm:$0xff] }
 0x1a4   : > { %v1361_v25 = vcvt.s32.f32 %v1169_v13  ;;  %v1514_v30 = vpack.c.bf16 %v1358_v17, %v1346_v16  ;;  %v1351_v59 = vcvt.s32.f32 %v1159_v21  ;;  %v1160_v33 = vunpack.c.0.s8 %v1072_v61 }
 0x1a5   : > { %1721 = vmatpush.bf16.msrb.mxu3 %v1531_v15  ;;  %v1172_v34 = vunpack.c.1.s8 %v1072_v61  ;;  %1740 = vmatpush.bf16.msrb.mxu0 %v1532_v22  ;;  %v1363_v35 = vcvt.s32.f32 %v1171_v26  ;;  %v1130_v37 = vunpack.c.2.s8 %v1054_v10  ;;  %v1142_v38 = vunpack.c.3.s8 %v1054_v10 }
 0x1a6   : > { %v1517_v36 = vpack.c.bf16 %v1361_v25, %v1349_v24  ;;  %v1352_v40 = vcvt.s32.f32 %v1160_v33  ;;  %v1133_v42 = vunpack.c.2.s8 %v1057_v29  ;;  %v1145_v43 = vunpack.c.3.s8 %v1057_v29 }
 0x1a7   : > { %1627 = vmatpush.bf16.msrb.mxu2 %v1514_v30  ;;  %v1364_v19 = vcvt.s32.f32 %v1172_v34  ;;  %v1519_v45 = vpack.c.bf16 %v1363_v35, %v1351_v59  ;;  %v1322_v46 = vcvt.s32.f32 %v1130_v37  ;;  %v1334_v39 = vcvt.s32.f32 %v1142_v38  ;;  %v1082_v38 = vld [vmem:[%s4054_s28 + $0xf0] sm:$0xff] }
 0x1a8   : > { %v1135_v47 = vunpack.c.2.s8 %v1059_v20  ;;  %v1325_v31 = vcvt.s32.f32 %v1133_v42  ;;  %v1337_v49 = vcvt.s32.f32 %v1145_v43  ;;  %v1147_v50 = vunpack.c.3.s8 %v1059_v20  ;;  %1684 = vmatpush.bf16.msrb.mxu1 %v1517_v36 }
 0x1a9   : > { %v1520_v48 = vpack.c.bf16 %v1364_v19, %v1352_v40  ;;  %1722 = vmatpush.bf16.msrb.mxu3 %v1519_v45  ;;  %v1502_v51 = vpack.c.bf16 %v1334_v39, %v1322_v46  ;;  %v1136_v55 = vunpack.c.2.s8 %v1060_v44  ;;  %v1148_v56 = vunpack.c.3.s8 %v1060_v44 }
 0x1aa   : > { %v1327_v53 = vcvt.s32.f32 %v1135_v47  ;;  %v1505_v41 = vpack.c.bf16 %v1337_v49, %v1325_v31  ;;  %v1339_v57 = vcvt.s32.f32 %v1147_v50  ;;  %v1106_v54 = vunpack.c.0.s8 %v1054_v10  ;;  %v1085_v47 = vld [vmem:[%s4054_s28 + $0x108] sm:$0xff] }
 0x1ab   : > { %1741 = vmatpush.bf16.msrb.mxu0 %v1520_v48  ;;  %v1118_v58 = vunpack.c.1.s8 %v1054_v10  ;;  %1628 = vmatpush.bf16.msrb.mxu2 %v1502_v51  ;;  %v1328_v61 = vcvt.s32.f32 %v1136_v55  ;;  %v1340_v62 = vcvt.s32.f32 %v1148_v56  ;;  %v1109_v63 = vunpack.c.0.s8 %v1057_v29  ;;  %v1087_v51 = vld [vmem:[%s4054_s28 + $0x118] sm:$0xff] }
 0x1ac   : > { %v1121_v32 = vunpack.c.1.s8 %v1057_v29  ;;  %v1507_v0 = vpack.c.bf16 %v1339_v57, %v1327_v53  ;;  %v1298_v1 = vcvt.s32.f32 %v1106_v54  ;;  %v1111_v2 = vunpack.c.0.s8 %v1059_v20  ;;  %1685 = vmatpush.bf16.msrb.mxu1 %v1505_v41 }
 0x1ad   : > { %1597 = vmatmul.bf16.gmra.mxu2 %v4331_v18  ;;  %1616 = vmatmul.bf16.gmra.mxu1 %v4331_v18  ;;  %v1310_v52 = vcvt.s32.f32 %v1118_v58  ;;  %v1508_v5 = vpack.c.bf16 %v1340_v62, %v1328_v61  ;;  %v1301_v6 = vcvt.s32.f32 %v1109_v63  ;;  %v1123_v4 = vunpack.c.1.s8 %v1059_v20 }
 0x1ae   : > { %1654 = vmatmul.bf16.gmra.mxu3 %v4331_v18  ;;  %1673 = vmatmul.bf16.gmra.mxu0 %v4331_v18  ;;  %v1313_v27 = vcvt.s32.f32 %v1121_v32  ;;  %v1303_v60 = vcvt.s32.f32 %v1111_v2  ;;  %v1112_v28 = vunpack.c.0.s8 %v1060_v44  ;;  %v1124_v11 = vunpack.c.1.s8 %v1060_v44 }
 0x1af   : > { %1723 = vmatpush.bf16.msrb.mxu3 %v1507_v0  ;;  %v1490_v8 = vpack.c.bf16 %v1310_v52, %v1298_v1  ;;  %1742 = vmatpush.bf16.msrb.mxu0 %v1508_v5  ;;  %v1315_v13 = vcvt.s32.f32 %v1123_v4  ;;  %v1278_v15 = vunpack.c.2.s8 %v1094_v3  ;;  %v1290_v16 = vunpack.c.3.s8 %v1094_v3 }
 0x1b0   : > { %v1493_v9 = vpack.c.bf16 %v1313_v27, %v1301_v6  ;;  %v1304_v17 = vcvt.s32.f32 %v1112_v28  ;;  %v1316_v21 = vcvt.s32.f32 %v1124_v11  ;;  %v1281_v10 = vunpack.c.2.s8 %v1097_v7 }
 0x1b1   : > { %1629 = vmatpush.bf16.msrb.mxu2 %v1490_v8  ;;  %v1293_v22 = vunpack.c.3.s8 %v1097_v7  ;;  %v1495_v24 = vpack.c.bf16 %v1315_v13, %v1303_v60  ;;  %v1470_v25 = vcvt.s32.f32 %v1278_v15  ;;  %v1482_v26 = vcvt.s32.f32 %v1290_v16 }
 0x1b2   : > { %1686 = vmatpush.bf16.msrb.mxu1 %v1493_v9  ;;  %v1283_v29 = vunpack.c.2.s8 %v1099_v12  ;;  %v1496_v30 = vpack.c.bf16 %v1316_v21, %v1304_v17  ;;  %v1473_v59 = vcvt.s32.f32 %v1281_v10  ;;  %v1295_v34 = vunpack.c.3.s8 %v1099_v12  ;;  %v1075_v17 = vld [vmem:[%s4054_s28 + $0xb8] sm:$0xff] }
 0x1b3   : > { %v1485_v33 = vcvt.s32.f32 %v1293_v22  ;;  %1724 = vmatpush.bf16.msrb.mxu3 %v1495_v24  ;;  %v1578_v20 = vpack.c.bf16 %v1482_v26, %v1470_v25  ;;  %v1254_v35 = vunpack.c.0.s8 %v1094_v3  ;;  %v1266_v37 = vunpack.c.1.s8 %v1094_v3 }
 0x1b4   : > { %v1475_v36 = vcvt.s32.f32 %v1283_v29  ;;  %1743 = vmatpush.bf16.msrb.mxu0 %v1496_v30  ;;  %v1487_v19 = vcvt.s32.f32 %v1295_v34  ;;  %v1257_v42 = vunpack.c.0.s8 %v1097_v7  ;;  %v1269_v43 = vunpack.c.1.s8 %v1097_v7  ;;  %v1070_v7 = vld [vmem:[%s4054_s28 + $0x90] sm:$0xff] }
 0x1b5   : > { %v1581_v40 = vpack.c.bf16 %v1485_v33, %v1473_v59  ;;  %1698 = vmatpush.bf16.msra.mxu2 %v1578_v20  ;;  %v1446_v44 = vcvt.s32.f32 %v1254_v35  ;;  %v1458_v45 = vcvt.s32.f32 %v1266_v37  ;;  %v1259_v46 = vunpack.c.0.s8 %v1099_v12 }
 0x1b6   : > { %v1271_v39 = vunpack.c.1.s8 %v1099_v12  ;;  %v1583_v48 = vpack.c.bf16 %v1487_v19, %v1475_v36  ;;  %v1449_v31 = vcvt.s32.f32 %v1257_v42  ;;  %v1461_v49 = vcvt.s32.f32 %v1269_v43  ;;  %v1073_v12 = vld [vmem:[%s4054_s28 + $0xa8] sm:$0xff] }
 0x1b7   : > { %1755 = vmatpush.bf16.msra.mxu1 %v1581_v40  ;;  %v1230_v50 = vunpack.c.2.s8 %v1082_v38  ;;  %v1566_v53 = vpack.c.bf16 %v1458_v45, %v1446_v44  ;;  %v1451_v55 = vcvt.s32.f32 %v1259_v46  ;;  %v1242_v41 = vunpack.c.3.s8 %v1082_v38  ;;  %v1058_v44 = vld [vmem:[%s4054_s28 + $0x30] sm:$0xff] }
 0x1b8   : > { %v1463_v56 = vcvt.s32.f32 %v1271_v39  ;;  %v1569_v57 = vpack.c.bf16 %v1461_v49, %v1449_v31  ;;  %v1233_v58 = vunpack.c.2.s8 %v1085_v47  ;;  %v1245_v61 = vunpack.c.3.s8 %v1085_v47  ;;  %1793 = vmatpush.bf16.msra.mxu3 %v1583_v48 }
 0x1b9   : > { %v1422_v54 = vcvt.s32.f32 %v1230_v50  ;;  %1699 = vmatpush.bf16.msra.mxu2 %v1566_v53  ;;  %v1434_v63 = vcvt.s32.f32 %v1242_v41  ;;  %v1235_v32 = vunpack.c.2.s8 %v1087_v51  ;;  %v1247_v0 = vunpack.c.3.s8 %v1087_v51 }
 0x1ba   : > { %v1571_v62 = vpack.c.bf16 %v1463_v56, %v1451_v55  ;;  %v1425_v1 = vcvt.s32.f32 %v1233_v58  ;;  %v1437_v52 = vcvt.s32.f32 %v1245_v61  ;;  %v1206_v2 = vunpack.c.0.s8 %v1082_v38 }
 0x1bb   : > { %1756 = vmatpush.bf16.msra.mxu1 %v1569_v57  ;;  %v1218_v3 = vunpack.c.1.s8 %v1082_v38  ;;  %v1554_v5 = vpack.c.bf16 %v1434_v63, %v1422_v54  ;;  %v1427_v6 = vcvt.s32.f32 %v1235_v32  ;;  %v1439_v27 = vcvt.s32.f32 %v1247_v0  ;;  %v1063_v57 = vld [vmem:[%s4054_s28 + $0x58] sm:$0xff] }
 0x1bc   : > { %v1209_v4 = vunpack.c.0.s8 %v1085_v47  ;;  %v1557_v8 = vpack.c.bf16 %v1437_v52, %v1425_v1  ;;  %v1398_v60 = vcvt.s32.f32 %v1206_v2  ;;  %v1221_v11 = vunpack.c.1.s8 %v1085_v47  ;;  %1794 = vmatpush.bf16.msra.mxu3 %v1571_v62 }
 0x1bd   : > { %1630 = vmatmul.bf16.vlgmr.msrb.gmra.mxu2 %v4333_v23  ;;  %1687 = vmatmul.bf16.vlgmr.msrb.gmra.mxu1 %v4333_v23  ;;  %v1410_v28 = vcvt.s32.f32 %v1218_v3  ;;  %v1559_v9 = vpack.c.bf16 %v1439_v27, %v1427_v6  ;;  %v1211_v15 = vunpack.c.0.s8 %v1087_v51  ;;  %v1223_v16 = vunpack.c.1.s8 %v1087_v51  ;;  %v1061_v51 = vld [vmem:[%s4054_s28 + $0x48] sm:$0xff] }
 0x1be   : > { %1725 = vmatmul.bf16.vlgmr.msrb.gmra.mxu3 %v4333_v23  ;;  %1744 = vmatmul.bf16.vlgmr.msrb.gmra.mxu0 %v4333_v23  ;;  %v1401_v13 = vcvt.s32.f32 %v1209_v4  ;;  %v1413_v10 = vcvt.s32.f32 %v1221_v11  ;;  %v1182_v22 = vunpack.c.2.s8 %v1070_v7  ;;  %v1194_v24 = vunpack.c.3.s8 %v1070_v7 }
 0x1bf   : > { %1700 = vmatpush.bf16.msra.mxu2 %v1554_v5  ;;  %1757 = vmatpush.bf16.msra.mxu1 %v1557_v8  ;;  %v1542_v21 = vpack.c.bf16 %v1410_v28, %v1398_v60  ;;  %v1403_v25 = vcvt.s32.f32 %v1211_v15  ;;  %v1415_v26 = vcvt.s32.f32 %v1223_v16  ;;  %v1185_v29 = vunpack.c.2.s8 %v1073_v12 }
 0x1c0   : > { %v1197_v30 = vunpack.c.3.s8 %v1073_v12  ;;  %v1545_v59 = vpack.c.bf16 %v1413_v10, %v1401_v13  ;;  %v1374_v33 = vcvt.s32.f32 %v1182_v22  ;;  %v1386_v34 = vcvt.s32.f32 %v1194_v24  ;;  %1795 = vmatpush.bf16.msra.mxu3 %v1559_v9  ;;  %v1086_v24 = vld [vmem:[%s4054_s28 + $0x110] sm:$0xff] }
 0x1c1   : > { %v1187_v20 = vunpack.c.2.s8 %v1075_v17  ;;  %v1547_v36 = vpack.c.bf16 %v1415_v26, %v1403_v25  ;;  %v1377_v35 = vcvt.s32.f32 %v1185_v29  ;;  %v1199_v38 = vunpack.c.3.s8 %v1075_v17 }
 0x1c2   : > { %v1389_v37 = vcvt.s32.f32 %v1197_v30  ;;  %v1530_v40 = vpack.c.bf16 %v1386_v34, %v1374_v33  ;;  %v1158_v42 = vunpack.c.0.s8 %v1070_v7  ;;  %v1170_v43 = vunpack.c.1.s8 %v1070_v7 }
 0x1c3   : > { %1701 = vmatpush.bf16.msra.mxu2 %v1542_v21  ;;  %1758 = vmatpush.bf16.msra.mxu1 %v1545_v59  ;;  %v1379_v19 = vcvt.s32.f32 %v1187_v20  ;;  %v1391_v46 = vcvt.s32.f32 %v1199_v38  ;;  %v1161_v39 = vunpack.c.0.s8 %v1073_v12  ;;  %v1173_v47 = vunpack.c.1.s8 %v1073_v12  ;;  %v1098_v12 = vld [vmem:[%s4054_s28 + $0x170] sm:$0xff] }
 0x1c4   : > { %v1533_v45 = vpack.c.bf16 %v1389_v37, %v1377_v35  ;;  %v1350_v48 = vcvt.s32.f32 %v1158_v42  ;;  %v1362_v31 = vcvt.s32.f32 %v1170_v43  ;;  %v1163_v49 = vunpack.c.0.s8 %v1075_v17  ;;  %1796 = vmatpush.bf16.msra.mxu3 %v1547_v36 }
 0x1c5   : > { %v1175_v50 = vunpack.c.1.s8 %v1075_v17  ;;  %v1535_v53 = vpack.c.bf16 %v1391_v46, %v1379_v19  ;;  %v1353_v55 = vcvt.s32.f32 %v1161_v39  ;;  %v1365_v56 = vcvt.s32.f32 %v1173_v47 }
 0x1c6   : > { %v1134_v41 = vunpack.c.2.s8 %v1058_v44  ;;  %v1518_v54 = vpack.c.bf16 %v1362_v31, %v1350_v48  ;;  %v1355_v58 = vcvt.s32.f32 %v1163_v49  ;;  %v1146_v62 = vunpack.c.3.s8 %v1058_v44  ;;  %v1074_v31 = vld [vmem:[%s4054_s28 + $0xb0] sm:$0xff] }
 0x1c7   : > { %1702 = vmatpush.bf16.msra.mxu2 %v1530_v40  ;;  %1759 = vmatpush.bf16.msra.mxu1 %v1533_v45  ;;  %v1367_v61 = vcvt.s32.f32 %v1175_v50  ;;  %v1521_v63 = vpack.c.bf16 %v1365_v56, %v1353_v55  ;;  %v1137_v0 = vunpack.c.2.s8 %v1061_v51  ;;  %v1149_v1 = vunpack.c.3.s8 %v1061_v51 }
 0x1c8   : > { %v1326_v32 = vcvt.s32.f32 %v1134_v41  ;;  %v1338_v2 = vcvt.s32.f32 %v1146_v62  ;;  %v1139_v3 = vunpack.c.2.s8 %v1063_v57  ;;  %v1151_v5 = vunpack.c.3.s8 %v1063_v57  ;;  %1797 = vmatpush.bf16.msra.mxu3 %v1535_v53 }
 0x1c9   : > { %v1523_v52 = vpack.c.bf16 %v1367_v61, %v1355_v58  ;;  %v1329_v6 = vcvt.s32.f32 %v1137_v0  ;;  %v1341_v27 = vcvt.s32.f32 %v1149_v1  ;;  %v1110_v4 = vunpack.c.0.s8 %v1058_v44  ;;  %v1062_v61 = vld [vmem:[%s4054_s28 + $0x50] sm:$0xff] }
 0x1ca   : > { %v1122_v7 = vunpack.c.1.s8 %v1058_v44  ;;  %v1506_v8 = vpack.c.bf16 %v1338_v2, %v1326_v32  ;;  %v1331_v60 = vcvt.s32.f32 %v1139_v3  ;;  %v1343_v28 = vcvt.s32.f32 %v1151_v5 }
 0x1cb   : > { %1703 = vmatpush.bf16.msra.mxu2 %v1518_v54  ;;  %1760 = vmatpush.bf16.msra.mxu1 %v1521_v63  ;;  %v1113_v11 = vunpack.c.0.s8 %v1061_v51  ;;  %v1509_v9 = vpack.c.bf16 %v1341_v27, %v1329_v6  ;;  %v1302_v13 = vcvt.s32.f32 %v1110_v4  ;;  %v1125_v16 = vunpack.c.1.s8 %v1061_v51 }
 0x1cc   : > { %v1314_v15 = vcvt.s32.f32 %v1122_v7  ;;  %v1511_v17 = vpack.c.bf16 %v1343_v28, %v1331_v60  ;;  %v1115_v10 = vunpack.c.0.s8 %v1063_v57  ;;  %v1127_v22 = vunpack.c.1.s8 %v1063_v57  ;;  %1798 = vmatpush.bf16.msra.mxu3 %v1523_v52 }
 0x1cd   : > { %1635 = vmatmul.bf16.gmra.mxu2 %v4331_v18  ;;  %1692 = vmatmul.bf16.gmra.mxu1 %v4331_v18  ;;  %v1305_v21 = vcvt.s32.f32 %v1113_v11  ;;  %v1317_v26 = vcvt.s32.f32 %v1125_v16  ;;  %v1282_v29 = vunpack.c.2.s8 %v1098_v12  ;;  %v1294_v30 = vunpack.c.3.s8 %v1098_v12 }
 0x1ce   : > { %1730 = vmatmul.bf16.gmra.mxu3 %v4331_v18  ;;  %1749 = vmatmul.bf16.gmra.mxu0 %v4331_v18  ;;  %v1494_v25 = vpack.c.bf16 %v1314_v15, %v1302_v13  ;;  %v1307_v59 = vcvt.s32.f32 %v1115_v10  ;;  %v1319_v33 = vcvt.s32.f32 %v1127_v22  ;;  %v1258_v34 = vunpack.c.0.s8 %v1098_v12 }
 0x1cf   : > { %1704 = vmatpush.bf16.msra.mxu2 %v1506_v8  ;;  %1761 = vmatpush.bf16.msra.mxu1 %v1509_v9  ;;  %v1270_v20 = vunpack.c.1.s8 %v1098_v12  ;;  %v1497_v36 = vpack.c.bf16 %v1317_v26, %v1305_v21  ;;  %v1474_v35 = vcvt.s32.f32 %v1282_v29  ;;  %v1486_v37 = vcvt.s32.f32 %v1294_v30  ;;  %v4392_v9 = vld [vmem:[%s4099_s0] sm:$0xff] }
 0x1d0   : > { %v1234_v38 = vunpack.c.2.s8 %v1086_v24  ;;  %v1450_v40 = vcvt.s32.f32 %v1258_v34  ;;  %v1246_v42 = vunpack.c.3.s8 %v1086_v24  ;;  %1799 = vmatpush.bf16.msra.mxu3 %v1511_v17  ;;  %v1499_v43 = vpack.c.bf16 %v1319_v33, %v1307_v59 }
 0x1d1   : > { %v1462_v19 = vcvt.s32.f32 %v1270_v20  ;;  %v1582_v44 = vpack.c.bf16 %v1486_v37, %v1474_v35  ;;  %v1210_v47 = vunpack.c.0.s8 %v1086_v24  ;;  %v1222_v48 = vunpack.c.1.s8 %v1086_v24 }
 0x1d2   : > { %v1426_v45 = vcvt.s32.f32 %v1234_v38  ;;  %v1438_v39 = vcvt.s32.f32 %v1246_v42  ;;  %v1186_v49 = vunpack.c.2.s8 %v1074_v31  ;;  %v1198_v55 = vunpack.c.3.s8 %v1074_v31 }
 0x1d3   : > { %1705 = vmatpush.bf16.msra.mxu2 %v1494_v25  ;;  %1762 = vmatpush.bf16.msra.mxu1 %v1497_v36  ;;  %v1570_v46 = vpack.c.bf16 %v1462_v19, %v1450_v40  ;;  %v1402_v51 = vcvt.s32.f32 %v1210_v47  ;;  %v1414_v53 = vcvt.s32.f32 %v1222_v48  ;;  %v1162_v56 = vunpack.c.0.s8 %v1074_v31 }
 0x1d4   : > { %1800 = vmatpush.bf16.msra.mxu3 %v1499_v43  ;;  %v1558_v50 = vpack.c.bf16 %v1438_v39, %v1426_v45  ;;  %v1378_v57 = vcvt.s32.f32 %v1186_v49  ;;  %v1390_v54 = vcvt.s32.f32 %v1198_v55  ;;  %v1174_v58 = vunpack.c.1.s8 %v1074_v31 }
 0x1d5   : > { %v1546_v41 = vpack.c.bf16 %v1414_v53, %v1402_v51  ;;  %v1138_v62 = vunpack.c.2.s8 %v1062_v61  ;;  %v1354_v32 = vcvt.s32.f32 %v1162_v56  ;;  %v1150_v1 = vunpack.c.3.s8 %v1062_v61 }
 0x1d6   : > { %v1534_v63 = vpack.c.bf16 %v1390_v54, %v1378_v57  ;;  %v1366_v0 = vcvt.s32.f32 %v1174_v58  ;;  %v1114_v5 = vunpack.c.0.s8 %v1062_v61  ;;  %v1126_v6 = vunpack.c.1.s8 %v1062_v61 }
 0x1d7   : > { %1774 = vmatpush.bf16.msrb.mxu2 %v1582_v44  ;;  %v1330_v52 = vcvt.s32.f32 %v1138_v62  ;;  %v1342_v3 = vcvt.s32.f32 %v1150_v1  ;;  %v4395_v13 = vperm.slane %v4392_v9, 0  ;;  %v4398_v15 = vperm.slane %v4392_v9, 3 }
 0x1d8   : > { %v1522_v2 = vpack.c.bf16 %v1366_v0, %v1354_v32  ;;  %v1306_v4 = vcvt.s32.f32 %v1114_v5  ;;  %v1318_v7 = vcvt.s32.f32 %v1126_v6  ;;  %v4444_v49 = vperm.slane %v4392_v9, 6 }
 0x1d9   : > { %v1510_v27 = vpack.c.bf16 %v1342_v3, %v1330_v52 }
 0x1da   : > { %v1498_v8 = vpack.c.bf16 %v1318_v7, %v1306_v4 }
 0x1db   : > { %1775 = vmatpush.bf16.msrb.mxu2 %v1570_v46 }
 0x1dd   : > { %1706 = vmatmul.bf16.vlgmr.msra.gmra.mxu2 %v4333_v23  ;;  %1763 = vmatmul.bf16.vlgmr.msra.gmra.mxu1 %v4333_v23 }
 0x1de   : > { %1801 = vmatmul.bf16.vlgmr.msra.gmra.mxu3 %v4333_v23 }
 0x1df   : > { %1776 = vmatpush.bf16.msrb.mxu2 %v1558_v50 }
 0x1e3   : > { %1777 = vmatpush.bf16.msrb.mxu2 %v1546_v41  ;;  %v4450_v41 = vld [vmem:[%s4099_s0 + $0x8] sm:$0xf] }
 0x1e4   : > { %v1825_v57 = vperm.slane %v4450_v41, 3  ;;  %v1822_v32 = vperm.slane %v4450_v41, 0 }
 0x1e7   : > { %1778 = vmatpush.bf16.msrb.mxu2 %v1534_v63 }
 0x1eb   : > { %1779 = vmatpush.bf16.msrb.mxu2 %v1522_v2  ;;  %v1819_v2 = vperm.slane %v4392_v9, 5 }
 0x1ed   : > { %1711 = vmatmul.bf16.gmra.mxu2 %v4331_v18  ;;  %1768 = vmatmul.bf16.gmra.mxu1 %v4331_v18 }
 0x1ee   : > { %1806 = vmatmul.bf16.gmra.mxu3 %v4331_v18 }
 0x1ef   : > { %1780 = vmatpush.bf16.msrb.mxu2 %v1510_v27  ;;  %v1816_v27 = vperm.slane %v4392_v9, 2 }
 0x1f3   : > { %1781 = vmatpush.bf16.msrb.mxu2 %v1498_v8 }
 0x1fd   : > { %1782 = vmatmul.bf16.vlgmr.msrb.gmra.mxu2 %v4333_v23 }
 0x20d   : > { %1787 = vmatmul.bf16.gmra.mxu2 %v4331_v18 }
 0x21a   : > { %v4410_v22 = vpop.f32.mrf.mxu1 }
 0x21b   : > { %v4406_v21 = vpop.f32.mrf.mxu0 }
 0x220   : > { %v4383_v60 = vpop.f32.mrf.mxu2 }
 0x221   : > { %v4385_v28 = vpop.f32.mrf.mxu3 }
 0x222   : > { %v4421_v59 = vpop.f32.mrf.mxu1 }
 0x223   : > { %v4415_v26 = vpop.f32.mrf.mxu0 }
 0x228   : > { %v4387_v11 = vpop.f32.mrf.mxu2 }
 0x229   : > { %v4389_v12 = vpop.f32.mrf.mxu3 }
 0x22a   : > { %v4429_v36 = vpop.f32.mrf.mxu1 }
 0x22b   : > { %v4425_v34 = vpop.f32.mrf.mxu0 }
 0x230   : > { %v1598_v16 = vpop.f32.mrf.mxu2 }
 0x231   : > { %v4401_v23 = vmul.f32 %v4395_v13, %v1598_v16  ;;  %v1655_v18 = vpop.f32.mrf.mxu3 }
 0x232   : > { %v4404_v17 = vmul.f32 %v4398_v15, %v1655_v18  ;;  %v4435_v40 = vpop.f32.mrf.mxu1 }
 0x233   : > { %v4433_v38 = vpop.f32.mrf.mxu0 }
 0x238   : > { %v4408_v10 = vpop.f32.mrf.mxu2 }
 0x239   : > { %v1657_v24 = vpop.f32.mrf.mxu3 }
 0x23a   : > { %v4413_v25 = vmul.f32 %v4398_v15, %v1657_v24  ;;  %v1688_v45 = vpop.f32.mrf.mxu1 }
 0x23b   : > { %v1745_v43 = vpop.f32.mrf.mxu0 }
 0x240   : > { %v4417_v29 = vpop.f32.mrf.mxu2 }
 0x241   : > { %v4419_v30 = vpop.f32.mrf.mxu3 }
 0x242   : > { %v1690_v31 = vpop.f32.mrf.mxu1 }
 0x243   : > { %v1747_v39 = vpop.f32.mrf.mxu0 }
 0x248   : > { %v4423_v33 = vpop.f32.mrf.mxu2 }
 0x249   : > { %v4427_v20 = vpop.f32.mrf.mxu3 }
 0x24a   : > { %v1693_v56 = vpop.f32.mrf.mxu1 }
 0x24b   : > { %v1750_v51 = vpop.f32.mrf.mxu0  ;;  %v1867_v4 = vmul.f32 %v1819_v2, %v1693_v56  ;;  %v1852_v56 = vmul.f32 %v1816_v27, %v4423_v33  ;;  %v1818_v33 = vperm.slane %v4392_v9, 4 }
 0x24c   : > { %v1870_v3 = vmul.f32 %v1822_v32, %v1750_v51  ;;  %v1846_v51 = vmul.f32 %v1822_v32, %v1745_v43  ;;  %v1821_v43 = vperm.slane %v4392_v9, 7 }
 0x250   : > { %v1636_v35 = vpop.f32.mrf.mxu2 }
 0x251   : > { %v4431_v37 = vpop.f32.mrf.mxu3  ;;  %v1864_v8 = vmul.f32 %v1816_v27, %v1636_v35  ;;  %v1824_v35 = vperm.slane %v4450_v41, 2 }
 0x252   : > { %v1695_v52 = vpop.f32.mrf.mxu1 }
 0x253   : > { %v1752_v63 = vpop.f32.mrf.mxu0  ;;  %v1879_v6 = vmul.f32 %v1819_v2, %v1695_v52 }
 0x254   : > { %v1882_v1 = vmul.f32 %v1822_v32, %v1752_v63 }
 0x258   : > { %v1638_v19 = vpop.f32.mrf.mxu2 }
 0x259   : > { %v4437_v42 = vpop.f32.mrf.mxu3  ;;  %v1876_v7 = vmul.f32 %v1816_v27, %v1638_v19  ;;  %v1840_v19 = vmul.f32 %v1816_v27, %v4417_v29  ;;  %v1866_v29 = vmul.f32 %v1818_v33, %v4425_v34  ;;  %v1854_v34 = vmul.f32 %v1818_v33, %v4415_v26  ;;  %v1986_v27 = vld [vmem:[%s4945_s6 + $0x20] sm:$0xff] }
 0x25a   : > { %v1841_v26 = vmul.f32 %v4398_v15, %v4385_v28 }
 0x260   : > { %v4439_v44 = vpop.f32.mrf.mxu2 }
 0x261   : > { %v1802_v46 = vpop.f32.mrf.mxu3 }
 0x262   : > { %v1849_v24 = vmul.f32 %v1825_v57, %v1802_v46 }
 0x268   : > { %v4441_v47 = vpop.f32.mrf.mxu2 }
 0x269   : > { %v1804_v48 = vpop.f32.mrf.mxu3 }
 0x26a   : > { %v1861_v18 = vmul.f32 %v1825_v57, %v1804_v48 }
 0x270   : > { %v1712_v50 = vpop.f32.mrf.mxu2 }
 0x271   : > { %v4447_v53 = vmul.f32 %v4444_v49, %v1712_v50  ;;  %v1807_v55 = vpop.f32.mrf.mxu3  ;;  %v1858_v50 = vmul.f32 %v1822_v32, %v1747_v39 }
 0x272   : > { %v1873_v0 = vmul.f32 %v1825_v57, %v1807_v55 }
 0x278   : > { %v1714_v54 = vpop.f32.mrf.mxu2 }
 0x279   : > { %v4454_v58 = vmul.f32 %v4444_v49, %v1714_v54  ;;  %v1809_v61 = vpop.f32.mrf.mxu3  ;;  %v1855_v54 = vmul.f32 %v1819_v2, %v1690_v31  ;;  %v1881_v31 = vmul.f32 %v1821_v43, %v4437_v42 }
 0x27a   : > { %v1885_v62 = vmul.f32 %v1825_v57, %v1809_v61  ;;  %v1843_v61 = vmul.f32 %v1819_v2, %v1688_v45  ;;  %v1869_v45 = vmul.f32 %v1821_v43, %v4431_v37  ;;  %v1878_v57 = vmul.f32 %v1818_v33, %v4433_v38 }
 0x27b   : > { %v1845_v38 = vmul.f32 %v1821_v43, %v4419_v30  ;;  %v1850_v30 = vmul.f32 %v4395_v13, %v4387_v11  ;;  %v1823_v11 = vperm.slane %v4450_v41, 1  ;;  %v1984_v41 = vld [vmem:[%s4945_s6 + $0x10] sm:$0xff] }
 0x27c   : > { %2207 = vmatpush.msrb.mxu1 %v1885_v62  ;;  %v1815_v62 = vperm.slane %v4392_v9, 1  ;;  %v1842_v9 = vmul.f32 %v1818_v33, %v4406_v21  ;;  %v1853_v21 = vmul.f32 %v4398_v15, %v4389_v12  ;;  %v1874_v12 = vmul.f32 %v4395_v13, %v4408_v10  ;;  %v1990_v33 = vld [vmem:[%s4945_s6 + $0x40] sm:$0xff] }
 0x27e   : > { %2208 = vmatpush.msrb.mxu1 %v1873_v0  ;;  %v1875_v63 = vmul.f32 %v1815_v62, %v4435_v40  ;;  %v1863_v32 = vmul.f32 %v1815_v62, %v4429_v36  ;;  %v1857_v0 = vmul.f32 %v1821_v43, %v4427_v20  ;;  %v1851_v40 = vmul.f32 %v1815_v62, %v4421_v59  ;;  %v1764_v59 = vpop.f32.mrf.mxu1 }
 0x27f   : > { %v1839_v36 = vmul.f32 %v1815_v62, %v4410_v22  ;;  %v1844_v22 = vmul.f32 %v4444_v49, %v4439_v44  ;;  %v1847_v20 = vmul.f32 %v1823_v11, %v1764_v59  ;;  %v1993_v59 = vld [vmem:[%s4945_s6 + $0x58] sm:$0xff] }
 0x280   : > { %2209 = vmatpush.msrb.mxu1 %v1882_v1  ;;  %v1783_v5 = vpop.f32.mrf.mxu2  ;;  %v1838_v1 = vmul.f32 %v4395_v13, %v4383_v60  ;;  %v1856_v60 = vmul.f32 %v4444_v49, %v4441_v47 }
 0x281   : > { %v1848_v37 = vmul.f32 %v1824_v35, %v1783_v5 }
 0x282   : > { %2210 = vmatpush.msrb.mxu1 %v1870_v3  ;;  %v1985_v3 = vld [vmem:[%s4945_s6 + $0x18] sm:$0xff] }
 0x284   : > { %2211 = vmatpush.msrb.mxu1 %v1879_v6 }
 0x286   : > { %2212 = vmatpush.msrb.mxu1 %v1867_v4  ;;  %v1766_v52 = vpop.f32.mrf.mxu1 }
 0x287   : > { %v1859_v28 = vmul.f32 %v1823_v11, %v1766_v52 }
 0x288   : > { %2213 = vmatpush.msrb.mxu1 %v1876_v7  ;;  %v1785_v16 = vpop.f32.mrf.mxu2 }
 0x289   : > { %v1860_v42 = vmul.f32 %v1824_v35, %v1785_v16 }
 0x28a   : > { %2214 = vmatpush.msrb.mxu1 %v1864_v8  ;;  %v1987_v8 = vld [vmem:[%s4945_s6 + $0x28] sm:$0xff] }
 0x28c   : > { %2215 = vmatpush.msrb.mxu1 %v1861_v18 }
 0x28e   : > { %2216 = vmatpush.msrb.mxu1 %v1849_v24  ;;  %v1769_v15 = vpop.f32.mrf.mxu1  ;;  %v1988_v24 = vld [vmem:[%s4945_s6 + $0x30] sm:$0xff] }
 0x28f   : > { %v1871_v44 = vmul.f32 %v1823_v11, %v1769_v15 }
 0x290   : > { %2217 = vmatpush.msrb.mxu1 %v1858_v50  ;;  %v1788_v55 = vpop.f32.mrf.mxu2 }
 0x291   : > { %v1872_v39 = vmul.f32 %v1824_v35, %v1788_v55  ;;  %v1989_v55 = vld [vmem:[%s4945_s6 + $0x38] sm:$0xff] }
 0x292   : > { %2218 = vmatpush.msrb.mxu1 %v1846_v51 }
 0x294   : > { %2219 = vmatpush.msrb.mxu1 %v1855_v54 }
 0x296   : > { %2220 = vmatpush.msrb.mxu1 %v1843_v61  ;;  %v1771_v47 = vpop.f32.mrf.mxu1 }
 0x297   : > { %v1883_v49 = vmul.f32 %v1823_v11, %v1771_v47 }
 0x298   : > { %2221 = vmatpush.msrb.mxu1 %v1852_v56  ;;  %v1790_v48 = vpop.f32.mrf.mxu2 }
 0x299   : > { %v1884_v46 = vmul.f32 %v1824_v35, %v1790_v48 }
 0x29a   : > { %2222 = vmatpush.msrb.mxu1 %v1840_v19 }
 0x29b   : > { %1998 = vmatpush.xpose.msra.mxu0 %v1884_v46 }
 0x29f   : > { %1999 = vmatpush.xpose.msra.mxu0 %v1872_v39 }
 0x2a3   : > { %2000 = vmatpush.xpose.msra.mxu0 %v1881_v31 }
 0x2a7   : > { %2001 = vmatpush.xpose.msra.mxu0 %v1869_v45 }
 0x2ab   : > { %2002 = vmatpush.xpose.msra.mxu0 %v1878_v57 }
 0x2af   : > { %2003 = vmatpush.xpose.msra.mxu0 %v1866_v29 }
 0x2b3   : > { %2004 = vmatpush.xpose.msra.mxu0 %v1875_v63 }
 0x2b7   : > { %2005 = vmatpush.xpose.msra.mxu0 %v1863_v32 }
 0x2bb   : > { %2006 = vmatpush.xpose.msra.mxu0 %v1860_v42 }
 0x2bf   : > { %2007 = vmatpush.xpose.msra.mxu0 %v1848_v37  ;;  %v1991_v37 = vld [vmem:[%s4945_s6 + $0x48] sm:$0xff] }
 0x2c3   : > { %2008 = vmatpush.xpose.msra.mxu0 %v1857_v0 }
 0x2c7   : > { %2009 = vmatpush.xpose.msra.mxu0 %v1845_v38 }
 0x2cb   : > { %2010 = vmatpush.xpose.msra.mxu0 %v1854_v34 }
 0x2cf   : > { %2011 = vmatpush.xpose.msra.mxu0 %v1842_v9 }
 0x2d3   : > { %2012 = vmatpush.xpose.msra.mxu0 %v1851_v40 }
 0x2d7   : > { %2013 = vmatpush.xpose.msra.mxu0 %v1839_v36  ;;  %v1992_v36 = vld [vmem:[%s4945_s6 + $0x50] sm:$0xff] }
 0x2da   : > { %2014 = vmatmul.f32.vlgmr.msra.gmra.mxu0 %v1838_v1 }
 0x2e2   : > { %2017 = vmatmul.f32.gmra.mxu0 %v1850_v30 }
 0x2ea   : > { %2020 = vmatmul.f32.gmra.mxu0 %v1841_v26 }
 0x2f2   : > { %2023 = vmatmul.f32.gmra.mxu0 %v1853_v21 }
 0x2fa   : > { %2026 = vmatmul.f32.gmra.mxu0 %v1844_v22 }
 0x302   : > { %2029 = vmatmul.f32.gmra.mxu0 %v1856_v60 }
 0x30a   : > { %2032 = vmatmul.f32.gmra.mxu0 %v1847_v20 }
 0x312   : > { %2035 = vmatmul.f32.gmra.mxu0 %v1859_v28 }
 0x31a   : > { %2038 = vmatmul.f32.gmra.mxu0 %v4401_v23  ;;  %v1982_v23 = vld [vmem:[%s4944_s27] sm:$0xff]  ;;  %s4946_s27 = scalar_lea.vmem %s4864_s7, %s4075_s1 }
 0x322   : > { %2041 = vmatmul.f32.gmra.mxu0 %v1874_v12 }
 0x32a   : > { %2044 = vmatmul.f32.gmra.mxu0 %v4404_v17  ;;  %v1983_v17 = vld [vmem:[%s4945_s6 + $0x8] sm:$0xff] }
 0x332   : > { %2047 = vmatmul.f32.gmra.mxu0 %v4413_v25 }
 0x33a   : > { %2050 = vmatmul.f32.gmra.mxu0 %v4447_v53 }
 0x342   : > { %2053 = vmatmul.f32.gmra.mxu0 %v4454_v58 }
 0x34a   : > { %2056 = vmatmul.f32.gmra.mxu0 %v1871_v44  ;;  %v1994_v44 = vld [vmem:[%s4945_s6 + $0x60] sm:$0xff] }
 0x352   : > { %2059 = vmatmul.f32.gmra.mxu0 %v1883_v49 }
 0x357   : > { %v2015_v13 = vpop.f32.mrf.mxu0 }
 0x358   : > { %v2016_v10 = vadd.f32 %v2015_v13, %v1982_v23 }
 0x35a   : > { %2063 = vmax.xlane.f32.xlu2 %v2016_v10 }
 0x35f   : > { %v2018_v25 = vpop.f32.mrf.mxu0 }
 0x360   : > { %v2019_v53 = vadd.f32 %v2018_v25, %v1983_v17  ;;  %v1995_v25 = vld [vmem:[%s4945_s6 + $0x68] sm:$0xff] }
 0x362   : > { %2065 = vmax.xlane.f32.xlu0 %v2019_v53 }
 0x367   : > { %v2021_v58 = vpop.f32.mrf.mxu0 }
 0x368   : > { %v2022_v2 = vadd.f32 %v2021_v58, %v1984_v41 }
 0x36a   : > { %2067 = vmax.xlane.f32.xlu1 %v2022_v2 }
 0x36f   : > { %v2024_v5 = vpop.f32.mrf.mxu0 }
 0x370   : > { %v2025_v6 = vadd.f32 %v2024_v5, %v1985_v3 }
 0x372   : > { %2069 = vmax.xlane.f32.xlu2 %v2025_v6 }
 0x377   : > { %v2027_v4 = vpop.f32.mrf.mxu0 }
 0x378   : > { %v2028_v7 = vadd.f32 %v2027_v4, %v1986_v27 }
 0x37a   : > { %2071 = vmax.xlane.f32.xlu0 %v2028_v7 }
 0x37f   : > { %v2030_v16 = vpop.f32.mrf.mxu0 }
 0x380   : > { %v2031_v18 = vadd.f32 %v2030_v16, %v1987_v8 }
 0x382   : > { %2073 = vmax.xlane.f32.xlu1 %v2031_v18 }
 0x387   : > { %v2033_v50 = vpop.f32.mrf.mxu0 }
 0x388   : > { %v4518_v51 = vadd.f32 %v2033_v50, %v1988_v24 }
 0x38a   : > { %2075 = vmax.xlane.f32.xlu2 %v4518_v51 }
 0x38f   : > { %v2036_v54 = vpop.f32.mrf.mxu0 }
 0x390   : > { %v4524_v61 = vadd.f32 %v2036_v54, %v1989_v55 }
 0x392   : > { %2077 = vmax.xlane.f32.xlu1 %v4524_v61 }
 0x397   : > { %v2039_v35 = vpop.f32.mrf.mxu0 }
 0x398   : > { %v4533_v62 = vadd.f32 %v2039_v35, %v1990_v33 }
 0x39f   : > { %v2042_v31 = vpop.f32.mrf.mxu0 }
 0x3a0   : > { %v4542_v34 = vadd.f32 %v2042_v31, %v1991_v37 }
 0x3a7   : > { %v2045_v42 = vpop.f32.mrf.mxu0 }
 0x3a8   : > { %v4551_v21 = vadd.f32 %v2045_v42, %v1992_v36 }
 0x3af   : > { %v2048_v1 = vpop.f32.mrf.mxu0 }
 0x3b0   : > { %v4560_v28 = vadd.f32 %v2048_v1, %v1993_v59  ;;  %v2306_v59 = vld [vmem:[%s4090_s30 + $0x10] sm:$0xff] }
 0x3b7   : > { %v2051_v20 = vpop.f32.mrf.mxu0 }
 0x3b8   : > { %v4570_v23 = vadd.f32 %v2051_v20, %v1994_v44  ;;  %v2340_v44 = vunpack.c.3.s8 %v2306_v59 }
 0x3cd   : > { %v2064_v56 = vpop.xlane.xlu2 %2063 }
 0x3ce   : > { %v2095_v19 = vsub.f32 %v2016_v10, %v2064_v56  ;;  %v2054_v10 = vpop.f32.mrf.mxu0 }
 0x3cf   : > { %v4580_v58 = vadd.f32 %v2054_v10, %v1995_v25 }
 0x3d0   : > { %v2111_v48 = vmul.f32 1.442695, %v2095_v19 }
 0x3d2   : > { %3497 = vpow2.f32 %v2111_v48 }
 0x3d5   : > { %v2066_v46 = vpop.xlane.xlu0 %2065 }
 0x3d6   : > { %v2096_v39 = vsub.f32 %v2019_v53, %v2066_v46  ;;  %v2057_v5 = vpop.f32.mrf.mxu0 }
 0x3d8   : > { %v4527_v43 = vpop.eup %3497  ;;  %v2113_v45 = vmul.f32 1.442695, %v2096_v39 }
 0x3d9   : > { %2143 = vadd.xlane.f32.xlu0 %v4527_v43 }
 0x3da   : > { %3499 = vpow2.f32 %v2113_v45 }
 0x3dd   : > { %v2068_v57 = vpop.xlane.xlu1 %2067 }
 0x3de   : > { %v2097_v29 = vsub.f32 %v2022_v2, %v2068_v57  ;;  %v2060_v8 = vpop.f32.mrf.mxu0 }
 0x3e0   : > { %v4535_v63 = vpop.eup %3499  ;;  %v2115_v32 = vmul.f32 1.442695, %v2097_v29 }
 0x3e1   : > { %2145 = vadd.xlane.f32.xlu2 %v4535_v63  ;;  %2079 = vmax.xlane.f32.xlu0 %v4533_v62 }
 0x3e2   : > { %3501 = vpow2.f32 %v2115_v32 }
 0x3e5   : > { %v2070_v0 = vpop.xlane.xlu2 %2069 }
 0x3e6   : > { %v2098_v38 = vsub.f32 %v2025_v6, %v2070_v0  ;;  %v1996_v6 = vld [vmem:[%s4945_s6 + $0x70] sm:$0xff] }
 0x3e7   : > { %v4589_v27 = vadd.f32 %v2057_v5, %v1996_v6 }
 0x3e8   : > { %v4544_v9 = vpop.eup %3501  ;;  %v2117_v40 = vmul.f32 1.442695, %v2098_v38 }
 0x3e9   : > { %2147 = vadd.xlane.f32.xlu1 %v4544_v9  ;;  %2081 = vmax.xlane.f32.xlu2 %v4542_v34 }
 0x3ea   : > { %3503 = vpow2.f32 %v2117_v40 }
 0x3ed   : > { %v2072_v30 = vpop.xlane.xlu0 %2071 }
 0x3ee   : > { %v2099_v26 = vsub.f32 %v2028_v7, %v2072_v30  ;;  %v1997_v7 = vld [vmem:[%s4945_s6 + $0x78] sm:$0xff] }
 0x3ef   : > { %v4598_v16 = vadd.f32 %v2060_v8, %v1997_v7  ;;  %v2404_v7 = vcvt.s32.f32 %v2340_v44  ;;  %v2337_v8 = vunpack.c.0.s8 %v2306_v59 }
 0x3f0   : > { %v4553_v22 = vpop.eup %3503  ;;  %v2119_v60 = vmul.f32 1.442695, %v2099_v26 }
 0x3f1   : > { %2083 = vmax.xlane.f32.xlu1 %v4551_v21  ;;  %2149 = vadd.xlane.f32.xlu0 %v4553_v22 }
 0x3f2   : > { %3505 = vpow2.f32 %v2119_v60  ;;  %v2307_v60 = vld [vmem:[%s4090_s30 + $0x18] sm:$0xff] }
 0x3f3   : > { %v2344_v20 = vunpack.c.3.s8 %v2307_v60 }
 0x3f5   : > { %v2074_v11 = vpop.xlane.xlu1 %2073 }
 0x3f6   : > { %v2100_v52 = vsub.f32 %v2031_v18, %v2074_v11  ;;  %v2343_v11 = vunpack.c.2.s8 %v2307_v60 }
 0x3f8   : > { %v4562_v12 = vpop.eup %3505  ;;  %v2121_v15 = vmul.f32 1.442695, %v2100_v52  ;;  %v2341_v52 = vunpack.c.0.s8 %v2307_v60 }
 0x3f9   : > { %2151 = vadd.xlane.f32.xlu2 %v4562_v12  ;;  %2085 = vmax.xlane.f32.xlu0 %v4560_v28 }
 0x3fa   : > { %3507 = vpow2.f32 %v2121_v15  ;;  %v2339_v15 = vunpack.c.2.s8 %v2306_v59 }
 0x3fc   : > { %v2403_v6 = vcvt.s32.f32 %v2339_v15 }
 0x3fd   : > { %v2076_v47 = vpop.xlane.xlu2 %2075 }
 0x3fe   : > { %v2101_v49 = vsub.f32 %v4518_v51, %v2076_v47  ;;  %v2407_v47 = vcvt.s32.f32 %v2343_v11 }
 0x400   : > { %v4572_v13 = vpop.eup %3507  ;;  %v2123_v17 = vmul.f32 1.442695, %v2101_v49  ;;  %v2408_v49 = vcvt.s32.f32 %v2344_v20 }
 0x401   : > { %2153 = vadd.xlane.f32.xlu1 %v4572_v13  ;;  %2087 = vmax.xlane.f32.xlu2 %v4570_v23 }
 0x402   : > { %3509 = vpow2.f32 %v2123_v17  ;;  %v2464_v5 = vpack.c.bf16 %v2408_v49, %v2407_v47 }
 0x404   : > { %2489 = vmatpush.bf16.msra.mxu2 %v2464_v5 }
 0x405   : > { %v2078_v53 = vpop.xlane.xlu1 %2077 }
 0x406   : > { %v2102_v41 = vsub.f32 %v4524_v61, %v2078_v53 }
 0x408   : > { %v4582_v2 = vpop.eup %3509  ;;  %v2125_v3 = vmul.f32 1.442695, %v2102_v41  ;;  %v4627_v41 = vld [vmem:[%s4090_s30 + $0x38] sm:$0xff] }
 0x409   : > { %2089 = vmax.xlane.f32.xlu1 %v4580_v58  ;;  %2155 = vadd.xlane.f32.xlu0 %v4582_v2 }
 0x40a   : > { %3511 = vpow2.f32 %v2125_v3 }
 0x410   : > { %v4591_v4 = vpop.eup %3511 }
 0x411   : > { %2157 = vadd.xlane.f32.xlu2 %v4591_v4  ;;  %2091 = vmax.xlane.f32.xlu0 %v4589_v27 }
 0x419   : > { %2093 = vmax.xlane.f32.xlu2 %v4598_v16 }
 0x44c   : > { %v2144_v18 = vpop.xlane.xlu0 %2143 }
 0x44d   : > { %3513 = vrcp.f32 %v2144_v18  ;;  %v2338_v18 = vunpack.c.1.s8 %v2306_v59 }
 0x453   : > { %v3514_v24 = vpop.eup %3513 }
 0x454   : > { %v2080_v50 = vpop.xlane.xlu0 %2079  ;;  %v2146_v51 = vpop.xlane.xlu2 %2145  ;;  %v2191_v55 = vmul.f32 %v3514_v24, %v4527_v43 }
 0x455   : > { %v2103_v54 = vsub.f32 %v4533_v62, %v2080_v50  ;;  %3515 = vrcp.f32 %v2146_v51 }
 0x456   : > { %2223 = vmatmul.f32.vlgmr.msrb.gmra.mxu1 %v2191_v55  ;;  %v2360_v55 = vunpack.c.3.s8 %v4627_v41 }
 0x457   : > { %v2127_v61 = vmul.f32 1.442695, %v2103_v54  ;;  %v2305_v54 = vld [vmem:[%s4090_s30 + $0x8] sm:$0xff] }
 0x459   : > { %3517 = vpow2.f32 %v2127_v61  ;;  %v2424_v61 = vcvt.s32.f32 %v2360_v55  ;;  %v2309_v55 = vld [vmem:[%s4090_s30 + $0x28] sm:$0xff] }
 0x45b   : > { %v3516_v56 = vpop.eup %3515 }
 0x45c   : > { %v2148_v35 = vpop.xlane.xlu1 %2147  ;;  %v2082_v19 = vpop.xlane.xlu2 %2081  ;;  %v2192_v48 = vmul.f32 %v3516_v56, %v4535_v63  ;;  %v2462_v56 = vpack.c.bf16 %v2404_v7, %v2403_v6 }
 0x45d   : > { %3519 = vrcp.f32 %v2148_v35  ;;  %v2104_v46 = vsub.f32 %v4542_v34, %v2082_v19  ;;  %v2401_v35 = vcvt.s32.f32 %v2337_v8 }
 0x45e   : > { %2226 = vmatmul.f32.gmra.mxu1 %v2192_v48  ;;  %v2402_v48 = vcvt.s32.f32 %v2338_v18 }
 0x45f   : > { %v4605_v39 = vpop.eup %3517  ;;  %v2129_v31 = vmul.f32 1.442695, %v2104_v46  ;;  %v2335_v46 = vunpack.c.2.s8 %v2305_v54 }
 0x460   : > { %2159 = vadd.xlane.f32.xlu1 %v4605_v39 }
 0x461   : > { %3521 = vpow2.f32 %v2129_v31  ;;  %v2336_v31 = vunpack.c.3.s8 %v2305_v54 }
 0x463   : > { %v3520_v43 = vpop.eup %3519 }
 0x464   : > { %v2084_v45 = vpop.xlane.xlu1 %2083  ;;  %v2150_v33 = vpop.xlane.xlu0 %2149  ;;  %v2193_v57 = vmul.f32 %v3520_v43, %v4544_v9 }
 0x465   : > { %v2105_v29 = vsub.f32 %v4551_v21, %v2084_v45  ;;  %3523 = vrcp.f32 %v2150_v33 }
 0x466   : > { %2229 = vmatmul.f32.gmra.mxu1 %v2193_v57 }
 0x467   : > { %v4610_v62 = vpop.eup %3521  ;;  %v2131_v63 = vmul.f32 1.442695, %v2105_v29 }
 0x468   : > { %2161 = vadd.xlane.f32.xlu0 %v4610_v62 }
 0x469   : > { %3525 = vpow2.f32 %v2131_v63 }
 0x46b   : > { %v3524_v32 = vpop.eup %3523 }
 0x46c   : > { %v2086_v42 = vpop.xlane.xlu0 %2085  ;;  %v2152_v37 = vpop.xlane.xlu2 %2151  ;;  %v2194_v0 = vmul.f32 %v3524_v32, %v4553_v22 }
 0x46d   : > { %v2106_v38 = vsub.f32 %v4560_v28, %v2086_v42  ;;  %3527 = vrcp.f32 %v2152_v37  ;;  %v2342_v28 = vunpack.c.1.s8 %v2307_v60  ;;  %v2461_v42 = vpack.c.bf16 %v2402_v48, %v2401_v35 }
 0x46e   : > { %2232 = vmatmul.f32.gmra.mxu1 %v2194_v0  ;;  %v2399_v37 = vcvt.s32.f32 %v2335_v46  ;;  %v2400_v0 = vcvt.s32.f32 %v2336_v31  ;;  %v2349_v46 = vunpack.c.0.s8 %v2309_v55  ;;  %v2350_v31 = vunpack.c.1.s8 %v2309_v55 }
 0x46f   : > { %v4615_v34 = vpop.eup %3525  ;;  %v2133_v9 = vmul.f32 1.442695, %v2106_v38  ;;  %v2406_v53 = vcvt.s32.f32 %v2342_v28  ;;  %v2310_v28 = vld [vmem:[%s4090_s30 + $0x30] sm:$0xff] }
 0x470   : > { %2163 = vadd.xlane.f32.xlu1 %v4615_v34  ;;  %v2355_v49 = vunpack.c.2.s8 %v2310_v28  ;;  %v2353_v6 = vunpack.c.0.s8 %v2310_v28  ;;  %v2354_v8 = vunpack.c.1.s8 %v2310_v28 }
 0x471   : > { %3529 = vpow2.f32 %v2133_v9  ;;  %v2460_v9 = vpack.c.bf16 %v2400_v0, %v2399_v37 }
 0x473   : > { %v3528_v40 = vpop.eup %3527 }
 0x474   : > { %v2154_v36 = vpop.xlane.xlu1 %2153  ;;  %v2088_v1 = vpop.xlane.xlu2 %2087  ;;  %v2195_v30 = vmul.f32 %v3528_v40, %v4562_v12 }
 0x475   : > { %3531 = vrcp.f32 %v2154_v36  ;;  %v2107_v26 = vsub.f32 %v4570_v23, %v2088_v1  ;;  %v2405_v23 = vcvt.s32.f32 %v2341_v52  ;;  %v2304_v52 = vld [vmem:[%s4090_s30] sm:$0xff] }
 0x476   : > { %2235 = vmatmul.f32.gmra.mxu1 %v2195_v30  ;;  %v2332_v47 = vunpack.c.3.s8 %v2304_v52  ;;  %v2330_v5 = vunpack.c.1.s8 %v2304_v52 }
 0x477   : > { %v4620_v21 = vpop.eup %3529  ;;  %v2135_v22 = vmul.f32 1.442695, %v2107_v26  ;;  %v2463_v51 = vpack.c.bf16 %v2406_v53, %v2405_v23  ;;  %v2333_v26 = vunpack.c.0.s8 %v2305_v54  ;;  %v2356_v23 = vunpack.c.3.s8 %v2310_v28 }
 0x478   : > { %2165 = vadd.xlane.f32.xlu2 %v4620_v21 }
 0x479   : > { %3533 = vpow2.f32 %v2135_v22  ;;  %2490 = vmatpush.bf16.msra.mxu2 %v2463_v51  ;;  %v2334_v22 = vunpack.c.1.s8 %v2305_v54  ;;  %v2397_v60 = vcvt.s32.f32 %v2333_v26  ;;  %v2420_v53 = vcvt.s32.f32 %v2356_v23 }
 0x47a   : > { %v2417_v51 = vcvt.s32.f32 %v2353_v6 }
 0x47b   : > { %v3532_v12 = vpop.eup %3531  ;;  %v2398_v59 = vcvt.s32.f32 %v2334_v22 }
 0x47c   : > { %v2090_v10 = vpop.xlane.xlu1 %2089  ;;  %v2156_v17 = vpop.xlane.xlu0 %2155  ;;  %v2196_v25 = vmul.f32 %v3532_v12, %v4572_v13  ;;  %v2359_v13 = vunpack.c.2.s8 %v4627_v41  ;;  %v2331_v12 = vunpack.c.2.s8 %v2304_v52 }
 0x47d   : > { %v2108_v3 = vsub.f32 %v4580_v58, %v2090_v10  ;;  %3535 = vrcp.f32 %v2156_v17  ;;  %2491 = vmatpush.bf16.msra.mxu2 %v2462_v56  ;;  %v2459_v15 = vpack.c.bf16 %v2398_v59, %v2397_v60  ;;  %v2396_v17 = vcvt.s32.f32 %v2332_v47 }
 0x47e   : > { %2238 = vmatmul.f32.gmra.mxu1 %v2196_v25  ;;  %v2423_v58 = vcvt.s32.f32 %v2359_v13  ;;  %v2395_v10 = vcvt.s32.f32 %v2331_v12  ;;  %v2419_v25 = vcvt.s32.f32 %v2355_v49  ;;  %v2418_v13 = vcvt.s32.f32 %v2354_v8 }
 0x47f   : > { %v4630_v24 = vpop.eup %3533  ;;  %v2137_v50 = vmul.f32 1.442695, %v2108_v3  ;;  %v2329_v3 = vunpack.c.0.s8 %v2304_v52 }
 0x480   : > { %2167 = vadd.xlane.f32.xlu0 %v4630_v24  ;;  %v2472_v43 = vpack.c.bf16 %v2424_v61, %v2423_v58  ;;  %v2470_v7 = vpack.c.bf16 %v2420_v53, %v2419_v25  ;;  %v2351_v58 = vunpack.c.2.s8 %v2309_v55  ;;  %v2352_v61 = vunpack.c.3.s8 %v2309_v55 }
 0x481   : > { %3537 = vpow2.f32 %v2137_v50  ;;  %2492 = vmatpush.bf16.msra.mxu2 %v2461_v42  ;;  %v2393_v18 = vcvt.s32.f32 %v2329_v3  ;;  %v2394_v50 = vcvt.s32.f32 %v2330_v5  ;;  %v2469_v56 = vpack.c.bf16 %v2418_v13, %v2417_v51 }
 0x482   : > { %2508 = vmatpush.bf16.msrb.mxu3 %v2472_v43  ;;  %v2415_v35 = vcvt.s32.f32 %v2351_v58  ;;  %v2413_v43 = vcvt.s32.f32 %v2349_v46 }
 0x483   : > { %v3536_v19 = vpop.eup %3535  ;;  %v2457_v54 = vpack.c.bf16 %v2394_v50, %v2393_v18 }
 0x484   : > { %v2092_v45 = vpop.xlane.xlu0 %2091  ;;  %v2158_v33 = vpop.xlane.xlu2 %2157  ;;  %v2197_v57 = vmul.f32 %v3536_v19, %v4582_v2  ;;  %v2416_v19 = vcvt.s32.f32 %v2352_v61 }
 0x485   : > { %v2109_v29 = vsub.f32 %v4589_v27, %v2092_v45  ;;  %3539 = vrcp.f32 %v2158_v33  ;;  %2493 = vmatpush.bf16.msra.mxu2 %v2460_v9  ;;  %v2414_v45 = vcvt.s32.f32 %v2350_v31  ;;  %v2308_v33 = vld [vmem:[%s4090_s30 + $0x20] sm:$0xff] }
 0x486   : > { %2241 = vmatmul.f32.gmra.mxu1 %v2197_v57  ;;  %v2468_v48 = vpack.c.bf16 %v2416_v19, %v2415_v35  ;;  %v2346_v9 = vunpack.c.1.s8 %v2308_v33 }
 0x487   : > { %v4638_v63 = vpop.eup %3537  ;;  %v2139_v32 = vmul.f32 1.442695, %v2109_v29  ;;  %v2467_v57 = vpack.c.bf16 %v2414_v45, %v2413_v43  ;;  %v2347_v29 = vunpack.c.2.s8 %v2308_v33 }
 0x488   : > { %2169 = vadd.xlane.f32.xlu1 %v4638_v63 }
 0x489   : > { %3541 = vpow2.f32 %v2139_v32  ;;  %2494 = vmatpush.bf16.msra.mxu2 %v2459_v15  ;;  %v2348_v32 = vunpack.c.3.s8 %v2308_v33  ;;  %v2411_v42 = vcvt.s32.f32 %v2347_v29  ;;  %v2319_v29 = vld [vmem:[%s4090_s30 + $0x78] sm:$0xff] }
 0x48b   : > { %v3540_v38 = vpop.eup %3539  ;;  %v2412_v37 = vcvt.s32.f32 %v2348_v32  ;;  %v2313_v32 = vld [vmem:[%s4090_s30 + $0x48] sm:$0xff] }
 0x48c   : > { %v2094_v40 = vpop.xlane.xlu2 %2093  ;;  %v2198_v2 = vmul.f32 %v3540_v38, %v4591_v4  ;;  %v2357_v4 = vunpack.c.0.s8 %v4627_v41  ;;  %v2345_v38 = vunpack.c.0.s8 %v2308_v33 }
 0x48d   : > { %v2110_v27 = vsub.f32 %v4598_v16, %v2094_v40  ;;  %v2358_v16 = vunpack.c.1.s8 %v4627_v41  ;;  %v2458_v41 = vpack.c.bf16 %v2396_v17, %v2395_v10  ;;  %v2466_v0 = vpack.c.bf16 %v2412_v37, %v2411_v42  ;;  %v2315_v17 = vld [vmem:[%s4090_s30 + $0x58] sm:$0xff] }
 0x48e   : > { %2244 = vmatmul.f32.gmra.mxu1 %v2198_v2  ;;  %v2421_v11 = vcvt.s32.f32 %v2357_v4  ;;  %v2409_v40 = vcvt.s32.f32 %v2345_v38  ;;  %v2410_v2 = vcvt.s32.f32 %v2346_v9  ;;  %v2376_v25 = vunpack.c.3.s8 %v2315_v17 }
 0x48f   : > { %v4643_v36 = vpop.eup %3541  ;;  %v2141_v1 = vmul.f32 1.442695, %v2110_v27  ;;  %v2422_v20 = vcvt.s32.f32 %v2358_v16  ;;  %2495 = vmatpush.bf16.msra.mxu2 %v2458_v41  ;;  %v2374_v58 = vunpack.c.1.s8 %v2315_v17  ;;  %v2391_v37 = vunpack.c.2.s8 %v2319_v29 }
 0x490   : > { %2171 = vadd.xlane.f32.xlu2 %v4643_v36  ;;  %v2465_v27 = vpack.c.bf16 %v2410_v2, %v2409_v40  ;;  %v2440_v41 = vcvt.s32.f32 %v2376_v25  ;;  %v2367_v38 = vunpack.c.2.s8 %v2313_v32  ;;  %v2368_v9 = vunpack.c.3.s8 %v2313_v32 }
 0x491   : > { %3543 = vpow2.f32 %v2141_v1  ;;  %v2471_v44 = vpack.c.bf16 %v2422_v20, %v2421_v11  ;;  %v2455_v40 = vcvt.s32.f32 %v2391_v37 }
 0x493   : > { %2509 = vmatpush.bf16.msrb.mxu3 %v2471_v44  ;;  %2496 = vmatpush.bf16.msra.mxu2 %v2457_v54  ;;  %v2373_v54 = vunpack.c.0.s8 %v2315_v17 }
 0x495   : > { %v2437_v61 = vcvt.s32.f32 %v2373_v54 }
 0x497   : > { %v4646_v30 = vpop.eup %3543  ;;  %2510 = vmatpush.bf16.msrb.mxu3 %v2470_v7 }
 0x498   : > { %2173 = vadd.xlane.f32.xlu0 %v4646_v30 }
 0x49b   : > { %2511 = vmatpush.bf16.msrb.mxu3 %v2469_v56  ;;  %v2314_v56 = vld [vmem:[%s4090_s30 + $0x50] sm:$0xff] }
 0x49c   : > { %v2371_v19 = vunpack.c.2.s8 %v2314_v56  ;;  %v2369_v43 = vunpack.c.0.s8 %v2314_v56  ;;  %v2370_v45 = vunpack.c.1.s8 %v2314_v56 }
 0x49e   : > { %v2433_v33 = vcvt.s32.f32 %v2369_v43  ;;  %v2316_v43 = vld [vmem:[%s4090_s30 + $0x60] sm:$0xff] }
 0x49f   : > { %2512 = vmatpush.bf16.msrb.mxu3 %v2468_v48  ;;  %v2372_v48 = vunpack.c.3.s8 %v2314_v56 }
 0x4a1   : > { %v2436_v46 = vcvt.s32.f32 %v2372_v48 }
 0x4a3   : > { %2513 = vmatpush.bf16.msrb.mxu3 %v2467_v57  ;;  %v2434_v57 = vcvt.s32.f32 %v2370_v45 }
 0x4a5   : > { %v2477_v42 = vpack.c.bf16 %v2434_v57, %v2433_v33  ;;  %v2379_v33 = vunpack.c.2.s8 %v2316_v43  ;;  %v2380_v57 = vunpack.c.3.s8 %v2316_v43 }
 0x4a7   : > { %2514 = vmatpush.bf16.msrb.mxu3 %v2466_v0  ;;  %v2392_v0 = vunpack.c.3.s8 %v2319_v29  ;;  %v2443_v37 = vcvt.s32.f32 %v2379_v33 }
 0x4a9   : > { %v2456_v2 = vcvt.s32.f32 %v2392_v0  ;;  %v2444_v0 = vcvt.s32.f32 %v2380_v57 }
 0x4ab   : > { %2515 = vmatpush.bf16.msrb.mxu3 %v2465_v27  ;;  %v2431_v27 = vcvt.s32.f32 %v2367_v38 }
 0x4d3   : > { %v2224_v1 = vpop.f32.mrf.mxu1  ;;  %v2160_v26 = vpop.xlane.xlu1 %2159 }
 0x4d4   : > { %3545 = vrcp.f32 %v2160_v26  ;;  %v2488_v26 = vpack.c.bf16 %v2456_v2, %v2455_v40  ;;  %v2482_v40 = vpack.c.bf16 %v2444_v0, %v2443_v37  ;;  %v3588_v37 = vld [vmem:[#allocation2 + $0x8] sm:$0xff] }
 0x4d6   : > { %2546 = vmatpush.bf16.msra.mxu3 %v2488_v26 }
 0x4da   : > { %v3546_v22 = vpop.eup %3545 }
 0x4db   : > { %v2227_v4 = vpop.f32.mrf.mxu1  ;;  %v2162_v16 = vpop.xlane.xlu0 %2161  ;;  %v2199_v60 = vmul.f32 %v3546_v22, %v4605_v39  ;;  %v2389_v22 = vunpack.c.0.s8 %v2319_v29 }
 0x4dc   : > { %v2321_v59 = vpack.c.bf16 %v2227_v4, %v2224_v1  ;;  %3547 = vrcp.f32 %v2162_v16  ;;  %v2432_v1 = vcvt.s32.f32 %v2368_v9  ;;  %v2390_v4 = vunpack.c.1.s8 %v2319_v29 }
 0x4dd   : > { %2247 = vmatmul.f32.gmra.mxu1 %v2199_v60  ;;  %v2365_v16 = vunpack.c.0.s8 %v2313_v32 }
 0x4de   : > { %2497 = vmatmul.bf16.vlgmr.msra.gmra.mxu2 %v2321_v59  ;;  %v2476_v60 = vpack.c.bf16 %v2432_v1, %v2431_v27  ;;  %v2366_v59 = vunpack.c.1.s8 %v2313_v32  ;;  %v2377_v32 = vunpack.c.0.s8 %v2316_v43 }
 0x4e0   : > { %v2441_v38 = vcvt.s32.f32 %v2377_v32 }
 0x4e2   : > { %v3548_v11 = vpop.eup %3547 }
 0x4e3   : > { %v2164_v20 = vpop.xlane.xlu1 %2163  ;;  %v2230_v52 = vpop.f32.mrf.mxu1  ;;  %v2200_v28 = vmul.f32 %v3548_v11, %v4610_v62  ;;  %v2375_v62 = vunpack.c.2.s8 %v2315_v17  ;;  %v2453_v11 = vcvt.s32.f32 %v2389_v22 }
 0x4e4   : > { %3549 = vrcp.f32 %v2164_v20  ;;  %v2454_v20 = vcvt.s32.f32 %v2390_v4 }
 0x4e5   : > { %2250 = vmatmul.f32.gmra.mxu1 %v2200_v28  ;;  %v2439_v53 = vcvt.s32.f32 %v2375_v62 }
 0x4e7   : > { %v2480_v5 = vpack.c.bf16 %v2440_v41, %v2439_v53 }
 0x4e9   : > { %2527 = vmatpush.bf16.msrb.mxu2 %v2480_v5 }
 0x4ea   : > { %v3550_v15 = vpop.eup %3549 }
 0x4eb   : > { %v2233_v44 = vpop.f32.mrf.mxu1  ;;  %v2166_v12 = vpop.xlane.xlu2 %2165  ;;  %v2201_v47 = vmul.f32 %v3550_v15, %v4615_v34  ;;  %v2430_v15 = vcvt.s32.f32 %v2366_v59 }
 0x4ec   : > { %v2322_v49 = vpack.c.bf16 %v2233_v44, %v2230_v52  ;;  %3551 = vrcp.f32 %v2166_v12  ;;  %v2429_v52 = vcvt.s32.f32 %v2365_v16  ;;  %v2318_v44 = vld [vmem:[%s4090_s30 + $0x70] sm:$0xff]  ;;  %v2312_v12 = vld [vmem:[%s4090_s30 + $0x40] sm:$0xff] }
 0x4ed   : > { %2253 = vmatmul.f32.gmra.mxu1 %v2201_v47  ;;  %v2487_v47 = vpack.c.bf16 %v2454_v20, %v2453_v11  ;;  %v2364_v17 = vunpack.c.3.s8 %v2312_v12  ;;  %v2385_v5 = vunpack.c.0.s8 %v2318_v44 }
 0x4ee   : > { %2516 = vmatmul.bf16.vlgmr.msrb.gmra.mxu3 %v2322_v49  ;;  %v2387_v49 = vunpack.c.2.s8 %v2318_v44 }
 0x4ef   : > { %2547 = vmatpush.bf16.msra.mxu3 %v2487_v47  ;;  %v2428_v41 = vcvt.s32.f32 %v2364_v17 }
 0x4f0   : > { %v2451_v62 = vcvt.s32.f32 %v2387_v49 }
 0x4f2   : > { %v3552_v39 = vpop.eup %3551 }
 0x4f3   : > { %v2168_v23 = vpop.xlane.xlu0 %2167  ;;  %v2202_v10 = vmul.f32 %v3552_v39, %v4620_v21  ;;  %v2388_v39 = vunpack.c.3.s8 %v2318_v44 }
 0x4f4   : > { %3553 = vrcp.f32 %v2168_v23  ;;  %v2363_v23 = vunpack.c.2.s8 %v2312_v12 }
 0x4f5   : > { %2256 = vmatmul.f32.gmra.mxu1 %v2202_v10  ;;  %v2475_v10 = vpack.c.bf16 %v2430_v15, %v2429_v52  ;;  %v2452_v25 = vcvt.s32.f32 %v2388_v39 }
 0x4f6   : > { %v2427_v53 = vcvt.s32.f32 %v2363_v23 }
 0x4fa   : > { %v3554_v3 = vpop.eup %3553 }
 0x4fb   : > { %v2170_v6 = vpop.xlane.xlu1 %2169  ;;  %v2203_v34 = vmul.f32 %v3554_v3, %v4630_v24  ;;  %v4664_v24 = vpop.f32.mrf.mxu1  ;;  %v2486_v3 = vpack.c.bf16 %v2452_v25, %v2451_v62  ;;  %v3479_v25 = vld [vmem:[%s4946_s27] ss:$0 sm:$0xff] }
 0x4fc   : > { %3555 = vrcp.f32 %v2170_v6  ;;  %v2386_v6 = vunpack.c.1.s8 %v2318_v44 }
 0x4fd   : > { %2259 = vmatmul.f32.gmra.mxu1 %v2203_v34  ;;  %v2361_v34 = vunpack.c.0.s8 %v2312_v12  ;;  %2548 = vmatpush.bf16.msra.mxu3 %v2486_v3 }
 0x502   : > { %v3556_v7 = vpop.eup %3555 }
 0x503   : > { %v2172_v8 = vpop.xlane.xlu2 %2171  ;;  %v2204_v18 = vmul.f32 %v3556_v7, %v4638_v63  ;;  %v2438_v63 = vcvt.s32.f32 %v2374_v58  ;;  %v2474_v7 = vpack.c.bf16 %v2428_v41, %v2427_v53 }
 0x504   : > { %3557 = vrcp.f32 %v2172_v8  ;;  %v2362_v8 = vunpack.c.1.s8 %v2312_v12 }
 0x505   : > { %2262 = vmatmul.f32.gmra.mxu1 %v2204_v18  ;;  %v2479_v35 = vpack.c.bf16 %v2438_v63, %v2437_v61  ;;  %v2449_v18 = vcvt.s32.f32 %v2385_v5  ;;  %v3480_v5 = vld [vmem:[%s4947_s16] ss:$0 sm:$0xff] }
 0x507   : > { %2528 = vmatpush.bf16.msrb.mxu2 %v2479_v35 }
 0x50a   : > { %v3558_v21 = vpop.eup %3557 }
 0x50b   : > { %v2174_v50 = vpop.xlane.xlu0 %2173  ;;  %v2205_v51 = vmul.f32 %v3558_v21, %v4643_v36  ;;  %v2435_v36 = vcvt.s32.f32 %v2371_v19  ;;  %v2450_v21 = vcvt.s32.f32 %v2386_v6 }
 0x50c   : > { %3559 = vrcp.f32 %v2174_v50  ;;  %v2425_v50 = vcvt.s32.f32 %v2361_v34 }
 0x50d   : > { %2265 = vmatmul.f32.gmra.mxu1 %v2205_v51  ;;  %v2478_v31 = vpack.c.bf16 %v2436_v46, %v2435_v36  ;;  %v2426_v51 = vcvt.s32.f32 %v2362_v8 }
 0x50f   : > { %2529 = vmatpush.bf16.msrb.mxu2 %v2478_v31  ;;  %v2473_v63 = vpack.c.bf16 %v2426_v51, %v2425_v50 }
 0x512   : > { %v3560_v13 = vpop.eup %3559 }
 0x513   : > { %v2206_v55 = vmul.f32 %v3560_v13, %v4646_v30  ;;  %v4667_v30 = vpop.f32.mrf.mxu1  ;;  %2530 = vmatpush.bf16.msrb.mxu2 %v2477_v42  ;;  %v2317_v13 = vld [vmem:[%s4090_s30 + $0x68] sm:$0xff]  ;;  %v2378_v42 = vunpack.c.1.s8 %v2316_v43 }
 0x514   : > { %v2383_v54 = vunpack.c.2.s8 %v2317_v13  ;;  %v2384_v58 = vunpack.c.3.s8 %v2317_v13  ;;  %v2381_v48 = vunpack.c.0.s8 %v2317_v13  ;;  %v2382_v36 = vunpack.c.1.s8 %v2317_v13 }
 0x515   : > { %2268 = vmatmul.f32.gmra.mxu1 %v2206_v55  ;;  %v2485_v55 = vpack.c.bf16 %v2450_v21, %v2449_v18  ;;  %v2442_v9 = vcvt.s32.f32 %v2378_v42  ;;  %v2323_v4 = vpack.c.bf16 %v4667_v30, %v4664_v24  ;;  %v3585_v18 = vld [vmem:[#allocation2 + $0x10] sm:$0xff] }
 0x516   : > { %v2447_v56 = vcvt.s32.f32 %v2383_v54  ;;  %v2448_v35 = vcvt.s32.f32 %v2384_v58  ;;  %v2445_v46 = vcvt.s32.f32 %v2381_v48  ;;  %v2446_v31 = vcvt.s32.f32 %v2382_v36 }
 0x517   : > { %2531 = vmatpush.bf16.msrb.mxu2 %v2476_v60  ;;  %2549 = vmatpush.bf16.msra.mxu3 %v2485_v55  ;;  %v2481_v2 = vpack.c.bf16 %v2442_v9, %v2441_v38 }
 0x518   : > { %v2484_v19 = vpack.c.bf16 %v2448_v35, %v2447_v56  ;;  %v2483_v45 = vpack.c.bf16 %v2446_v31, %v2445_v46 }
 0x51b   : > { %v4671_v28 = vpop.f32.mrf.mxu1  ;;  %2532 = vmatpush.bf16.msrb.mxu2 %v2475_v10  ;;  %2550 = vmatpush.bf16.msra.mxu3 %v2484_v19 }
 0x51f   : > { %2533 = vmatpush.bf16.msrb.mxu2 %v2474_v7  ;;  %2551 = vmatpush.bf16.msra.mxu3 %v2483_v45  ;;  %v3587_v45 = vld [vmem:[#allocation2 + $0x18] sm:$0xff] }
 0x523   : > { %v2245_v61 = vpop.f32.mrf.mxu1  ;;  %2534 = vmatpush.bf16.msrb.mxu2 %v2473_v63  ;;  %2552 = vmatpush.bf16.msra.mxu3 %v2482_v40  ;;  %v3586_v63 = vld [vmem:[#allocation2] sm:$0xff] }
 0x524   : > { %v2324_v11 = vpack.c.bf16 %v2245_v61, %v4671_v28 }
 0x527   : > { %2553 = vmatpush.bf16.msra.mxu3 %v2481_v2 }
 0x55a   : > { %v2248_v29 = vpop.f32.mrf.mxu1 }
 0x561   : > { %v2498_v12 = vpop.f32.mrf.mxu2 }
 0x562   : > { %v2251_v27 = vpop.f32.mrf.mxu1 }
 0x563   : > { %v2325_v1 = vpack.c.bf16 %v2251_v27, %v2248_v29 }
 0x565   : > { %2502 = vmatmul.bf16.gmra.mxu2 %v2325_v1 }
 0x569   : > { %v2500_v47 = vpop.f32.mrf.mxu2 }
 0x56a   : > { %v2254_v26 = vpop.f32.mrf.mxu1 }
 0x571   : > { %v2517_v49 = vpop.f32.mrf.mxu3 }
 0x572   : > { %v2257_v22 = vpop.f32.mrf.mxu1  ;;  %v2518_v62 = vadd.f32 %v2517_v49, %v2498_v12 }
 0x573   : > { %v2326_v16 = vpack.c.bf16 %v2257_v22, %v2254_v26 }
 0x575   : > { %2521 = vmatmul.bf16.gmra.mxu3 %v2326_v16  ;;  %2535 = vmatmul.bf16.vlgmr.msrb.gmra.mxu2 %v2323_v4 }
 0x579   : > { %v2519_v30 = vpop.f32.mrf.mxu3 }
 0x57a   : > { %v2260_v60 = vpop.f32.mrf.mxu1  ;;  %v2520_v34 = vadd.f32 %v2519_v30, %v2500_v47 }
 0x582   : > { %v2263_v59 = vpop.f32.mrf.mxu1 }
 0x583   : > { %v2327_v20 = vpack.c.bf16 %v2263_v59, %v2260_v60 }
 0x585   : > { %2540 = vmatmul.bf16.gmra.mxu2 %v2327_v20  ;;  %2554 = vmatmul.bf16.vlgmr.msra.gmra.mxu3 %v2324_v11 }
 0x58a   : > { %v2266_v52 = vpop.f32.mrf.mxu1 }
 0x592   : > { %v2269_v15 = vpop.f32.mrf.mxu1 }
 0x593   : > { %v2328_v44 = vpack.c.bf16 %v2269_v15, %v2266_v52 }
 0x595   : > { %2559 = vmatmul.bf16.gmra.mxu3 %v2328_v44  ;;  %v2683_v44 = vld [vmem:[%s4061_s19 + $0x18] sm:$0xff] }
 0x596   : > { %v2701_v12 = vunpack.c.2.s8 %v2683_v44  ;;  %v2702_v47 = vunpack.c.3.s8 %v2683_v44 }
 0x598   : > { %v2717_v49 = vcvt.s32.f32 %v2701_v12 }
 0x5e8   : > { %v2503_v24 = vpop.f32.mrf.mxu2 }
 0x5f0   : > { %v2505_v39 = vpop.f32.mrf.mxu2 }
 0x5f8   : > { %v2522_v23 = vpop.f32.mrf.mxu3  ;;  %v2536_v10 = vpop.f32.mrf.mxu2 }
 0x5f9   : > { %v2537_v28 = vadd.f32 %v2536_v10, %v2518_v62  ;;  %v2523_v54 = vadd.f32 %v2522_v23, %v2503_v24  ;;  %v2718_v24 = vcvt.s32.f32 %v2702_v47  ;;  %v2700_v23 = vunpack.c.1.s8 %v2683_v44  ;;  %v2682_v62 = vld [vmem:[%s4061_s19 + $0x10] sm:$0xff] }
 0x5fb   : > { %v2726_v30 = vpack.c.bf16 %v2718_v24, %v2717_v49 }
 0x5fd   : > { %2727 = vmatpush.bf16.msra.mxu2 %v2726_v30 }
 0x600   : > { %v2524_v17 = vpop.f32.mrf.mxu3  ;;  %v2538_v53 = vpop.f32.mrf.mxu2 }
 0x601   : > { %v2539_v8 = vadd.f32 %v2538_v53, %v2520_v34  ;;  %v2525_v46 = vadd.f32 %v2524_v17, %v2505_v39  ;;  %v2699_v39 = vunpack.c.0.s8 %v2683_v44  ;;  %v2716_v17 = vcvt.s32.f32 %v2700_v23 }
 0x602   : > { %v2698_v53 = vunpack.c.3.s8 %v2682_v62  ;;  %v2696_v34 = vunpack.c.1.s8 %v2682_v62 }
 0x603   : > { %v2715_v10 = vcvt.s32.f32 %v2699_v39 }
 0x608   : > { %v2555_v41 = vpop.f32.mrf.mxu3  ;;  %v2541_v13 = vpop.f32.mrf.mxu2 }
 0x609   : > { %v2556_v3 = vadd.f32 %v2555_v41, %v2537_v28  ;;  %v2542_v61 = vadd.f32 %v2541_v13, %v2523_v54  ;;  %v2725_v28 = vpack.c.bf16 %v2716_v17, %v2715_v10 }
 0x60b   : > { %v2568_v6 = vmul.f32 %v3479_v25, %v2556_v3  ;;  %2728 = vmatpush.bf16.msra.mxu2 %v2725_v28  ;;  %v2714_v3 = vcvt.s32.f32 %v2698_v53  ;;  %v3481_v53 = vld [vmem:[%s4948_s22] ss:$0 sm:$0xff] }
 0x60d   : > { %v2576_v7 = vadd.f32 %v3480_v5, %v2568_v6  ;;  %v2695_v6 = vunpack.c.0.s8 %v2682_v62 }
 0x60f   : > { %v4690_v21 = vadd.f32 %v3585_v18, %v2576_v7  ;;  %v2711_v7 = vcvt.s32.f32 %v2695_v6  ;;  %v2681_v18 = vld [vmem:[%s4061_s19 + $0x8] sm:$0xff] }
 0x610   : > { %v2557_v50 = vpop.f32.mrf.mxu3  ;;  %v2543_v36 = vpop.f32.mrf.mxu2  ;;  %v2694_v13 = vunpack.c.3.s8 %v2681_v18 }
 0x611   : > { %v2558_v51 = vadd.f32 %v2557_v50, %v2539_v8  ;;  %2586 = vadd.xlane.f32.xlu1 %v4690_v21  ;;  %v2544_v43 = vadd.f32 %v2543_v36, %v2525_v46  ;;  %v2712_v8 = vcvt.s32.f32 %v2696_v34 }
 0x612   : > { %v2710_v54 = vcvt.s32.f32 %v2694_v13 }
 0x613   : > { %v2569_v55 = vmul.f32 %v3479_v25, %v2558_v51  ;;  %v2723_v50 = vpack.c.bf16 %v2712_v8, %v2711_v7  ;;  %v2693_v51 = vunpack.c.2.s8 %v2681_v18  ;;  %v3482_v8 = vld [vmem:[%s901_s26] ss:$0 sm:$0xff] }
 0x615   : > { %v2577_v58 = vadd.f32 %v3480_v5, %v2569_v55  ;;  %v2709_v55 = vcvt.s32.f32 %v2693_v51 }
 0x617   : > { %v4693_v56 = vadd.f32 %v3586_v63, %v2577_v58  ;;  %v2722_v58 = vpack.c.bf16 %v2710_v54, %v2709_v55  ;;  %v2692_v63 = vunpack.c.1.s8 %v2681_v18 }
 0x618   : > { %v2560_v35 = vpop.f32.mrf.mxu3 }
 0x619   : > { %v2561_v19 = vadd.f32 %v2560_v35, %v2542_v61  ;;  %2588 = vadd.xlane.f32.xlu2 %v4693_v56  ;;  %v2691_v61 = vunpack.c.0.s8 %v2681_v18 }
 0x61b   : > { %v2570_v48 = vmul.f32 %v3479_v25, %v2561_v19  ;;  %v2707_v35 = vcvt.s32.f32 %v2691_v61  ;;  %v2708_v19 = vcvt.s32.f32 %v2692_v63 }
 0x61d   : > { %v2578_v31 = vadd.f32 %v3480_v5, %v2570_v48  ;;  %v2680_v48 = vld [vmem:[%s4061_s19] sm:$0xff]  ;;  %v2721_v36 = vpack.c.bf16 %v2708_v19, %v2707_v35 }
 0x61e   : > { %v2689_v46 = vunpack.c.2.s8 %v2680_v48 }
 0x61f   : > { %v4696_v33 = vadd.f32 %v3587_v45, %v2578_v31  ;;  %v2690_v31 = vunpack.c.3.s8 %v2680_v48 }
 0x620   : > { %v2562_v57 = vpop.f32.mrf.mxu3 }
 0x621   : > { %v2563_v29 = vadd.f32 %v2562_v57, %v2544_v43  ;;  %2590 = vadd.xlane.f32.xlu0 %v4696_v33  ;;  %v2705_v43 = vcvt.s32.f32 %v2689_v46  ;;  %v2706_v45 = vcvt.s32.f32 %v2690_v31 }
 0x623   : > { %v2571_v32 = vmul.f32 %v3479_v25, %v2563_v29  ;;  %v2697_v25 = vunpack.c.2.s8 %v2682_v62  ;;  %v2720_v57 = vpack.c.bf16 %v2706_v45, %v2705_v43  ;;  %v2687_v29 = vunpack.c.0.s8 %v2680_v48 }
 0x625   : > { %v2579_v42 = vadd.f32 %v3480_v5, %v2571_v32  ;;  %v2713_v41 = vcvt.s32.f32 %v2697_v25  ;;  %v2688_v32 = vunpack.c.1.s8 %v2680_v48 }
 0x627   : > { %v4699_v0 = vadd.f32 %v3588_v37, %v2579_v42  ;;  %v2724_v5 = vpack.c.bf16 %v2714_v3, %v2713_v41 }
 0x629   : > { %2592 = vadd.xlane.f32.xlu1 %v4699_v0  ;;  %2729 = vmatpush.bf16.msra.mxu2 %v2724_v5 }
 0x62d   : > { %2730 = vmatpush.bf16.msra.mxu2 %v2723_v50 }
 0x631   : > { %2731 = vmatpush.bf16.msra.mxu2 %v2722_v58 }
 0x635   : > { %2732 = vmatpush.bf16.msra.mxu2 %v2721_v36 }
 0x639   : > { %2733 = vmatpush.bf16.msra.mxu2 %v2720_v57 }
 0x684   : > { %v2587_v38 = vpop.xlane.xlu1 %2586 }
 0x685   : > { %v2594_v9 = vmul.f32 %v2587_v38, %v4143_v14  ;;  %v2703_v38 = vcvt.s32.f32 %v2687_v29 }
 0x687   : > { %v4704_v40 = vsub.f32 %v4690_v21, %v2594_v9  ;;  %v2704_v9 = vcvt.s32.f32 %v2688_v32 }
 0x689   : > { %v2602_v2 = vmul.f32 %v4704_v40, %v4704_v40 }
 0x68b   : > { %2606 = vadd.xlane.f32.xlu2 %v2602_v2 }
 0x68c   : > { %v2589_v27 = vpop.xlane.xlu2 %2588 }
 0x68d   : > { %v2595_v1 = vmul.f32 %v2589_v27, %v4143_v14  ;;  %v2719_v27 = vpack.c.bf16 %v2704_v9, %v2703_v38  ;;  %v2868_v38 = vld [vmem:[%s4067_s3 + $0x18] sm:$0xff] }
 0x68e   : > { %v2886_v9 = vunpack.c.2.s8 %v2868_v38 }
 0x68f   : > { %v4710_v26 = vsub.f32 %v4693_v56, %v2595_v1  ;;  %2734 = vmatpush.bf16.msra.mxu2 %v2719_v27 }
 0x690   : > { %v2902_v27 = vcvt.s32.f32 %v2886_v9 }
 0x691   : > { %v2603_v22 = vmul.f32 %v4710_v26, %v4710_v26 }
 0x693   : > { %2608 = vadd.xlane.f32.xlu0 %v2603_v22 }
 0x694   : > { %v2591_v4 = vpop.xlane.xlu0 %2590 }
 0x695   : > { %v2596_v16 = vmul.f32 %v2591_v4, %v4143_v14 }
 0x697   : > { %v4716_v60 = vsub.f32 %v4696_v33, %v2596_v16 }
 0x699   : > { %v2604_v59 = vmul.f32 %v4716_v60, %v4716_v60 }
 0x69b   : > { %2610 = vadd.xlane.f32.xlu1 %v2604_v59 }
 0x69c   : > { %v2593_v11 = vpop.xlane.xlu1 %2592 }
 0x69d   : > { %v2597_v20 = vmul.f32 %v2593_v11, %v4143_v14 }
 0x69f   : > { %v4722_v52 = vsub.f32 %v4699_v0, %v2597_v20 }
 0x6a1   : > { %v2605_v15 = vmul.f32 %v4722_v52, %v4722_v52 }
 0x6a3   : > { %2612 = vadd.xlane.f32.xlu2 %v2605_v15 }
 0x6fe   : > { %v2607_v42 = vpop.xlane.xlu2 %2606 }
 0x6ff   : > { %v2614_v37 = vmul.f32 %v2607_v42, %v4143_v14 }
 0x701   : > { %v2618_v2 = vadd.f32 1e-05, %v2614_v37 }
 0x703   : > { %3561 = vrsqrt.f32 %v2618_v2  ;;  %vm2628_vm14 = vweird.f32 %v2618_v2 }
 0x706   : > { %v2609_v1 = vpop.xlane.xlu0 %2608 }
 0x707   : > { %v2615_v22 = vmul.f32 %v2609_v1, %v4143_v14 }
 0x709   : > { %v3562_v4 = vpop.eup %3561  ;;  %v2619_v16 = vadd.f32 1e-05, %v2615_v22  ;;  %v2884_v22 = vunpack.c.0.s8 %v2868_v38 }
 0x70a   : > { %v2623_v59 = vmul.f32 %v3562_v4, %v2618_v2  ;;  %vm2629_vm13 = vweird.f32 %v3562_v4  ;;  %v2887_v2 = vunpack.c.3.s8 %v2868_v38 }
 0x70b   : > { %3563 = vrsqrt.f32 %v2619_v16  ;;  %vm2630_vm15 = vmor %vm2628_vm14, %vm2629_vm13  ;;  %vm2638_vm1 = vweird.f32 %v2619_v16 }
 0x70c   : > { %v2624_v11 = vmul.f32 %v3562_v4, %v2623_v59  ;;  %v4754_v59 = vld [vmem:[%s904_s2] ss:$0 sm:$0xff] }
 0x70e   : > { %v2625_v20 = vmul.f32 0.5, %v2624_v11  ;;  %v2611_v15 = vpop.xlane.xlu1 %2610  ;;  %v2867_v11 = vld [vmem:[%s4067_s3 + $0x10] sm:$0xff] }
 0x70f   : > { %v2616_v44 = vmul.f32 %v2611_v15, %v4143_v14  ;;  %v2882_v15 = vunpack.c.2.s8 %v2867_v11 }
 0x710   : > { %v2626_v12 = vsub.f32 1.5, %v2625_v20 }
 0x711   : > { %v3564_v47 = vpop.eup %3563  ;;  %v2620_v49 = vadd.f32 1e-05, %v2616_v44  ;;  %v2883_v44 = vunpack.c.3.s8 %v2867_v11 }
 0x712   : > { %v2627_v24 = vmul.f32 %v3562_v4, %v2626_v12  ;;  %v2633_v30 = vmul.f32 %v3564_v47, %v2619_v16  ;;  %vm2639_vm0 = vweird.f32 %v3564_v47  ;;  %v2900_v16 = vcvt.s32.f32 %v2884_v22  ;;  %v4762_v12 = vld [vmem:[%s907_s23] ss:$0 sm:$0xff] }
 0x713   : > { %3565 = vrsqrt.f32 %v2620_v49  ;;  %vm2640_vm2 = vmor %vm2638_vm1, %vm2639_vm0  ;;  %vm2648_vm4 = vweird.f32 %v2620_v49 }
 0x714   : > { %v2634_v39 = vmul.f32 %v3564_v47, %v2633_v30  ;;  %v2631_v23 = vsel %vm2630_vm15, %v3562_v4, %v2627_v24  ;;  %v2885_v4 = vunpack.c.1.s8 %v2868_v38  ;;  %v2899_v24 = vcvt.s32.f32 %v2883_v44 }
 0x715   : > { %v2662_v41 = vmul.f32 %v2631_v23, %v4704_v40  ;;  %v2880_v23 = vunpack.c.0.s8 %v2867_v11 }
 0x716   : > { %v2635_v10 = vmul.f32 0.5, %v2634_v39  ;;  %v2613_v17 = vpop.xlane.xlu2 %2612 }
 0x717   : > { %v2617_v62 = vmul.f32 %v2613_v17, %v4143_v14  ;;  %v2669_v18 = vmul.f32 %v3481_v53, %v2662_v41 }
 0x718   : > { %v2636_v28 = vsub.f32 1.5, %v2635_v10  ;;  %v2881_v10 = vunpack.c.1.s8 %v2867_v11 }
 0x719   : > { %v3566_v25 = vpop.eup %3565  ;;  %v2621_v3 = vadd.f32 1e-05, %v2617_v62  ;;  %v2676_v54 = vadd.f32 %v3482_v8, %v2669_v18  ;;  %v2896_v62 = vcvt.s32.f32 %v2880_v23 }
 0x71a   : > { %v2637_v5 = vmul.f32 %v3564_v47, %v2636_v28  ;;  %v2643_v6 = vmul.f32 %v3566_v25, %v2620_v49  ;;  %vm2649_vm3 = vweird.f32 %v3566_v25  ;;  %v2898_v49 = vcvt.s32.f32 %v2882_v15 }
 0x71b   : > { %3567 = vrsqrt.f32 %v2621_v3  ;;  %vm2650_vm5 = vmor %vm2648_vm4, %vm2649_vm3  ;;  %vm2658_vm7 = vweird.f32 %v2621_v3  ;;  %v2897_v28 = vcvt.s32.f32 %v2881_v10 }
 0x71c   : > { %v2641_v34 = vsel %vm2640_vm2, %v3564_v47, %v2637_v5  ;;  %v2644_v7 = vmul.f32 %v3566_v25, %v2643_v6  ;;  %v2909_v39 = vpack.c.bf16 %v2899_v24, %v2898_v49 }
 0x71d   : > { %v2663_v50 = vmul.f32 %v2641_v34, %v4710_v26  ;;  %v2908_v41 = vpack.c.bf16 %v2897_v28, %v2896_v62 }
 0x71e   : > { %v2645_v51 = vmul.f32 0.5, %v2644_v7 }
 0x71f   : > { %v2670_v13 = vmul.f32 %v3481_v53, %v2663_v50 }
 0x720   : > { %v2646_v55 = vsub.f32 1.5, %v2645_v51 }
 0x721   : > { %v3568_v40 = vpop.eup %3567  ;;  %v2677_v58 = vadd.f32 %v3482_v8, %v2670_v13 }
 0x722   : > { %v2647_v61 = vmul.f32 %v3566_v25, %v2646_v55  ;;  %v2653_v63 = vmul.f32 %v3568_v40, %v2621_v3  ;;  %vm2659_vm6 = vweird.f32 %v3568_v40 }
 0x723   : > { %v2685_v35 = vpack.c.bf16 %v2677_v58, %v2676_v54  ;;  %vm2660_vm8 = vmor %vm2658_vm7, %vm2659_vm6 }
 0x724   : > { %v2654_v19 = vmul.f32 %v3568_v40, %v2653_v63  ;;  %v2651_v48 = vsel %vm2650_vm5, %v3566_v25, %v2647_v61 }
 0x725   : > { %2735 = vmatmul.bf16.vlgmr.msra.gmra.mxu2 %v2685_v35  ;;  %v2664_v26 = vmul.f32 %v2651_v48, %v4716_v60  ;;  %v2903_v60 = vcvt.s32.f32 %v2887_v2  ;;  %v2865_v35 = vld [vmem:[%s4067_s3] sm:$0xff] }
 0x726   : > { %v2655_v36 = vmul.f32 0.5, %v2654_v19  ;;  %v2874_v48 = vunpack.c.2.s8 %v2865_v35 }
 0x727   : > { %v2671_v57 = vmul.f32 %v3481_v53, %v2664_v26  ;;  %v2911_v1 = vpack.c.bf16 %v2903_v60, %v2902_v27 }
 0x728   : > { %v2656_v46 = vsub.f32 1.5, %v2655_v36  ;;  %v2875_v36 = vunpack.c.3.s8 %v2865_v35 }
 0x729   : > { %v2678_v32 = vadd.f32 %v3482_v8, %v2671_v57  ;;  %2912 = vmatpush.bf16.msrb.mxu3 %v2911_v1 }
 0x72a   : > { %v2657_v31 = vmul.f32 %v3568_v40, %v2656_v46 }
 0x72c   : > { %v2661_v43 = vsel %vm2660_vm8, %v3568_v40, %v2657_v31  ;;  %v2890_v31 = vcvt.s32.f32 %v2874_v48 }
 0x72d   : > { %v2665_v45 = vmul.f32 %v2661_v43, %v4722_v52  ;;  %v2901_v52 = vcvt.s32.f32 %v2885_v4  ;;  %v2891_v43 = vcvt.s32.f32 %v2875_v36 }
 0x72f   : > { %v2672_v29 = vmul.f32 %v3481_v53, %v2665_v45  ;;  %v2910_v20 = vpack.c.bf16 %v2901_v52, %v2900_v16  ;;  %v2866_v53 = vld [vmem:[%s4067_s3 + $0x8] sm:$0xff] }
 0x730   : > { %v2878_v3 = vunpack.c.2.s8 %v2866_v53  ;;  %v2879_v5 = vunpack.c.3.s8 %v2866_v53  ;;  %v2876_v13 = vunpack.c.0.s8 %v2866_v53  ;;  %v2877_v55 = vunpack.c.1.s8 %v2866_v53 }
 0x731   : > { %v2679_v42 = vadd.f32 %v3482_v8, %v2672_v29  ;;  %2913 = vmatpush.bf16.msrb.mxu3 %v2910_v20  ;;  %v2905_v29 = vpack.c.bf16 %v2891_v43, %v2890_v31 }
 0x732   : > { %v2894_v7 = vcvt.s32.f32 %v2878_v3  ;;  %v2895_v8 = vcvt.s32.f32 %v2879_v5  ;;  %v2892_v58 = vcvt.s32.f32 %v2876_v13  ;;  %v2893_v61 = vcvt.s32.f32 %v2877_v55 }
 0x733   : > { %v2686_v37 = vpack.c.bf16 %v2679_v42, %v2678_v32  ;;  %v2872_v32 = vunpack.c.0.s8 %v2865_v35  ;;  %v2873_v42 = vunpack.c.1.s8 %v2865_v35 }
 0x734   : > { %v2907_v51 = vpack.c.bf16 %v2895_v8, %v2894_v7  ;;  %v2906_v19 = vpack.c.bf16 %v2893_v61, %v2892_v58 }
 0x735   : > { %2740 = vmatmul.bf16.gmra.mxu2 %v2686_v37  ;;  %2914 = vmatpush.bf16.msrb.mxu3 %v2909_v39  ;;  %v2888_v60 = vcvt.s32.f32 %v2872_v32  ;;  %v2889_v1 = vcvt.s32.f32 %v2873_v42 }
 0x737   : > { %v2904_v16 = vpack.c.bf16 %v2889_v1, %v2888_v60 }
 0x739   : > { %2915 = vmatpush.bf16.msrb.mxu3 %v2908_v41 }
 0x73d   : > { %2916 = vmatpush.bf16.msrb.mxu3 %v2907_v51 }
 0x741   : > { %2917 = vmatpush.bf16.msrb.mxu3 %v2906_v19 }
 0x745   : > { %2918 = vmatpush.bf16.msrb.mxu3 %v2905_v29 }
 0x749   : > { %2919 = vmatpush.bf16.msrb.mxu3 %v2904_v16 }
 0x7a8   : > { %v2736_v47 = vpop.f32.mrf.mxu2 }
 0x7a9   : > { %v2749_v30 = vmul.f32 %v4754_v59, %v2736_v47 }
 0x7ab   : > { %v4766_v17 = vadd.f32 %v4762_v12, %v2749_v30 }
 0x7ad   : > { %v4769_v25 = vmul.f32 0.70710677, %v4766_v17 }
 0x7af   : > { %v2777_v6 = vand.u32 2147483647, %v4769_v25  ;;  %vm2769_vm9 = vcmp.ge.f32.partialorder %v4769_v25, 0.0 }
 0x7b0   : > { %v2738_v34 = vpop.f32.mrf.mxu2 }
 0x7b1   : > { %v2781_v18 = vmul.f32 0.3275911, %v2777_v6  ;;  %v2750_v50 = vmul.f32 %v4754_v59, %v2738_v34  ;;  %v2829_v38 = vsub.f32 0.0, %v2777_v6 }
 0x7b3   : > { %v2785_v40 = vadd.f32 1.0, %v2781_v18  ;;  %v4775_v54 = vadd.f32 %v4762_v12, %v2750_v50  ;;  %v2833_v52 = vmul.f32 %v2829_v38, %v2777_v6 }
 0x7b5   : > { %3569 = vrcp.f32 %v2785_v40  ;;  %v4778_v63 = vmul.f32 0.70710677, %v4775_v54  ;;  %v2837_v30 = vmul.f32 1.442695, %v2833_v52 }
 0x7b7   : > { %v2778_v46 = vand.u32 2147483647, %v4778_v63  ;;  %vm2770_vm10 = vcmp.ge.f32.partialorder %v4778_v63, 0.0 }
 0x7b8   : > { %v2741_v26 = vpop.f32.mrf.mxu2 }
 0x7b9   : > { %v2782_v45 = vmul.f32 0.3275911, %v2778_v46  ;;  %v2751_v57 = vmul.f32 %v4754_v59, %v2741_v26  ;;  %v2830_v39 = vsub.f32 0.0, %v2778_v46 }
 0x7bb   : > { %v3570_v37 = vpop.eup %3569  ;;  %v2786_v9 = vadd.f32 1.0, %v2782_v45  ;;  %v4784_v2 = vadd.f32 %v4762_v12, %v2751_v57  ;;  %v2834_v5 = vmul.f32 %v2830_v39, %v2778_v46  ;;  %v2761_v39 = vmul.f32 0.5, %v4766_v17 }
 0x7bc   : > { %v2793_v27 = vmul.f32 1.0614054, %v3570_v37 }
 0x7bd   : > { %3571 = vrcp.f32 %v2786_v9  ;;  %v4787_v22 = vmul.f32 0.70710677, %v4784_v2 }
 0x7be   : > { %v2797_v4 = vadd.f32 -1.4531521, %v2793_v27  ;;  %v3798_v27 = vmov -1.0  }
 0x7bf   : > { %v2779_v11 = vand.u32 2147483647, %v4787_v22  ;;  %v2773_v60 = vsel %vm2769_vm9, 1.0, %v3798_v27  ;;  %vm2771_vm11 = vcmp.ge.f32.partialorder %v4787_v22, 0.0 }
 0x7c0   : > { %v2801_v20 = vmul.f32 %v3570_v37, %v2797_v4  ;;  %v2743_v15 = vpop.f32.mrf.mxu2 }
 0x7c1   : > { %v2783_v44 = vmul.f32 0.3275911, %v2779_v11  ;;  %v2752_v47 = vmul.f32 %v4754_v59, %v2743_v15  ;;  %v2831_v51 = vsub.f32 0.0, %v2779_v11 }
 0x7c2   : > { %v2805_v49 = vadd.f32 1.4214138, %v2801_v20 }
 0x7c3   : > { %v3572_v24 = vpop.eup %3571  ;;  %v2787_v23 = vadd.f32 1.0, %v2783_v44  ;;  %v4792_v10 = vadd.f32 %v4762_v12, %v2752_v47  ;;  %v2839_v12 = vmul.f32 1.442695, %v2834_v5  ;;  %v2835_v36 = vmul.f32 %v2831_v51, %v2779_v11 }
 0x7c4   : > { %v2809_v62 = vmul.f32 %v3570_v37, %v2805_v49  ;;  %v2794_v28 = vmul.f32 1.0614054, %v3572_v24  ;;  %v2774_v44 = vsel %vm2770_vm10, 1.0, %v3798_v27 }
 0x7c5   : > { %3573 = vrcp.f32 %v2787_v23  ;;  %v4795_v53 = vmul.f32 0.70710677, %v4792_v10  ;;  %v2841_v29 = vmul.f32 1.442695, %v2835_v36  ;;  %v2764_v22 = vmul.f32 0.5, %v4792_v10 }
 0x7c6   : > { %v2813_v41 = vadd.f32 -0.28449672, %v2809_v62  ;;  %v2798_v3 = vadd.f32 -1.4531521, %v2794_v28  ;;  %3575 = vpow2.f32 %v2837_v30  ;;  %v2762_v62 = vmul.f32 0.5, %v4775_v54 }
 0x7c7   : > { %v2780_v59 = vand.u32 2147483647, %v4795_v53  ;;  %vm2772_vm12 = vcmp.ge.f32.partialorder %v4795_v53, 0.0  ;;  %v3485_v53 = vld [vmem:[%s910_s21] ss:$0 sm:$0xff] }
 0x7c8   : > { %v2817_v6 = vmul.f32 %v3570_v37, %v2813_v41  ;;  %v2802_v34 = vmul.f32 %v3572_v24, %v2798_v3 }
 0x7c9   : > { %v2784_v7 = vmul.f32 0.3275911, %v2780_v59  ;;  %v2832_v32 = vsub.f32 0.0, %v2780_v59 }
 0x7ca   : > { %v2821_v8 = vadd.f32 0.2548296, %v2817_v6  ;;  %v2806_v18 = vadd.f32 1.4214138, %v2802_v34 }
 0x7cb   : > { %v3574_v50 = vpop.eup %3573  ;;  %v2788_v13 = vadd.f32 1.0, %v2784_v7  ;;  %v2836_v25 = vmul.f32 %v2832_v32, %v2780_v59 }
 0x7cc   : > { %v2825_v55 = vmul.f32 %v3570_v37, %v2821_v8  ;;  %v2810_v40 = vmul.f32 %v3572_v24, %v2806_v18  ;;  %v2795_v58 = vmul.f32 1.0614054, %v3574_v50  ;;  %v3576_v61 = vpop.eup %3575 }
 0x7cd   : > { %3577 = vrcp.f32 %v2788_v13  ;;  %v2843_v23 = vmul.f32 1.442695, %v2836_v25  ;;  %v2775_v13 = vsel %vm2771_vm11, 1.0, %v3798_v27 }
 0x7ce   : > { %v2845_v35 = vmul.f32 %v3576_v61, %v2825_v55  ;;  %v2814_v19 = vadd.f32 -0.28449672, %v2810_v40  ;;  %v2799_v48 = vadd.f32 -1.4531521, %v2795_v58  ;;  %3579 = vpow2.f32 %v2839_v12 }
 0x7cf   : > { %3581 = vpow2.f32 %v2841_v29  ;;  %v2776_v40 = vsel %vm2772_vm12, 1.0, %v3798_v27 }
 0x7d0   : > { %v2818_v46 = vmul.f32 %v3572_v24, %v2814_v19  ;;  %v2803_v26 = vmul.f32 %v3574_v50, %v2799_v48  ;;  %v2849_v31 = vsub.f32 1.0, %v2845_v35  ;;  %3583 = vpow2.f32 %v2843_v23 }
 0x7d1   : > { %v2763_v35 = vmul.f32 0.5, %v4784_v2  ;;  %v3486_v2 = vld [vmem:[%s913_s4] ss:$0 sm:$0xff]  ;;  %s4956_s4 = sld [smem:[#allocation39_spill]] (!%p3387_p7) }
 0x7d2   : > { %v2822_v43 = vadd.f32 0.2548296, %v2818_v46  ;;  %v2807_v45 = vadd.f32 1.4214138, %v2803_v26  ;;  %v2853_v1 = vmul.f32 %v2849_v31, %v2773_v60  ;;  %v2950_v26 = vlaneseq }
 0x7d3   : > { %v3578_v57 = vpop.eup %3577 }
 0x7d4   : > { %v2826_v42 = vmul.f32 %v3572_v24, %v2822_v43  ;;  %v2796_v37 = vmul.f32 1.0614054, %v3578_v57  ;;  %v2811_v38 = vmul.f32 %v3574_v50, %v2807_v45  ;;  %v3580_v9 = vpop.eup %3579  ;;  %v2857_v47 = vadd.f32 1.0, %v2853_v1 }
 0x7d5   : > { %v3582_v3 = vpop.eup %3581  ;;  %v2951_v43 = vshrl.u32 %v2950_v26, 7 }
 0x7d6   : > { %v2846_v4 = vmul.f32 %v3580_v9, %v2826_v42  ;;  %v2800_v16 = vadd.f32 -1.4531521, %v2796_v37  ;;  %v2815_v52 = vadd.f32 -0.28449672, %v2811_v38  ;;  %v2861_v5 = vmul.f32 %v2857_v47, %v2761_v39  ;;  %v3584_v51 = vpop.eup %3583 }
 0x7d8   : > { %v2850_v11 = vsub.f32 1.0, %v2846_v4  ;;  %v2804_v20 = vmul.f32 %v3578_v57, %v2800_v16  ;;  %v2819_v15 = vmul.f32 %v3574_v50, %v2815_v52  ;;  %v2954_v16 = vadd.s32 24, %v2951_v43 }
 0x7da   : > { %v2854_v49 = vmul.f32 %v2850_v11, %v2774_v44  ;;  %v2808_v24 = vadd.f32 1.4214138, %v2804_v20  ;;  %v2823_v30 = vadd.f32 0.2548296, %v2819_v15  ;;  %v2980_v11 = vand.u32 15, %v2954_v16 }
 0x7dc   : > { %v2858_v63 = vadd.f32 1.0, %v2854_v49  ;;  %v2812_v28 = vmul.f32 %v3578_v57, %v2808_v24  ;;  %v2827_v41 = vmul.f32 %v3574_v50, %v2823_v30  ;;  %vm3006_vm14 = vcmp.lt.s32.totalorder %v2980_v11, 9 }
 0x7de   : > { %v2862_v6 = vmul.f32 %v2858_v63, %v2762_v62  ;;  %v2816_v59 = vadd.f32 -0.28449672, %v2812_v28  ;;  %v2847_v34 = vmul.f32 %v3582_v3, %v2827_v41 }
 0x7e0   : > { %v2870_v7 = vpack.c.bf16 %v2862_v6, %v2861_v5  ;;  %v2820_v8 = vmul.f32 %v3578_v57, %v2816_v59  ;;  %v2851_v12 = vsub.f32 1.0, %v2847_v34 }
 0x7e2   : > { %2920 = vmatmul.bf16.vlgmr.msrb.gmra.mxu3 %v2870_v7  ;;  %v2824_v18 = vadd.f32 0.2548296, %v2820_v8  ;;  %v2855_v50 = vmul.f32 %v2851_v12, %v2775_v13 }
 0x7e4   : > { %v2828_v17 = vmul.f32 %v3578_v57, %v2824_v18  ;;  %v2859_v61 = vadd.f32 1.0, %v2855_v50  ;;  %v2952_v57 = vadd.s32 8, %v2951_v43 }
 0x7e6   : > { %v2848_v54 = vmul.f32 %v3584_v51, %v2828_v17  ;;  %v2863_v48 = vmul.f32 %v2859_v61, %v2763_v35  ;;  %v2966_v42 = vand.u32 15, %v2952_v57 }
 0x7e8   : > { %v2852_v55 = vsub.f32 1.0, %v2848_v54  ;;  %vm4818_vm13 = vcmp.lt.s32.totalorder %v2966_v42, 9 }
 0x7ea   : > { %v2856_v58 = vmul.f32 %v2852_v55, %v2776_v40 }
 0x7ec   : > { %v2860_v19 = vadd.f32 1.0, %v2856_v58 }
 0x7ee   : > { %v2864_v36 = vmul.f32 %v2860_v19, %v2764_v22 }
 0x7f0   : > { %v2871_v46 = vpack.c.bf16 %v2864_v36, %v2863_v48 }
 0x7f2   : > { %2925 = vmatmul.bf16.gmra.mxu3 %v2871_v46 }
 0x865   : > { %v2921_v31 = vpop.f32.mrf.mxu3 }
 0x866   : > { %v2934_v45 = vmul.f32 %v3485_v53, %v2921_v31 }
 0x868   : > { %v2938_v10 = vadd.f32 %v2934_v45, %v4690_v21 }
 0x86a   : > { %v2946_v29 = vadd.f32 %v3486_v2, %v2938_v10 }
 0x86c   : > { %3019 = vst [vmem:[#allocation2 + $0x10] sm:$0xff] %v2946_v29 }
 0x86d   : > { %v2923_v32 = vpop.f32.mrf.mxu3 }
 0x86e   : > { %v2935_v37 = vmul.f32 %v3485_v53, %v2923_v32 }
 0x870   : > { %v2939_v38 = vadd.f32 %v2935_v37, %v4693_v56 }
 0x872   : > { %v2947_v27 = vadd.f32 %v3486_v2, %v2939_v38 }
 0x874   : > { %v3016_v60 = vsel %vm4818_vm13, %v2947_v27, 0.0 }
 0x875   : > { %3020 = vst [vmem:[#allocation2] sm:$0xff] %v3016_v60  ;;  %v2926_v1 = vpop.f32.mrf.mxu3 }
 0x876   : > { %v2936_v4 = vmul.f32 %v3485_v53, %v2926_v1 }
 0x878   : > { %v2940_v21 = vadd.f32 %v2936_v4, %v4696_v33 }
 0x87a   : > { %v2948_v52 = vadd.f32 %v3486_v2, %v2940_v21 }
 0x87c   : > { %3021 = vst [vmem:[#allocation2 + $0x18] sm:$0xff] %v2948_v52 }
 0x87d   : > { %v2928_v25 = vpop.f32.mrf.mxu3 }
 0x87e   : > { %v2937_v20 = vmul.f32 %v3485_v53, %v2928_v25 }
 0x880   : > { %v2941_v56 = vadd.f32 %v2937_v20, %v4699_v0 }
 0x881   : > { %3026 = sbr.rel (%p3387_p7) target bundleno = 2712 (0xa98), region = 143 }
 0x882   : > { %v2949_v15 = vadd.f32 %v3486_v2, %v2941_v56 }
 0x884   : > { %v3018_v44 = vsel %vm3006_vm14, %v2949_v15, 0.0 }
 0x885   : > { %3022 = vst [vmem:[#allocation2 + $0x8] sm:$0xff] %v3018_v44 }
 0x886   : > { %3388 = vmatpush.msk.msra.mxu0 %vm3006_vm14, %v2949_v15  ;;  %v3028_v47 = vand.u32 127, %v2950_v26  ;;  %v3029_v49 = vmul.u32 16, %v2951_v43  ;;  %vm3035_vm1 = vcmask 261120   ;;  %v3799_v0 = vmov 0.0   ;;  %v3107_v23 = vld [vmem:[#allocation12 + $0x78] sm:$0xff]  ;;  %v3106_v62 = vld [vmem:[#allocation12 + $0x70] sm:$0xff] }
 0x887   : > { %vm3061_vm3 = vcmask 1041408   ;;  %3112 = vmatpush.msra.mxu1 %v3107_v23  ;;  %v3105_v6 = vld [vmem:[#allocation12 + $0x68] sm:$0xff]  ;;  %v3104_v59 = vld [vmem:[#allocation12 + $0x60] sm:$0xff]  ;;  %v3103_v34 = vld [vmem:[#allocation12 + $0x58] sm:$0xff] }
 0x888   : > { %3052 = vmatpush.msra.mxu0 %v2948_v52  ;;  %vm3030_vm15 = vcmp.ge.s32.totalorder %v3028_v47, %v3029_v49  ;;  %v3031_v33 = vadd.s32 9, %v3029_v49  ;;  %v3102_v7 = vld [vmem:[#allocation12 + $0x50] sm:$0xff]  ;;  %v3101_v8 = vld [vmem:[#allocation12 + $0x48] sm:$0xff]  ;;  %v3100_v18 = vld [vmem:[#allocation12 + $0x40] sm:$0xff] }
 0x889   : > { %3113 = vmatpush.msra.mxu1 %v3106_v62  ;;  %v3099_v12 = vld [vmem:[#allocation12 + $0x38] sm:$0xff]  ;;  %v3098_v17 = vld [vmem:[#allocation12 + $0x30] sm:$0xff]  ;;  %v3097_v51 = vld [vmem:[#allocation12 + $0x28] sm:$0xff] }
 0x88a   : > { %3389 = vmatpush.msk.msra.mxu0 %vm4818_vm13, %v2947_v27  ;;  %vm3032_vm0 = vcmp.lt.s32.totalorder %v3028_v47, %v3031_v33  ;;  %v3096_v13 = vld [vmem:[#allocation12 + $0x20] sm:$0xff]  ;;  %v3095_v54 = vld [vmem:[#allocation12 + $0x18] sm:$0xff]  ;;  %v3094_v50 = vld [vmem:[#allocation12 + $0x10] sm:$0xff] }
 0x88b   : > { %vm3033_vm2 = vmand %vm3030_vm15, %vm3032_vm0  ;;  %3114 = vmatpush.msra.mxu1 %v3105_v6  ;;  %v3093_v55 = vld [vmem:[#allocation12 + $0x8] sm:$0xff]  ;;  %v3092_v40 = vld [vmem:[#allocation12] sm:$0xff] }
 0x88c   : > { %3054 = vmatpush.msra.mxu0 %v2946_v29  ;;  %v3034_v24 = vsel %vm3033_vm2, 0.11111111, %v3799_v0  ;;  %v3589_v53 = vld [vmem:[%s4956_s4] ss:$0 sm:$0xff] }
 0x88d   : > { %3390 = vmatmul.msk.f32.vlgmr.msra.gmra.mxu0 %vm3035_vm1, %v3034_v24  ;;  %3115 = vmatpush.msra.mxu1 %v3104_v59  ;;  %v3591_v10 = vld [vmem:[%s4958_s29] ss:$0 sm:$0xff] }
 0x88f   : > { %3116 = vmatpush.msra.mxu1 %v3103_v34 }
 0x891   : > { %3117 = vmatpush.msra.mxu1 %v3102_v7 }
 0x893   : > { %3118 = vmatpush.msra.mxu1 %v3101_v8 }
 0x895   : > { %3119 = vmatpush.msra.mxu1 %v3100_v18 }
 0x897   : > { %3120 = vmatpush.msra.mxu1 %v3099_v12 }
 0x899   : > { %3121 = vmatpush.msra.mxu1 %v3098_v17 }
 0x89b   : > { %3122 = vmatpush.msra.mxu1 %v3097_v51 }
 0x89d   : > { %3123 = vmatpush.msra.mxu1 %v3096_v13 }
 0x89f   : > { %3124 = vmatpush.msra.mxu1 %v3095_v54 }
 0x8a1   : > { %3125 = vmatpush.msra.mxu1 %v3094_v50 }
 0x8a3   : > { %3126 = vmatpush.msra.mxu1 %v3093_v55 }
 0x8a5   : > { %3127 = vmatpush.msra.mxu1 %v3092_v40 }
 0x90a   : > { %v3056_v30 = vpop.f32.mrf.mxu0 }
 0x90b   : > { %v3062_v39 = vsel %vm3061_vm3, %v3056_v30, 0.0 }
 0x90c   : > { %3063 = vadd.xlane.f32.xlu0 %v3062_v39 }
 0x97f   : > { %v3064_v63 = vpop.xlane.xlu0 %3063 }
 0x980   : > { %v3065_v28 = vmul.f32 %v3064_v63, %v4143_v14 }
 0x982   : > { %v3066_v41 = vsub.f32 %v3056_v30, %v3065_v28 }
 0x984   : > { %v3067_v3 = vmul.f32 %v3066_v41, %v3066_v41 }
 0x986   : > { %v3068_v5 = vsel %vm3061_vm3, %v3067_v3, 0.0 }
 0x987   : > { %3069 = vadd.xlane.f32.xlu0 %v3068_v5 }
 0x9fa   : > { %v3070_v58 = vpop.xlane.xlu0 %3069 }
 0x9fb   : > { %v3071_v61 = vmul.f32 %v3070_v58, %v4143_v14  ;;  %v3590_v14 = vld [vmem:[%s4957_s14] ss:$0 sm:$0xff] }
 0x9fd   : > { %v3072_v35 = vadd.f32 1e-05, %v3071_v61 }
 0x9ff   : > { %3592 = vrsqrt.f32 %v3072_v35  ;;  %vm3079_vm5 = vweird.f32 %v3072_v35 }
 0xa05   : > { %v3593_v22 = vpop.eup %3592 }
 0xa06   : > { %v3074_v19 = vmul.f32 %v3593_v22, %v3072_v35  ;;  %vm3080_vm4 = vweird.f32 %v3593_v22 }
 0xa07   : > { %vm3081_vm6 = vmor %vm3079_vm5, %vm3080_vm4 }
 0xa08   : > { %v3075_v48 = vmul.f32 %v3593_v22, %v3074_v19 }
 0xa0a   : > { %v3076_v36 = vmul.f32 0.5, %v3075_v48 }
 0xa0c   : > { %v3077_v46 = vsub.f32 1.5, %v3076_v36 }
 0xa0e   : > { %v3078_v26 = vmul.f32 %v3593_v22, %v3077_v46 }
 0xa10   : > { %v3082_v31 = vsel %vm3081_vm6, %v3593_v22, %v3078_v26 }
 0xa11   : > { %v3083_v43 = vmul.f32 %v3082_v31, %v3066_v41 }
 0xa13   : > { %v3087_v45 = vmul.f32 %v3589_v53, %v3083_v43 }
 0xa15   : > { %v3091_v2 = vadd.f32 %v3590_v14, %v3087_v45 }
 0xa17   : > { %3128 = vmatmul.f32.vlgmr.msra.gmra.mxu1 %v3091_v2 }
 0xa94   : > { %v3129_v57 = vpop.f32.mrf.mxu1 }
 0xa95   : > { %v3130_v29 = vadd.f32 %v3591_v10, %v3129_v57 }
 0xa97   : > { %3132 = vst [vmem:[#allocation14] sm:$0x3] %v3130_v29 }
 0xa98 PF: > { %p3434_p0 = scmp.eq.s32.totalorder %s3988_s11, 1  ;;  %s3800_s22 = smov [#allocation14]  }
 0xa99   : > { %s3139_s25 = sshll.u32 %s3800_s22, 4  ;;  %s4959_s26 = sld [smem:[#allocation43_spill]]  ;;  %s3140_s25 = int_to_ptr.vmem [resolvable:$true] %s3139_s25 }
 0xa9f   : > { %s3141_s17 = sshll.u32 %s4959_s26, 4  ;;  %s3142_s17 = int_to_ptr.hbm [resolvable:$true] %s3141_s17 }
 0xaa0   : > { %3414 = dma.vmem_to_hbm [thread:$0]  (%p3434_p0), %s3140_s25, 32, %s3142_s17, [#allocation8]  }
 0xaa1   : > { %3773 = dma.done.wait (%p3434_p0), [#allocation8], 32  }
 0xaa2   : > { %3775 = vsyncadd (%p3434_p0), [#allocation8], 4294967264 }
 0xaa3 PF: > { %s4960_s27 = sld [smem:[#allocation23_spill]] }
 0xaa4   : > { %s4961_s2 = sld [smem:[#allocation21_spill]] }
 0xaa5   : > { %s4962_s25 = sld [smem:[#allocation22_spill]] }
 0xaa6   : > { %s4963_s26 = sld [smem:[#allocation24_spill]] }
 0xaa9   : > { %p36_p4 = scmp.ge.s32.totalorder %s4960_s27, 4  }
 0xaab   :  { %38 = sbr.rel (!%p36_p4) target bundleno = 27 (0x1b), region = 232 }
 0xab0   :  { %3155 = vsyncpa [#allocation7], 1 }
 0xab1   :  { %3157 = vsyncpa [#allocation7 + $0x1], 1 }
 0xab2   :  { %3158 = vsyncpa [#allocation10], 1 }
 0xab3   :  { %3160 = vsyncpa [#allocation10 + $0x1], 1 }
 0xab4   :  { %3161 = vsyncpa [#allocation13], 1 }
 0xab5   :  { %3162 = vsyncpa [#allocation8], 1 }
 0xab6   :  { %3164 = vsyncpa [#allocation8 + $0x1], 1 }
 0xab7   :  { %3165 = vsyncmov [#allocation5] }
 0xaba   :  { %s3166_s11 = vpop.sfrf %3165 }
 0xabb   :  { %p3395_p6 = scmp.ne.s32.totalorder %s3166_s11, 0 }
 0xabd   :  { %3170 = shalt.err (%p3395_p6)  }

</bundles_post_ra>
